<compile_context>
chip_gen: v7x
topology: tpu7x:2x2x1
jax: 0.10.0
libtpu: 0.0.40
codegen_flags: <defaults>
</compile_context>

<pallas_src>
import functools

import jax
import jax.numpy as jnp
from jax.experimental import pallas as pl
from jax.experimental.pallas import tpu as pltpu


def _round_up(v, m):
    return (v + m - 1) // m * m


def _pick_tile(n_pad, max_tile):
    """Largest multiple of 128 that divides n_pad and is <= max_tile."""
    best = 128
    t = 128
    limit = min(n_pad, max_tile)
    while t <= limit:
        if n_pad % t == 0:
            best = t
        t += 128
    return best


def _graph_conv_kernel(mask_ref, adj_ref, xk_ref, xi_ref, wcat_ref, out_ref,
                       acc_ref, *, d_pad):
    """Grid = (i: node-row blocks [parallel], k: reduction blocks [arbitrary]).

    acc_ref is (tm, 2*d_pad) f32:
      left  half: running accumulator for adj @ x
      right half: the "self" rows x_i (written once at k == 0)
    mask_ref is a scalar-prefetched SMEM (grid_i, grid_k) int32 nonzero-block
    mask; zero blocks skip the aggregation matmul.
    """
    i = pl.program_id(0)
    k = pl.program_id(1)

    @pl.when(k == 0)
    def _init():
        acc_ref[:, :d_pad] = jnp.zeros((acc_ref.shape[0], d_pad), jnp.float32)
        acc_ref[:, d_pad:] = xi_ref[...].astype(jnp.float32)

    @pl.when(mask_ref[i, k] != 0)
    def _accumulate():
        # Neighborhood aggregation: acc[i, :] += adj[i, k-block] @ x[k-block]
        acc_ref[:, :d_pad] += jnp.dot(adj_ref[...], xk_ref[...],
                                      preferred_element_type=jnp.float32)

    @pl.when(k == pl.num_programs(1) - 1)
    def _finalize():
        # Single fused projection in full f32: [adj@x | x] @ [[W_n], [W_s]].
        out_ref[...] = jnp.dot(acc_ref[...], wcat_ref[...],
                               preferred_element_type=jnp.float32
                               ).astype(out_ref.dtype)


def graph_conv(x, adj, weight_n, weight_s, *,
               compute_dtype=jnp.bfloat16,
               max_tile=512,
               block_sparse=False,
               min_pallas_n=128,
               force_pallas=False):
    """x: [N, D_in], adj: [N, N], weight_n/weight_s: [D_in, D_out] -> [N, D_out].

    compute_dtype narrows only the streamed operands (adj, x); accumulation and
    the final projection (weights) are always f32.
    """
    n, d_in = x.shape
    d_out = weight_n.shape[1]
    out_dtype = x.dtype

    # Tiny graphs: a pallas_call is pure launch/step overhead here.
    if n < min_pallas_n and not force_pallas:
        return (adj @ x) @ weight_n + x @ weight_s

    cdt = jnp.dtype(out_dtype) if compute_dtype is None else jnp.dtype(compute_dtype)

    # Lane-dense feature dims; node axis padded only to the 128-lane rule.
    d_pad = _round_up(d_in, 128)
    do_pad = _round_up(d_out, 128)
    n_pad = _round_up(n, 128)

    # Reduction tile: biggest 128-multiple (<= max_tile) dividing n_pad.
    tk = _pick_tile(n_pad, max_tile)
    # Row tile: keep >= 2 blocks on the "parallel" axis when possible
    # (v7x has 2 TensorCores; a single i block would idle one of them).
    tm = _pick_tile(n_pad, max(128, min(max_tile, n_pad // 2)))
    grid = (n_pad // tm, n_pad // tk)

    # Streamed operands in the (narrow) compute dtype; pad only when needed.
    x_c = x.astype(cdt)
    adj_c = adj.astype(cdt)
    x_p = (jnp.pad(x_c, ((0, n_pad - n), (0, d_pad - d_in)))
           if (n_pad != n or d_pad != d_in) else x_c)
    adj_p = (jnp.pad(adj_c, ((0, n_pad - n), (0, n_pad - n)))
             if n_pad != n else adj_c)

    # Fused projection weights, kept f32 so the finalize matmul consumes the
    # f32 accumulator at full precision.
    w_pad = ((0, d_pad - d_in), (0, do_pad - d_out))
    if d_pad != d_in or do_pad != d_out:
        wn_p = jnp.pad(weight_n, w_pad)
        ws_p = jnp.pad(weight_s, w_pad)
    else:
        wn_p, ws_p = weight_n, weight_s
    w_cat = jnp.concatenate([wn_p, ws_p], axis=0).astype(jnp.float32)

    # (grid_i, grid_k) nonzero-block mask, scalar-prefetched into SMEM.
    if block_sparse:
        blocks = adj_p.reshape(grid[0], tm, grid[1], tk)
        mask = (jnp.abs(blocks).sum(axis=(1, 3)) > 0).astype(jnp.int32)
    else:
        mask = jnp.ones(grid, jnp.int32)

    cbytes = jnp.dtype(cdt).itemsize
    obytes = jnp.dtype(out_dtype).itemsize

    # VMEM budget from actual buffer sizes (double-buffered streams), capped so
    # it is safe across v5e/v6e (128 MiB physical) and v7x (64 MiB physical).
    vmem_bytes = (2 * tm * tk * cbytes            # adj tiles
                  + 2 * tk * d_pad * cbytes       # x_k tiles
                  + 2 * tm * d_pad * cbytes       # x_i tiles
                  + 2 * 2 * d_pad * do_pad * 4    # w_cat (resident)
                  + 2 * tm * do_pad * obytes      # out tiles
                  + tm * 2 * d_pad * 4)           # accumulator scratch
    vmem_limit = int(min(max(vmem_bytes + (4 << 20), 16 << 20), 48 << 20))

    cost = pl.CostEstimate(
        flops=2 * n_pad * n_pad * d_pad + 2 * n_pad * (2 * d_pad) * do_pad,
        transcendentals=0,
        bytes_accessed=(adj_p.size * cbytes
                        + x_p.size * cbytes * (grid[0] + 1)  # x_k re-read per i-block
                        + w_cat.size * 4
                        + n_pad * do_pad * obytes),
    )

    kernel = functools.partial(_graph_conv_kernel, d_pad=d_pad)

    out_p = pl.pallas_call(
        kernel,
        out_shape=jax.ShapeDtypeStruct((n_pad, do_pad), out_dtype),
        grid_spec=pltpu.PrefetchScalarGridSpec(
            num_scalar_prefetch=1,
            grid=grid,
            in_specs=[
                # adj tile for (row-block i, reduction-block k)
                pl.BlockSpec((tm, tk), lambda i, k, m: (i, k)),
                # x rows for the aggregation term (follow k)
                pl.BlockSpec((tk, d_pad), lambda i, k, m: (k, 0)),
                # x rows for the self term (follow i, resident across k)
                pl.BlockSpec((tm, d_pad), lambda i, k, m: (i, 0)),
                # fused [W_n; W_s], whole-array resident
                # TODO(synk): pipeline_mode=pl.Buffered(1) for constant-index
                # inputs once feature dims are large enough to pressure VMEM.
                pl.BlockSpec((2 * d_pad, do_pad), lambda i, k, m: (0, 0)),
            ],
            out_specs=pl.BlockSpec((tm, do_pad), lambda i, k, m: (i, 0)),
            scratch_shapes=[pltpu.VMEM((tm, 2 * d_pad), jnp.float32)],
        ),
        compiler_params=pltpu.CompilerParams(
            dimension_semantics=("parallel", "arbitrary"),
            vmem_limit_bytes=vmem_limit,
        ),
        cost_estimate=cost,
    )(mask, adj_p, x_p, x_p, w_cat)

    return out_p[:n, :d_out]


if __name__ == "__main__":
    # Keep the pure-JAX references honest (full f32 matmuls).
    jax.config.update("jax_default_matmul_precision", "highest")

    key = jax.random.PRNGKey(0)

    # ---- Case 1: module-sized problem (N=16) -> XLA fast path for tiny graphs.
    N, D_IN, D_OUT = 16, 32, 32
    kx, kadj, kwn, kws = jax.random.split(key, 4)
    x = jax.random.normal(kx, (N, D_IN), dtype=jnp.float32)
    adj = jax.random.uniform(kadj, (N, N), dtype=jnp.float32)
    wn = jax.random.normal(kwn, (D_IN, D_OUT), dtype=jnp.float32) * 0.1
    ws = jax.random.normal(kws, (D_IN, D_OUT), dtype=jnp.float32) * 0.1
    ref = (adj @ x) @ wn + x @ ws

    out = jax.block_until_ready(graph_conv(x, adj, wn, ws))
    assert out.shape == (N, D_OUT)
    assert jnp.allclose(out, ref, atol=1e-3, rtol=1e-3), "small-graph fallback mismatch"

    # ---- Case 2: same tiny graph forced through the Pallas path, f32 compute.
    out_p = jax.block_until_ready(
        graph_conv(x, adj, wn, ws, compute_dtype=jnp.float32, force_pallas=True))
    assert jnp.allclose(out_p, ref, atol=2e-3, rtol=2e-3), "forced-pallas mismatch"

    # ---- Case 3: non-tile-multiple graph (N=384), f32 compute, tiled grid.
    N3, D3_IN, D3_OUT = 384, 48, 40
    k1, k2, k3, k4 = jax.random.split(jax.random.PRNGKey(1), 4)
    x3 = jax.random.normal(k1, (N3, D3_IN), dtype=jnp.float32)
    adj3 = jax.random.uniform(k2, (N3, N3), dtype=jnp.float32)
    wn3 = jax.random.normal(k3, (D3_IN, D3_OUT), dtype=jnp.float32) * 0.05
    ws3 = jax.random.normal(k4, (D3_IN, D3_OUT), dtype=jnp.float32) * 0.05

    out3 = jax.block_until_ready(
        graph_conv(x3, adj3, wn3, ws3, compute_dtype=jnp.float32,
                   block_sparse=True))
    ref3 = (adj3 @ x3) @ wn3 + x3 @ ws3
    assert out3.shape == (N3, D3_OUT)
    assert jnp.allclose(out3, ref3, atol=2e-2, rtol=2e-2), "tiled f32 mismatch"

    # ---- Case 4: default bf16 streaming + block-sparse skipping (N=640, 5x5 grid).
    N4, D4 = 640, 64
    q1, q2, q3, q4 = jax.random.split(jax.random.PRNGKey(2), 4)
    x4 = jax.random.normal(q1, (N4, D4), dtype=jnp.float32)
    dense = jax.random.uniform(q2, (N4, N4), dtype=jnp.float32)
    blk_id = jnp.arange(N4) // 128
    band = (jnp.abs(blk_id[:, None] - blk_id[None, :]) <= 1).astype(jnp.float32)
    adj4 = dense * band                      # block-tridiagonal sparsity
    wn4 = jax.random.normal(q3, (D4, D4), dtype=jnp.float32) * 0.05
    ws4 = jax.random.normal(q4, (D4, D4), dtype=jnp.float32) * 0.05

    out4 = jax.block_until_ready(
        graph_conv(x4, adj4, wn4, ws4, block_sparse=True))   # bf16 default
    xb = x4.astype(jnp.bfloat16).astype(jnp.float32)
    ab = adj4.astype(jnp.bfloat16).astype(jnp.float32)
    ref4 = (ab @ xb) @ wn4 + xb @ ws4
    assert out4.shape == (N4, D4)
    assert jnp.allclose(out4, ref4, atol=5e-2, rtol=5e-2), "bf16 block-sparse mismatch"

    print("KERNEL_OK")
</pallas_src>

<mosaic_0001>
module attributes {stable_mosaic.version = 11 : i64} {
  func.func @_graph_conv_kernel(%arg0: i32, %arg1: i32, %arg2: memref<1x1xi32, #tpu.memory_space<smem>>, %arg3: memref<128x128xf32, #tpu.memory_space<vmem>>, %arg4: memref<128x128xf32, #tpu.memory_space<vmem>>, %arg5: memref<128x128xf32, #tpu.memory_space<vmem>>, %arg6: memref<256x128xf32, #tpu.memory_space<vmem>>, %arg7: memref<128x128xf32, #tpu.memory_space<vmem>>, %arg8: memref<128x256xf32, #tpu.memory_space<vmem>>) attributes {dimension_semantics = [#tpu.dimension_semantics<parallel>, #tpu.dimension_semantics<arbitrary>], iteration_bounds = array<i64: 1, 1>, scalar_prefetch = 1 : i64, scratch_operands = 1 : i64, tpu.core_type = #tpu.core_type<tc>, window_params = [{transform_indices = @transform_0, window_bounds = array<i64: 128, 128>}, {transform_indices = @transform_1, window_bounds = array<i64: 128, 128>}, {transform_indices = @transform_2, window_bounds = array<i64: 128, 128>}, {pipeline_mode = #tpu.pipeline_mode<synchronous>, transform_indices = @transform_3, window_bounds = array<i64: 256, 128>}, {transform_indices = @transform_4, window_bounds = array<i64: 128, 128>}]} {
    %c0_i32 = arith.constant 0 : i32
    %0 = arith.cmpi eq, %arg1, %c0_i32 : i32
    %1 = arith.extui %0 : i1 to i32
    %c0_i32_0 = arith.constant 0 : i32
    %2 = arith.cmpi ne, %1, %c0_i32_0 : i32
    scf.if %2 {
      %cst = arith.constant 0.000000e+00 : f32
      %12 = vector.broadcast %cst : f32 to vector<128x128xf32>
      %c0 = arith.constant 0 : index
      %c0_5 = arith.constant 0 : index
      %13 = vector.load %arg8[%c0, %c0_5] : memref<128x256xf32, #tpu.memory_space<vmem>>, vector<128x128xf32>
      tpu.vector_store %arg8[%c0, %c0_5], %12 {strides = array<i32>} : memref<128x256xf32, #tpu.memory_space<vmem>>, vector<128x128xf32>,
      %c0_6 = arith.constant 0 : index
      %c0_7 = arith.constant 0 : index
      %14 = vector.load %arg5[%c0_6, %c0_7] : memref<128x128xf32, #tpu.memory_space<vmem>>, vector<128x128xf32>
      %c0_8 = arith.constant 0 : index
      %c128 = arith.constant 128 : index
      %15 = vector.load %arg8[%c0_8, %c128] : memref<128x256xf32, #tpu.memory_space<vmem>>, vector<128x128xf32>
      tpu.vector_store %arg8[%c0_8, %c128], %14 {strides = array<i32>} : memref<128x256xf32, #tpu.memory_space<vmem>>, vector<128x128xf32>,
    } else {
    }
    %3 = arith.index_cast %arg0 : i32 to index
    %4 = arith.index_cast %arg1 : i32 to index
    %5 = memref.load %arg2[%3, %4] : memref<1x1xi32, #tpu.memory_space<smem>>
    %c0_i32_1 = arith.constant 0 : i32
    %6 = arith.cmpi ne, %5, %c0_i32_1 : i32
    %7 = arith.extui %6 : i1 to i32
    %c0_i32_2 = arith.constant 0 : i32
    %8 = arith.cmpi ne, %7, %c0_i32_2 : i32
    scf.if %8 {
      %c0 = arith.constant 0 : index
      %c0_5 = arith.constant 0 : index
      %12 = vector.load %arg8[%c0, %c0_5] : memref<128x256xf32, #tpu.memory_space<vmem>>, vector<128x128xf32>
      %c0_6 = arith.constant 0 : index
      %c0_7 = arith.constant 0 : index
      %13 = vector.load %arg3[%c0_6, %c0_7] : memref<128x128xf32, #tpu.memory_space<vmem>>, vector<128x128xf32>
      %c0_8 = arith.constant 0 : index
      %c0_9 = arith.constant 0 : index
      %14 = vector.load %arg4[%c0_8, %c0_9] : memref<128x128xf32, #tpu.memory_space<vmem>>, vector<128x128xf32>
      %cst = arith.constant dense<0.000000e+00> : vector<128x128xf32>
      %15 = tpu.matmul %13, %14, %cst {dimension_numbers = #tpu.dot_dimension_numbers<[1], [0], [0], [1], [0, 0, 1, 1], [], []>, precision = #tpu.contract_precision<fp32>} : vector<128x128xf32>, vector<128x128xf32>, vector<128x128xf32> -> vector<128x128xf32>
      %16 = arith.addf %12, %15 : vector<128x128xf32>
      %c0_10 = arith.constant 0 : index
      %c0_11 = arith.constant 0 : index
      %17 = vector.load %arg8[%c0_10, %c0_11] : memref<128x256xf32, #tpu.memory_space<vmem>>, vector<128x128xf32>
      tpu.vector_store %arg8[%c0_10, %c0_11], %16 {strides = array<i32>} : memref<128x256xf32, #tpu.memory_space<vmem>>, vector<128x128xf32>,
    } else {
    }
    %c0_i32_3 = arith.constant 0 : i32
    %9 = arith.cmpi eq, %arg1, %c0_i32_3 : i32
    %10 = arith.extui %9 : i1 to i32
    %c0_i32_4 = arith.constant 0 : i32
    %11 = arith.cmpi ne, %10, %c0_i32_4 : i32
    scf.if %11 {
      %c0 = arith.constant 0 : index
      %c0_5 = arith.constant 0 : index
      %12 = vector.load %arg8[%c0, %c0_5] : memref<128x256xf32, #tpu.memory_space<vmem>>, vector<128x256xf32>
      %c0_6 = arith.constant 0 : index
      %c0_7 = arith.constant 0 : index
      %13 = vector.load %arg6[%c0_6, %c0_7] : memref<256x128xf32, #tpu.memory_space<vmem>>, vector<256x128xf32>
      %cst = arith.constant dense<0.000000e+00> : vector<128x128xf32>
      %14 = tpu.matmul %12, %13, %cst {dimension_numbers = #tpu.dot_dimension_numbers<[1], [0], [0], [1], [0, 0, 1, 1], [], []>, precision = #tpu.contract_precision<fp32>} : vector<128x256xf32>, vector<256x128xf32>, vector<128x128xf32> -> vector<128x128xf32>
      %c0_8 = arith.constant 0 : index
      %c0_9 = arith.constant 0 : index
      %15 = vector.load %arg7[%c0_8, %c0_9] : memref<128x128xf32, #tpu.memory_space<vmem>>, vector<128x128xf32>
      tpu.vector_store %arg7[%c0_8, %c0_9], %14 {strides = array<i32>} : memref<128x128xf32, #tpu.memory_space<vmem>>, vector<128x128xf32>,
    } else {
    }
    return
  }
  func.func @transform_0(%arg0: i32, %arg1: i32, %arg2: memref<1x1xi32, #tpu.memory_space<smem>>) -> (i32, i32) {
    %c0_i32 = arith.constant 0 : i32
    return %arg0, %arg1 : i32, i32
  }
  func.func @transform_1(%arg0: i32, %arg1: i32, %arg2: memref<1x1xi32, #tpu.memory_space<smem>>) -> (i32, i32) {
    %c0_i32 = arith.constant 0 : i32
    %c0_i32_0 = arith.constant 0 : i32
    return %arg1, %c0_i32 : i32, i32
  }
  func.func @transform_2(%arg0: i32, %arg1: i32, %arg2: memref<1x1xi32, #tpu.memory_space<smem>>) -> (i32, i32) {
    %c0_i32 = arith.constant 0 : i32
    %c0_i32_0 = arith.constant 0 : i32
    return %arg0, %c0_i32 : i32, i32
  }
  func.func @transform_3(%arg0: i32, %arg1: i32, %arg2: memref<1x1xi32, #tpu.memory_space<smem>>) -> (i32, i32) {
    %c0_i32 = arith.constant 0 : i32
    %c0_i32_0 = arith.constant 0 : i32
    %c0_i32_1 = arith.constant 0 : i32
    return %c0_i32, %c0_i32_0 : i32, i32
  }
  func.func @transform_4(%arg0: i32, %arg1: i32, %arg2: memref<1x1xi32, #tpu.memory_space<smem>>) -> (i32, i32) {
    %c0_i32 = arith.constant 0 : i32
    %c0_i32_0 = arith.constant 0 : i32
    return %arg0, %c0_i32 : i32, i32
  }
}

</mosaic_0001>

<bundles_post_ra>
// kernel: tpu_custom_call.1
= control target key start
LH: loop header
LB: loop body
LE: loop exit
PB: predicated region body
PF: predicated region fallthrough
CT: control target
= control target key end

     0   :  { %11 = vsyncpa [#allocation6], 0  ;;  %s6511_s0 = inlined_call_operand.<no memory space> [shape: s32[1,1], index: 0, kind: input, shape index: {}]   ;;  %s6512_s1 = inlined_call_operand.hbm [shape: f32[128,128], index: 1, kind: input, shape index: {}]   ;;  %s6513_s2 = inlined_call_operand.hbm [shape: f32[128,128], index: 2, kind: input, shape index: {}]   ;;  %s6514_s3 = inlined_call_operand.hbm [shape: f32[128,128], index: 3, kind: input, shape index: {}]   ;;  %s6515_s4 = inlined_call_operand.hbm [shape: f32[256,128], index: 4, kind: input, shape index: {}]   ;;  %s6516_s5 = inlined_call_operand.hbm [shape: f32[128,128], index: 5, kind: output, shape index: {}]  }
   0x1   :  { %12 = vsyncpa [#allocation9], 0 }
   0x2   :  { %13 = vsyncpa [#allocation12], 0 }
   0x3   :  { %14 = vsyncpa [#allocation7], 0  ;;  %s4904_s18 = smov [#allocation8]   ;;  %s4905_s20 = smov [#allocation5]  }
   0x4   :  { %s32_s19 = sshll.u32 %s4904_s18, 4  ;;  %s20_s21 = sshll.u32 %s4905_s20, 4  ;;  %s33_s19 = int_to_ptr.vmem [resolvable:$true] %s32_s19  ;;  %s4942_s21 = int_to_ptr.vmem [resolvable:$true] %s20_s21 }
   0x5   :  { %s4786_s24 = scalar_lea.hbm %s6513_s2, 2048 }
   0x6   :  { %p4787_p0 = scmp.ne.s32.totalorder %s6513_s2, %s4786_s24  ;;  %p4790_p1 = scmp.lt.u32.totalorder %s4786_s24, %s6513_s2 }
   0x8   :  { %p4792_p2 = pnand %p4790_p1, %p4787_p0 }
   0xa   :  { %4795 = shalt.err (!%p4792_p2)
}
   0xb   :  { %s4796_s29 = scalar_lea.vmem %s33_s19, 2048  ;;  %p4801_p4 = scmp.lt.s32.totalorder %s33_s19, %s33_s19 }
   0xc   :  { %p4797_p3 = scmp.ne.s32.totalorder %s33_s19, %s4796_s29  ;;  %p4802_p5 = scmp.lt.s32.totalorder %s4796_s29, %s4796_s29 }
   0xe   :  { %p4803_p6 = por %p4802_p5, %p4801_p4 }
  0x10   :  { %p4804_p7 = pnand %p4803_p6, %p4797_p3 }
  0x12   :  { %4807 = shalt.err (!%p4804_p7)
}
  0x13   :  { %s4906_s30 = smov 128   ;;  %s4907_s6 = smov 8  }
  0x14   :  { %38 = dma.hbm_to_vmem [thread:$0]  %s6513_s2, 2048, %s33_s19, [#allocation9], %s4906_s30, %s4906_s30, %s4907_s6  }
  0x15   :  { %s4808_s11 = scalar_lea.hbm %s6512_s1, 2048 }
  0x16   :  { %p4809_p8 = scmp.ne.s32.totalorder %s6512_s1, %s4808_s11  ;;  %p4812_p9 = scmp.lt.u32.totalorder %s4808_s11, %s6512_s1 }
  0x18   :  { %p4814_p10 = pnand %p4812_p9, %p4809_p8 }
  0x1a   :  { %4817 = shalt.err (!%p4814_p10)
}
  0x1b   :  { %s4818_s16 = scalar_lea.vmem %s4942_s21, 2048  ;;  %p4823_p12 = scmp.lt.s32.totalorder %s4942_s21, %s4942_s21 }
  0x1c   :  { %p4819_p11 = scmp.ne.s32.totalorder %s4942_s21, %s4818_s16  ;;  %p4824_p13 = scmp.lt.s32.totalorder %s4818_s16, %s4818_s16 }
  0x1e   :  { %p4825_p0 = por %p4824_p13, %p4823_p12 }
  0x20   :  { %p4826_p1 = pnand %p4825_p0, %p4819_p11 }
  0x22   :  { %4829 = shalt.err (!%p4826_p1)
}
  0x23   :  { %26 = dma.hbm_to_vmem [thread:$0]  %s6512_s1, 2048, %s4942_s21, [#allocation6], %s4906_s30, %s4906_s30, %s4907_s6  }
  0x24   :  { %s4908_s18 = smov [#allocation10]   ;;  %s4909_s20 = smov [#allocation11]  }
  0x25   :  { %s44_s19 = sshll.u32 %s4908_s18, 4  ;;  %s56_s22 = sshll.u32 %s4909_s20, 4  ;;  %s45_s19 = int_to_ptr.vmem [resolvable:$true] %s44_s19  ;;  %s4979_s22 = int_to_ptr.vmem [resolvable:$true] %s56_s22 }
  0x26   :  { %s4830_s25 = scalar_lea.hbm %s6514_s3, 2048 }
  0x27   :  { %p4831_p2 = scmp.ne.s32.totalorder %s6514_s3, %s4830_s25  ;;  %p4834_p3 = scmp.lt.u32.totalorder %s4830_s25, %s6514_s3 }
  0x29   :  { %p4836_p4 = pnand %p4834_p3, %p4831_p2 }
  0x2b   :  { %4839 = shalt.err (!%p4836_p4)
}
  0x2c   :  { %s4840_s1 = scalar_lea.vmem %s45_s19, 2048  ;;  %p4845_p6 = scmp.lt.s32.totalorder %s45_s19, %s45_s19 }
  0x2d   :  { %p4841_p5 = scmp.ne.s32.totalorder %s45_s19, %s4840_s1  ;;  %p4846_p7 = scmp.lt.s32.totalorder %s4840_s1, %s4840_s1 }
  0x2f   :  { %p4847_p8 = por %p4846_p7, %p4845_p6 }
  0x31   :  { %p4848_p9 = pnand %p4847_p8, %p4841_p5 }
  0x33   :  { %4851 = shalt.err (!%p4848_p9)
}
  0x34   :  { %50 = dma.hbm_to_vmem [thread:$0]  %s6514_s3, 2048, %s45_s19, [#allocation9], %s4906_s30, %s4906_s30, %s4907_s6  }
  0x35   :  { %s4852_s10 = scalar_lea.hbm %s6515_s4, 4096 }
  0x36   :  { %p4853_p10 = scmp.ne.s32.totalorder %s6515_s4, %s4852_s10  ;;  %p4856_p11 = scmp.lt.u32.totalorder %s4852_s10, %s6515_s4 }
  0x38   :  { %p4858_p12 = pnand %p4856_p11, %p4853_p10 }
  0x3a   :  { %4861 = shalt.err (!%p4858_p12)
}
  0x3b   :  { %s4862_s15 = scalar_lea.vmem %s4979_s22, 4096  ;;  %p4867_p0 = scmp.lt.s32.totalorder %s4979_s22, %s4979_s22 }
  0x3c   :  { %p4863_p13 = scmp.ne.s32.totalorder %s4979_s22, %s4862_s15  ;;  %p4868_p1 = scmp.lt.s32.totalorder %s4862_s15, %s4862_s15 }
  0x3e   :  { %p4869_p2 = por %p4868_p1, %p4867_p0 }
  0x40   :  { %p4870_p3 = pnand %p4869_p2, %p4863_p13 }
  0x42   :  { %4873 = shalt.err (!%p4870_p3)
}
  0x43   :  { %62 = dma.hbm_to_vmem [thread:$0]  %s6515_s4, 4096, %s4979_s22, [#allocation12], %s4906_s30, %s4906_s30, %s4907_s6  }
  0x44   :  { %4896 = dma.done.wait [#allocation6], 2048  }
  0x45   :  { %4897 = vsyncadd [#allocation6], 4294965248 }
  0x46   :  { %4898 = dma.done.wait [#allocation9], 4096  }
  0x47   :  { %4899 = vsyncadd [#allocation9], 4294963200 }
  0x48   :  { %4900 = dma.done.wait [#allocation12], 4096  }
  0x49   :  { %4901 = vsyncadd [#allocation12], 4294963200  ;;  %v4910_v0 = vmov 0.0   ;;  %v95_v1 = vld [vmem:[#allocation10] sm:$0xff]  ;;  %v96_v2 = vld [vmem:[#allocation10 + $0x8] sm:$0xff]  ;;  %p3305_p4 = scmp.eq.s32.totalorder %s6511_s0, 0 }
  0x4a   :  { %79 = vst [vmem:[#allocation2] sm:$0xff] %v4910_v0  ;;  %80 = vst [vmem:[#allocation2 + $0x10] sm:$0xff] %v4910_v0  ;;  %v97_v3 = vld [vmem:[#allocation10 + $0x10] sm:$0xff]  ;;  %v98_v4 = vld [vmem:[#allocation10 + $0x18] sm:$0xff] }
  0x4b   :  { %81 = vst [vmem:[#allocation2 + $0x20] sm:$0xff] %v4910_v0  ;;  %82 = vst [vmem:[#allocation2 + $0x30] sm:$0xff] %v4910_v0  ;;  %v99_v5 = vld [vmem:[#allocation10 + $0x20] sm:$0xff]  ;;  %v100_v6 = vld [vmem:[#allocation10 + $0x28] sm:$0xff] }
  0x4c   :  { %83 = vst [vmem:[#allocation2 + $0x40] sm:$0xff] %v4910_v0  ;;  %84 = vst [vmem:[#allocation2 + $0x50] sm:$0xff] %v4910_v0  ;;  %v101_v7 = vld [vmem:[#allocation10 + $0x30] sm:$0xff]  ;;  %v102_v8 = vld [vmem:[#allocation10 + $0x38] sm:$0xff] }
  0x4d   :  { %85 = vst [vmem:[#allocation2 + $0x60] sm:$0xff] %v4910_v0  ;;  %86 = vst [vmem:[#allocation2 + $0x70] sm:$0xff] %v4910_v0  ;;  %v103_v9 = vld [vmem:[#allocation10 + $0x40] sm:$0xff]  ;;  %v104_v10 = vld [vmem:[#allocation10 + $0x48] sm:$0xff] }
  0x4e   :  { %87 = vst [vmem:[#allocation2 + $0x80] sm:$0xff] %v4910_v0  ;;  %88 = vst [vmem:[#allocation2 + $0x90] sm:$0xff] %v4910_v0  ;;  %v105_v11 = vld [vmem:[#allocation10 + $0x50] sm:$0xff]  ;;  %v106_v12 = vld [vmem:[#allocation10 + $0x58] sm:$0xff] }
  0x4f   :  { %89 = vst [vmem:[#allocation2 + $0xa0] sm:$0xff] %v4910_v0  ;;  %90 = vst [vmem:[#allocation2 + $0xb0] sm:$0xff] %v4910_v0  ;;  %v107_v13 = vld [vmem:[#allocation10 + $0x60] sm:$0xff]  ;;  %v108_v14 = vld [vmem:[#allocation10 + $0x68] sm:$0xff] }
  0x50   :  { %91 = vst [vmem:[#allocation2 + $0xc0] sm:$0xff] %v4910_v0  ;;  %92 = vst [vmem:[#allocation2 + $0xd0] sm:$0xff] %v4910_v0  ;;  %v109_v15 = vld [vmem:[#allocation10 + $0x70] sm:$0xff]  ;;  %v110_v16 = vld [vmem:[#allocation10 + $0x78] sm:$0xff] }
  0x51   :  { %93 = vst [vmem:[#allocation2 + $0xe0] sm:$0xff] %v4910_v0  ;;  %94 = vst [vmem:[#allocation2 + $0xf0] sm:$0xff] %v4910_v0 }
  0x52   :  { %111 = vst [vmem:[#allocation2 + $0x8] sm:$0xff] %v95_v1  ;;  %112 = vst [vmem:[#allocation2 + $0x18] sm:$0xff] %v96_v2 }
  0x53   :  { %113 = vst [vmem:[#allocation2 + $0x28] sm:$0xff] %v97_v3  ;;  %114 = vst [vmem:[#allocation2 + $0x38] sm:$0xff] %v98_v4  ;;  %134 = sbr.rel (%p3305_p4) target bundleno = 440 (0x1b8), region = 41 }
  0x54   :  { %115 = vst [vmem:[#allocation2 + $0x48] sm:$0xff] %v99_v5  ;;  %116 = vst [vmem:[#allocation2 + $0x58] sm:$0xff] %v100_v6 }
  0x55   :  { %117 = vst [vmem:[#allocation2 + $0x68] sm:$0xff] %v101_v7  ;;  %118 = vst [vmem:[#allocation2 + $0x78] sm:$0xff] %v102_v8 }
  0x56   :  { %119 = vst [vmem:[#allocation2 + $0x88] sm:$0xff] %v103_v9  ;;  %120 = vst [vmem:[#allocation2 + $0x98] sm:$0xff] %v104_v10 }
  0x57   :  { %121 = vst [vmem:[#allocation2 + $0xa8] sm:$0xff] %v105_v11  ;;  %122 = vst [vmem:[#allocation2 + $0xb8] sm:$0xff] %v106_v12 }
  0x58   :  { %123 = vst [vmem:[#allocation2 + $0xc8] sm:$0xff] %v107_v13  ;;  %124 = vst [vmem:[#allocation2 + $0xd8] sm:$0xff] %v108_v14 }
  0x59   :  { %125 = vst [vmem:[#allocation2 + $0xe8] sm:$0xff] %v109_v15  ;;  %126 = vst [vmem:[#allocation2 + $0xf8] sm:$0xff] %v110_v16 }
  0x5a   :  { %v167_v17 = vld [vmem:[#allocation8] sm:$0xff]  ;;  %v168_v18 = vld [vmem:[#allocation8 + $0x8] sm:$0xff]  ;;  %v169_v19 = vld [vmem:[#allocation8 + $0x10] sm:$0xff] }
  0x5b   :  { %v184_v20 = vand.u32 4294901760, %v167_v17  ;;  %v187_v21 = vand.u32 4294901760, %v168_v18  ;;  %v170_v22 = vld [vmem:[#allocation8 + $0x18] sm:$0xff]  ;;  %v190_v23 = vand.u32 4294901760, %v169_v19  ;;  %v5019_v24 = vld [vmem:[#allocation8 + $0x20] sm:$0xff]  ;;  %v5021_v25 = vld [vmem:[#allocation8 + $0x28] sm:$0xff] }
  0x5c   :  { %v193_v26 = vand.u32 4294901760, %v170_v22  ;;  %v196_v28 = vand.u32 4294901760, %v5019_v24  ;;  %v199_v29 = vand.u32 4294901760, %v5021_v25  ;;  %v5029_v31 = vld [vmem:[#allocation8 + $0x30] sm:$0xff]  ;;  %v5031_v32 = vld [vmem:[#allocation8 + $0x38] sm:$0xff]  ;;  %v151_v33 = vld [vmem:[#allocation5] sm:$0xff] }
  0x5d   :  { %v5023_v27 = vpack.c.bf16 %v187_v21, %v184_v20  ;;  %v5037_v34 = vand.u32 4294901760, %v151_v33  ;;  %v202_v36 = vand.u32 4294901760, %v5029_v31  ;;  %v205_v37 = vand.u32 4294901760, %v5031_v32  ;;  %v152_v38 = vld [vmem:[#allocation5 + $0x8] sm:$0xff]  ;;  %v5049_v39 = vld [vmem:[#allocation8 + $0x40] sm:$0xff]  ;;  %v5071_v47 = vld [vmem:[#allocation8 + $0x50] sm:$0xff] }
  0x5e   :  { %v5027_v30 = vpack.c.bf16 %v193_v26, %v190_v23  ;;  %v5045_v35 = vpack.c.bf16 %v199_v29, %v196_v28  ;;  %v5051_v40 = vld [vmem:[#allocation8 + $0x48] sm:$0xff]  ;;  %v5059_v43 = vand.u32 4294901760, %v152_v38  ;;  %v6527_v45 = vand.u32 4294901760, %v5049_v39  ;;  %v153_v48 = vld [vmem:[#allocation5 + $0x10] sm:$0xff]  ;;  %v5073_v49 = vld [vmem:[#allocation8 + $0x58] sm:$0xff] }
  0x5f   :  { %4315 = vmatprep.subr.bf16.mxu1 %v5023_v27  ;;  %4411 = vmatprep.subr.bf16.mxu0 %v5023_v27  ;;  %v5054_v41 = vsub.f32 %v151_v33, %v5037_v34  ;;  %v5067_v44 = vpack.c.bf16 %v205_v37, %v202_v36  ;;  %v6525_v46 = vand.u32 4294901760, %v5051_v40  ;;  %v154_v51 = vld [vmem:[#allocation5 + $0x18] sm:$0xff]  ;;  %v5076_v52 = vsub.f32 %v167_v17, %v184_v20  ;;  %v5083_v55 = vld [vmem:[#allocation8 + $0x60] sm:$0xff]  ;;  %v5085_v56 = vld [vmem:[#allocation8 + $0x68] sm:$0xff] }
  0x60   :  { %4317 = vmatpush3.bf16.msra.mxu1 %v5023_v27  ;;  %4413 = vmatpush3.bf16.msra.mxu0 %v5023_v27  ;;  %v5078_v53 = vsub.f32 %v168_v18, %v187_v21  ;;  %v6524_v54 = vand.u32 4294901760, %v5071_v47  ;;  %v5088_v58 = vsub.f32 %v152_v38, %v5059_v43  ;;  %v5090_v59 = vand.u32 4294901760, %v153_v48  ;;  %v5101_v62 = vld [vmem:[#allocation8 + $0x70] sm:$0xff]  ;;  %v5103_v63 = vld [vmem:[#allocation8 + $0x78] sm:$0xff]  ;;  %v155_v3 = vld [vmem:[#allocation5 + $0x20] sm:$0xff] }
  0x61   :  { %4319 = vmatprep.subr.bf16.mxu1 %v5027_v30  ;;  %4415 = vmatprep.subr.bf16.mxu0 %v5027_v30  ;;  %6721 = vst [vmem:[#allocation18_spill] sm:$0xff] %v5054_v41  ;;  %v266_v42 = vand.u32 4294901760, %v5054_v41  ;;  %6722 = vst [vmem:[#allocation19_spill] sm:$0xff] %v5067_v44  ;;  %v5098_v60 = vpack.c.bf16 %v6525_v46, %v6527_v45  ;;  %v6522_v61 = vand.u32 4294901760, %v5073_v49  ;;  %v5105_v0 = vand.u32 4294901760, %v154_v51  ;;  %v156_v8 = vld [vmem:[#allocation5 + $0x28] sm:$0xff] }
  0x62   :  { %6723 = vst [vmem:[#allocation20_spill] sm:$0xff] %v5088_v58  ;;  %v5107_v1 = vsub.f32 %v169_v19, %v190_v23  ;;  %v5109_v2 = vsub.f32 %v170_v22, %v193_v26  ;;  %v6520_v4 = vand.u32 4294901760, %v5083_v55  ;;  %v6519_v5 = vand.u32 4294901760, %v5085_v56  ;;  %v157_v19 = vld [vmem:[#allocation5 + $0x30] sm:$0xff]  ;;  %v158_v26 = vld [vmem:[#allocation5 + $0x38] sm:$0xff] }
  0x63   :  { %v267_v50 = vsub.f32 %v5054_v41, %v266_v42  ;;  %4178 = vmatprep.mubr.f32.mxu0 %v266_v42  ;;  %6724 = vst [vmem:[#allocation21_spill] sm:$0xff] %v5098_v60  ;;  %v427_v6 = vand.u32 4294901760, %v5076_v52  ;;  %v434_v7 = vand.u32 4294901760, %v5078_v53  ;;  %v6518_v9 = vand.u32 4294901760, %v5101_v62 }
  0x64   :  { %4321 = vmatpush3.bf16.msra.mxu1 %v5027_v30  ;;  %4417 = vmatpush3.bf16.msra.mxu0 %v5027_v30  ;;  %v6517_v10 = vand.u32 4294901760, %v5103_v63  ;;  %v6521_v11 = vand.u32 4294901760, %v5088_v58  ;;  %v5121_v12 = vsub.f32 %v153_v48, %v5090_v59  ;;  %v5129_v13 = vpack.c.bf16 %v6522_v61, %v6524_v54 }
  0x65   :  { %4323 = vmatprep.subr.bf16.mxu1 %v5045_v35  ;;  %4419 = vmatprep.subr.bf16.mxu0 %v5045_v35  ;;  %v268_v57 = vand.u32 4294901760, %v267_v50  ;;  %v5132_v14 = vsub.f32 %v154_v51, %v5105_v0  ;;  %v441_v15 = vand.u32 4294901760, %v5107_v1  ;;  %v5135_v16 = vand.u32 4294901760, %v155_v3 }
  0x66   :  { %6725 = vst [vmem:[#allocation22_spill] sm:$0xff] %v5121_v12  ;;  %6726 = vst [vmem:[#allocation23_spill] sm:$0xff] %v5129_v13  ;;  %v448_v17 = vand.u32 4294901760, %v5109_v2  ;;  %v5138_v18 = vand.u32 4294901760, %v156_v8  ;;  %v428_v20 = vsub.f32 %v5076_v52, %v427_v6  ;;  %v435_v21 = vsub.f32 %v5078_v53, %v434_v7 }
  0x67   :  { %4010 = vmatprep.mubr.f32.mxu1 %v268_v57  ;;  %6727 = vst [vmem:[#allocation24_spill] sm:$0xff] %v5132_v14  ;;  %v5145_v22 = vsub.f32 %v5019_v24, %v196_v28  ;;  %v5150_v23 = vsub.f32 %v5021_v25, %v199_v29  ;;  %v5158_v33 = vpack.c.bf16 %v6519_v5, %v6520_v4  ;;  %v6523_v28 = vand.u32 4294901760, %v5121_v12 }
  0x68   :  { %4325 = vmatpush3.bf16.msra.mxu1 %v5045_v35  ;;  %4421 = vmatpush3.bf16.msra.mxu0 %v5045_v35  ;;  %6728 = vst [vmem:[#allocation25_spill] sm:$0xff] %v5138_v18  ;;  %v5164_v24 = vpack.c.bf16 %v6517_v10, %v6518_v9  ;;  %v5169_v25 = vsub.f32 %v5088_v58, %v6521_v11  ;;  %v6526_v29 = vand.u32 4294901760, %v5132_v14  ;;  %v5179_v48 = vand.u32 4294901760, %v157_v19 }
  0x69   :  { %4327 = vmatprep.subr.bf16.mxu1 %v5067_v44  ;;  %4423 = vmatprep.subr.bf16.mxu0 %v5067_v44  ;;  %6729 = vst [vmem:[#allocation26_spill] sm:$0xff] %v5158_v33  ;;  %v442_v38 = vsub.f32 %v5107_v1, %v441_v15  ;;  %v5177_v42 = vsub.f32 %v155_v3, %v5135_v16  ;;  %v5185_v57 = vand.u32 4294901760, %v158_v26  ;;  %v429_v9 = vand.u32 4294901760, %v428_v20 }
  0x6a   :  { %6730 = vst [vmem:[#allocation27_spill] sm:$0xff] %v5164_v24  ;;  %6732 = vst [vmem:[#allocation29_spill] sm:$0xff] %v5179_v48  ;;  %v449_v50 = vsub.f32 %v5109_v2, %v448_v17  ;;  %v5183_v51 = vsub.f32 %v156_v8, %v5138_v18  ;;  %v5190_v10 = vsub.f32 %v5029_v31, %v202_v36  ;;  %v436_v5 = vand.u32 4294901760, %v435_v21  ;;  %v159_v36 = vld [vmem:[#allocation5 + $0x40] sm:$0xff] }
  0x6b   :  { %6731 = vst [vmem:[#allocation28_spill] sm:$0xff] %v5177_v42  ;;  %6734 = vst [vmem:[#allocation31_spill] sm:$0xff] %v5185_v57  ;;  %v455_v4 = vand.u32 4294901760, %v5145_v22  ;;  %v462_v3 = vand.u32 4294901760, %v5150_v23  ;;  %v278_v8 = vand.u32 4294901760, %v5169_v25  ;;  %v5197_v11 = vpack.c.bf16 %v434_v7, %v427_v6 }
  0x6c   :  { %4329 = vmatpush3.bf16.msra.mxu1 %v5067_v44  ;;  %4425 = vmatpush3.bf16.msra.mxu0 %v5067_v44  ;;  %6733 = vst [vmem:[#allocation30_spill] sm:$0xff] %v5183_v51  ;;  %v5202_v61 = vsub.f32 %v5121_v12, %v6523_v28  ;;  %v5207_v31 = vsub.f32 %v5031_v32, %v205_v37  ;;  %v443_v7 = vand.u32 4294901760, %v442_v38  ;;  %v6535_v20 = vand.u32 4294901760, %v5177_v42 }
  0x6d   :  { %4331 = vmatprep.subr.bf16.mxu1 %v5098_v60  ;;  %4427 = vmatprep.subr.bf16.mxu0 %v5098_v60  ;;  %v5214_v6 = vsub.f32 %v5132_v14, %v6526_v29  ;;  %v5218_v21 = vsub.f32 %v157_v19, %v5179_v48  ;;  %v450_v25 = vand.u32 4294901760, %v449_v50  ;;  %v5222_v37 = vsub.f32 %v158_v26, %v5185_v57  ;;  %v160_v50 = vld [vmem:[#allocation5 + $0x48] sm:$0xff] }
  0x6e   :  { %v4346_v54 = vpack.c.bf16 %v436_v5, %v429_v9  ;;  %v456_v46 = vsub.f32 %v5145_v22, %v455_v4  ;;  %v463_v29 = vsub.f32 %v5150_v23, %v462_v3  ;;  %v5227_v45 = vand.u32 4294901760, %v159_v36 }
  0x6f   :  { %6735 = vst [vmem:[#allocation32_spill] sm:$0xff] %v5218_v21  ;;  %6736 = vst [vmem:[#allocation33_spill] sm:$0xff] %v5222_v37  ;;  %v288_v19 = vand.u32 4294901760, %v5202_v61  ;;  %v476_v38 = vand.u32 4294901760, %v5207_v31  ;;  %v6738_v26 = vand.u32 4294901760, %v5049_v39  ;;  %v6739_v5 = vand.u32 4294901760, %v5051_v40 }
  0x70   :  { %4333 = vmatpush3.bf16.msra.mxu1 %v5098_v60  ;;  %4429 = vmatpush3.bf16.msra.mxu0 %v5098_v60  ;;  %6737 = vst [vmem:[#allocation34_spill] sm:$0xff] %v5227_v45  ;;  %v298_v32 = vand.u32 4294901760, %v5214_v6  ;;  %v4446_v61 = vpack.c.bf16 %v448_v17, %v441_v15  ;;  %v5249_v41 = vsub.f32 %v5177_v42, %v6535_v20  ;;  %v6741_v60 = vand.u32 4294901760, %v5190_v10 }
  0x71   :  { %4335 = vmatprep.subr.bf16.mxu1 %v5129_v13  ;;  %4431 = vmatprep.subr.bf16.mxu0 %v5129_v13  ;;  %v5236_v28 = vsub.f32 %v5049_v39, %v6738_v26  ;;  %v5241_v9 = vsub.f32 %v5051_v40, %v6739_v5  ;;  %v6544_v39 = vand.u32 4294901760, %v5218_v21  ;;  %v161_v26 = vld [vmem:[#allocation5 + $0x50] sm:$0xff]  ;;  %v457_v17 = vand.u32 4294901760, %v456_v46 }
  0x72   :  { %v470_v15 = vsub.f32 %v5190_v10, %v6741_v60  ;;  %v464_v6 = vand.u32 4294901760, %v463_v29  ;;  %v5262_v20 = vsub.f32 %v159_v36, %v5227_v45  ;;  %v5264_v57 = vand.u32 4294901760, %v160_v50  ;;  %v162_v60 = vld [vmem:[#allocation5 + $0x58] sm:$0xff] }
  0x73   :  { %v5271_v5 = vand.u32 4294901760, %v161_v26  ;;  %v308_v46 = vand.u32 4294901760, %v5249_v41  ;;  %v5275_v29 = vpack.c.bf16 %v462_v3, %v455_v4  ;;  %v5280_v36 = vsub.f32 %v5218_v21, %v6544_v39  ;;  %v163_v39 = vld [vmem:[#allocation5 + $0x60] sm:$0xff] }
  0x74   :  { %4337 = vmatpush3.bf16.msra.mxu1 %v5129_v13  ;;  %4433 = vmatpush3.bf16.msra.mxu0 %v5129_v13  ;;  %v6740_v13 = vand.u32 4294901760, %v5183_v51  ;;  %v6743_v45 = vand.u32 4294901760, %v5222_v37  ;;  %v471_v41 = vand.u32 4294901760, %v470_v15  ;;  %v6744_v4 = vand.u32 4294901760, %v5073_v49 }
  0x75   :  { %4339 = vmatprep.subr.bf16.mxu1 %v5158_v33  ;;  %4435 = vmatprep.subr.bf16.mxu0 %v5158_v33  ;;  %v6745_v48 = vand.u32 4294901760, %v5088_v58  ;;  %v5304_v18 = vand.u32 4294901760, %v162_v60 }
  0x76   :  { %v5255_v40 = vsub.f32 %v5183_v51, %v6740_v13  ;;  %v477_v13 = vsub.f32 %v5207_v31, %v476_v38  ;;  %v5291_v44 = vsub.f32 %v5222_v37, %v6743_v45  ;;  %v5296_v3 = vsub.f32 %v5073_v49, %v6744_v4 }
  0x77   :  { %v6746_v49 = vand.u32 4294901760, %v5236_v28  ;;  %v6749_v4 = vand.u32 4294901760, %v5083_v55 }
  0x78   :  { %4341 = vmatpush3.bf16.msra.mxu1 %v5158_v33  ;;  %4437 = vmatpush3.bf16.msra.mxu0 %v5158_v33  ;;  %v4350_v33 = vpack.c.bf16 %v450_v25, %v443_v7  ;;  %v318_v25 = vand.u32 4294901760, %v5255_v40  ;;  %v5302_v40 = vsub.f32 %v160_v50, %v5264_v57  ;;  %v478_v45 = vand.u32 4294901760, %v477_v13 }
  0x79   :  { %4343 = vmatprep.subr.bf16.mxu1 %v5164_v24  ;;  %4439 = vmatprep.subr.bf16.mxu0 %v5164_v24  ;;  %v484_v15 = vsub.f32 %v5236_v28, %v6746_v49  ;;  %v6748_v50 = vand.u32 4294901760, %v5121_v12  ;;  %v5320_v13 = vand.u32 4294901760, %v163_v39  ;;  %v5325_v49 = vsub.f32 %v5083_v55, %v6749_v4 }
  0x7a   :  { %v6752_v12 = vand.u32 4294901760, %v5132_v14  ;;  %v6753_v55 = vand.u32 4294901760, %v5262_v20  ;;  %v166_v14 = vld [vmem:[#allocation5 + $0x78] sm:$0xff] }
  0x7c   :  { %4345 = vmatpush3.bf16.msra.mxu1 %v5164_v24  ;;  %4441 = vmatpush3.bf16.msra.mxu0 %v5164_v24  ;;  %v6742_v24 = vand.u32 4294901760, %v5071_v47  ;;  %v347_v4 = vsub.f32 %v5262_v20, %v6753_v55 }
  0x7d   :  { %4347 = vmatprep.subr.bf16.mxu1 %v4346_v54  ;;  %4443 = vmatprep.subr.bf16.mxu0 %v5197_v11 }
  0x7e   :  { %v5285_v7 = vsub.f32 %v5071_v47, %v6742_v24  ;;  %v4354_v47 = vpack.c.bf16 %v464_v6, %v457_v17  ;;  %v5314_v17 = vsub.f32 %v161_v26, %v5271_v5  ;;  %v164_v6 = vld [vmem:[#allocation5 + $0x68] sm:$0xff]  ;;  %v338_v26 = vand.u32 4294901760, %v5291_v44  ;;  %v165_v24 = vld [vmem:[#allocation5 + $0x70] sm:$0xff] }
  0x7f   :  { %4011 = vmatmul.mubr.f32.vlgmr.msra.gmra.mrb[0].mxu1 %v278_v8  ;;  %4179 = vmatmul.mubr.f32.vlgmr.msra.gmra.mrb[0].mxu0 %v6745_v48  ;;  %v6747_v8 = vand.u32 4294901760, %v5241_v9 }
  0x80   :  { %4349 = vmatpush3.bf16.msra.mxu1 %v4346_v54  ;;  %4445 = vmatpush3.bf16.msra.mxu0 %v5197_v11  ;;  %v328_v54 = vand.u32 4294901760, %v5280_v36  ;;  %v6751_v36 = vand.u32 4294901760, %v5085_v56  ;;  %v6756_v55 = vand.u32 4294901760, %v5285_v7 }
  0x81   :  { %v491_v48 = vsub.f32 %v5241_v9, %v6747_v8  ;;  %4013 = vmatprep.mubr.f32.mxu1 %v288_v19  ;;  %4181 = vmatprep.mubr.f32.mxu0 %v6748_v50  ;;  %v6750_v19 = vand.u32 4294901760, %v5190_v10 }
  0x82   :  { %4351 = vmatprep.subr.bf16.mxu1 %v4350_v33  ;;  %4447 = vmatprep.subr.bf16.mxu0 %v4446_v61  ;;  %v5334_v11 = vsub.f32 %v5085_v56, %v6751_v36  ;;  %v4358_v56 = vpack.c.bf16 %v478_v45, %v471_v41  ;;  %v485_v36 = vand.u32 4294901760, %v484_v15  ;;  %v498_v44 = vsub.f32 %v5285_v7, %v6756_v55 }
  0x83   :  { %v4454_v8 = vpack.c.bf16 %v476_v38, %v6750_v19  ;;  %4014 = vmatmul.mubr.f32.gmra.mrb[2].mxu1 %v298_v32  ;;  %4182 = vmatmul.mubr.f32.gmra.mrb[2].mxu0 %v6752_v12  ;;  %v5343_v38 = vsub.f32 %v162_v60, %v5304_v18  ;;  %v5345_v19 = vand.u32 4294901760, %v164_v6  ;;  %v492_v50 = vand.u32 4294901760, %v491_v48 }
  0x84   :  { %4353 = vmatpush3.bf16.msra.mxu1 %v4350_v33  ;;  %4449 = vmatpush3.bf16.msra.mxu0 %v4446_v61  ;;  %v6755_v12 = vand.u32 4294901760, %v5177_v42  ;;  %v5354_v60 = vsub.f32 %v163_v39, %v5320_v13  ;;  %v5357_v61 = vand.u32 4294901760, %v165_v24  ;;  %v6759_v41 = vand.u32 4294901760, %v5296_v3 }
  0x85   :  { %6754 = vst [vmem:[#allocation35_spill] sm:$0xff] %v5343_v38  ;;  %4016 = vmatprep.mubr.f32.mxu1 %v308_v46  ;;  %4355 = vmatprep.subr.bf16.mxu1 %v4354_v47  ;;  %v518_v45 = vand.u32 4294901760, %v5334_v11  ;;  %v6760_v15 = vand.u32 4294901760, %v5101_v62  ;;  %v6761_v39 = vand.u32 4294901760, %v5103_v63  ;;  %v6762_v55 = vand.u32 4294901760, %v5183_v51 }
  0x86   :  { %4184 = vmatprep.mubr.f32.mxu0 %v6755_v12  ;;  %6757 = vst [vmem:[#allocation36_spill] sm:$0xff] %v5354_v60  ;;  %6758 = vst [vmem:[#allocation37_spill] sm:$0xff] %v5357_v61  ;;  %4451 = vmatprep.subr.bf16.mxu0 %v5275_v29  ;;  %v505_v46 = vsub.f32 %v5296_v3, %v6759_v41  ;;  %v6763_v33 = vand.u32 4294901760, %v5302_v40  ;;  %v376_v32 = vand.u32 4294901760, %v5343_v38  ;;  %v6767_v51 = vand.u32 4294901760, %v5314_v17 }
  0x87   :  { %v5367_v48 = vsub.f32 %v5101_v62, %v6760_v15  ;;  %v5372_v12 = vsub.f32 %v5103_v63, %v6761_v39  ;;  %4017 = vmatmul.mubr.f32.gmra.mrb[4].mxu1 %v318_v25  ;;  %4185 = vmatmul.mubr.f32.gmra.mrb[4].mxu0 %v6762_v55  ;;  %v5381_v42 = vsub.f32 %v164_v6, %v5345_v19  ;;  %v5383_v62 = vand.u32 4294901760, %v166_v14 }
  0x88   :  { %v357_v41 = vsub.f32 %v5302_v40, %v6763_v33  ;;  %4357 = vmatpush3.bf16.msra.mxu1 %v4354_v47  ;;  %4453 = vmatpush3.bf16.msra.mxu0 %v5275_v29  ;;  %v348_v63 = vand.u32 4294901760, %v347_v4  ;;  %v4362_v15 = vpack.c.bf16 %v492_v50, %v485_v36  ;;  %v6765_v25 = vand.u32 4294901760, %v5236_v28 }
  0x89   :  { %6764 = vst [vmem:[#allocation38_spill] sm:$0xff] %v5381_v42  ;;  %v6766_v39 = vand.u32 4294901760, %v5241_v9  ;;  %v367_v33 = vsub.f32 %v5314_v17, %v6767_v51  ;;  %4019 = vmatprep.mubr.f32.mxu1 %v328_v54  ;;  %v6768_v6 = vand.u32 4294901760, %v5218_v21  ;;  %v499_v58 = vand.u32 4294901760, %v498_v44  ;;  %4359 = vmatprep.subr.bf16.mxu1 %v4358_v56 }
  0x8a   :  { %v386_v47 = vand.u32 4294901760, %v5354_v60  ;;  %v6769_v29 = vand.u32 4294901760, %v5325_v49  ;;  %v5400_v4 = vsub.f32 %v165_v24, %v5357_v61  ;;  %4455 = vmatprep.subr.bf16.mxu0 %v4454_v8  ;;  %v506_v36 = vand.u32 4294901760, %v505_v46 }
  0x8b   :  { %v4458_v55 = vpack.c.bf16 %v6766_v39, %v6765_v25  ;;  %4187 = vmatprep.mubr.f32.mxu0 %v6768_v6  ;;  %v519_v25 = vsub.f32 %v5334_v11, %v518_v45  ;;  %v525_v51 = vand.u32 4294901760, %v5367_v48  ;;  %v532_v54 = vand.u32 4294901760, %v5372_v12  ;;  %4020 = vmatmul.mubr.f32.gmra.mrb[6].mxu1 %v338_v26 }
  0x8c   :  { %v512_v50 = vsub.f32 %v5325_v49, %v6769_v29  ;;  %v6770_v44 = vand.u32 4294901760, %v5222_v37  ;;  %v358_v39 = vand.u32 4294901760, %v357_v41  ;;  %v377_v6 = vsub.f32 %v5343_v38, %v376_v32  ;;  %4361 = vmatpush3.bf16.msra.mxu1 %v4358_v56  ;;  %4457 = vmatpush3.bf16.msra.mxu0 %v4454_v8 }
  0x8d   :  { %v396_v29 = vand.u32 4294901760, %v5381_v42  ;;  %v5410_v24 = vsub.f32 %v166_v14, %v5383_v62  ;;  %v368_v46 = vand.u32 4294901760, %v367_v33  ;;  %4022 = vmatprep.mubr.f32.mxu1 %v348_v63  ;;  %v6771_v21 = vand.u32 4294901760, %v5262_v20  ;;  %4363 = vmatprep.subr.bf16.mxu1 %v4362_v15 }
  0x8e   :  { %4188 = vmatmul.mubr.f32.gmra.mrb[6].mxu0 %v6770_v44  ;;  %v6772_v26 = vand.u32 4294901760, %v5285_v7  ;;  %v6773_v37 = vand.u32 4294901760, %v5296_v3  ;;  %v387_v41 = vsub.f32 %v5354_v60, %v386_v47  ;;  %v513_v38 = vand.u32 4294901760, %v512_v50  ;;  %4459 = vmatprep.subr.bf16.mxu0 %v4458_v55 }
  0x8f   :  { %4190 = vmatprep.mubr.f32.mxu0 %v6771_v21  ;;  %v406_v61 = vand.u32 4294901760, %v5400_v4  ;;  %v4366_v14 = vpack.c.bf16 %v506_v36, %v499_v58  ;;  %v520_v56 = vand.u32 4294901760, %v519_v25  ;;  %v526_v8 = vsub.f32 %v5367_v48, %v525_v51  ;;  %4023 = vmatmul.mubr.f32.gmra.mrb[8].mxu1 %v358_v39 }
  0x90   :  { %v4462_v44 = vpack.c.bf16 %v6773_v37, %v6772_v26  ;;  %v533_v63 = vsub.f32 %v5372_v12, %v532_v54  ;;  %v6774_v21 = vand.u32 4294901760, %v5302_v40  ;;  %v378_v33 = vand.u32 4294901760, %v377_v6  ;;  %4365 = vmatpush3.bf16.msra.mxu1 %v4362_v15  ;;  %4461 = vmatpush3.bf16.msra.mxu0 %v4458_v55 }
  0x91   :  { %v397_v37 = vsub.f32 %v5381_v42, %v396_v29  ;;  %v416_v26 = vand.u32 4294901760, %v5410_v24  ;;  %4025 = vmatprep.mubr.f32.mxu1 %v368_v46  ;;  %v6775_v50 = vand.u32 4294901760, %v5314_v17  ;;  %v388_v58 = vand.u32 4294901760, %v387_v41  ;;  %4367 = vmatprep.subr.bf16.mxu1 %v4366_v14 }
  0x92   :  { %4191 = vmatmul.mubr.f32.gmra.mrb[8].mxu0 %v6774_v21  ;;  %v407_v36 = vsub.f32 %v5400_v4, %v406_v61  ;;  %4463 = vmatprep.subr.bf16.mxu0 %v4462_v44  ;;  %v4370_v25 = vpack.c.bf16 %v520_v56, %v513_v38  ;;  %v6776_v39 = vand.u32 4294901760, %v5325_v49  ;;  %v527_v6 = vand.u32 4294901760, %v526_v8  ;;  %v137_v56 = vld [vmem:[#allocation2 + $0x20] sm:$0xff] }
  0x93   :  { %4193 = vmatprep.mubr.f32.mxu0 %v6775_v50  ;;  %v534_v60 = vand.u32 4294901760, %v533_v63  ;;  %4026 = vmatmul.mubr.f32.gmra.mrb[10].mxu1 %v378_v33  ;;  %v398_v42 = vand.u32 4294901760, %v397_v37  ;;  %v417_v15 = vsub.f32 %v5410_v24, %v416_v26  ;;  %v4470_v41 = vpack.c.bf16 %v532_v54, %v525_v51  ;;  %v140_v37 = vld [vmem:[#allocation2 + $0x50] sm:$0xff] }
  0x94   :  { %v4466_v21 = vpack.c.bf16 %v518_v45, %v6776_v39  ;;  %4369 = vmatpush3.bf16.msra.mxu1 %v4366_v14  ;;  %4465 = vmatpush3.bf16.msra.mxu0 %v4462_v44  ;;  %v408_v55 = vand.u32 4294901760, %v407_v36  ;;  %v6790_v45 = vld [vmem:[#allocation24_spill] sm:$0xff] }
  0x95   :  { %4028 = vmatprep.mubr.f32.mxu1 %v388_v58  ;;  %4371 = vmatprep.subr.bf16.mxu1 %v4370_v25  ;;  %v4374_v46 = vpack.c.bf16 %v534_v60, %v527_v6  ;;  %v418_v38 = vand.u32 4294901760, %v417_v15  ;;  %v6788_v60 = vld [vmem:[#allocation20_spill] sm:$0xff] }
  0x96   :  { %4194 = vmatmul.mubr.f32.gmra.mrb[10].mxu0 %v376_v32  ;;  %4467 = vmatprep.subr.bf16.mxu0 %v4466_v21  ;;  %v4378_v32 = vpack.c.bf16 %v5078_v53, %v5076_v52  ;;  %v4386_v52 = vpack.c.bf16 %v5150_v23, %v5145_v22  ;;  %v6777_v53 = vld [vmem:[#allocation25_spill] sm:$0xff]  ;;  %v6780_v22 = vld [vmem:[#allocation31_spill] sm:$0xff]  ;;  %v4398_v23 = vpack.c.bf16 %v5296_v3, %v5285_v7  ;;  %v139_v36 = vld [vmem:[#allocation2 + $0x40] sm:$0xff] }
  0x97   :  { %4196 = vmatprep.mubr.f32.mxu0 %v386_v47  ;;  %4029 = vmatmul.mubr.f32.gmra.mrb[12].mxu1 %v398_v42  ;;  %v4382_v42 = vpack.c.bf16 %v5109_v2, %v5107_v1  ;;  %v6778_v1 = vld [vmem:[#allocation29_spill] sm:$0xff]  ;;  %v4394_v2 = vpack.c.bf16 %v5241_v9, %v5236_v28  ;;  %v6783_v28 = vld [vmem:[#allocation23_spill] sm:$0xff]  ;;  %v6784_v9 = vld [vmem:[#allocation26_spill] sm:$0xff]  ;;  %v4406_v7 = vpack.c.bf16 %v5372_v12, %v5367_v48 }
  0x98   :  { %4373 = vmatpush3.bf16.msra.mxu1 %v4370_v25  ;;  %4469 = vmatpush3.bf16.msra.mxu0 %v4466_v21  ;;  %v6785_v3 = vld [vmem:[#allocation37_spill] sm:$0xff]  ;;  %v6791_v48 = vld [vmem:[#allocation28_spill] sm:$0xff]  ;;  %v6792_v12 = vld [vmem:[#allocation30_spill] sm:$0xff] }
  0x99   :  { %4031 = vmatprep.mubr.f32.mxu1 %v408_v55  ;;  %4375 = vmatprep.subr.bf16.mxu1 %v4374_v46  ;;  %v142_v55 = vld [vmem:[#allocation2 + $0x70] sm:$0xff] }
  0x9a   :  { %4197 = vmatmul.mubr.f32.gmra.mrb[12].mxu0 %v396_v29  ;;  %4471 = vmatprep.subr.bf16.mxu0 %v4470_v41 }
  0x9b   :  { %4199 = vmatprep.mubr.f32.mxu0 %v406_v61  ;;  %4032 = vmatmul.mubr.f32.gmra.mrb[14].mxu1 %v418_v38  ;;  %v6789_v61 = vld [vmem:[#allocation22_spill] sm:$0xff] }
  0x9c   :  { %4377 = vmatpush3.bf16.msra.mxu1 %v4374_v46  ;;  %4473 = vmatpush3.bf16.msra.mxu0 %v4470_v41 }
  0x9d   :  { %4066 = vmatprep.mubr.f32.mxu1 %v5037_v34  ;;  %4379 = vmatprep.subr.bf16.mxu1 %v4378_v32 }
  0x9e   :  { %4200 = vmatmul.mubr.f32.gmra.mrb[14].mxu0 %v416_v26  ;;  %4475 = vmatprep.subr.bf16.mxu0 %v5023_v27 }
  0x9f   :  { %4234 = vmatprep.mubr.f32.mxu0 %v5037_v34  ;;  %4067 = vmatmul.mubr.f32.vlgmr.msra.gmra.mrb[0].mxu1 %v5059_v43 }
  0xa0   :  { %4381 = vmatpush3.bf16.msra.mxu1 %v4378_v32  ;;  %4069 = vmatprep.mubr.f32.mxu1 %v5090_v59  ;;  %v141_v32 = vld [vmem:[#allocation2 + $0x60] sm:$0xff] }
  0xa1   :  { %4383 = vmatprep.subr.bf16.mxu1 %v4382_v42 }
  0xa2   :  { %4235 = vmatmul.mubr.f32.vlgmr.msra.gmra.mrb[0].mxu0 %v5059_v43 }
  0xa3   :  { %4477 = vmatpush3.bf16.msra.mxu0 %v5023_v27  ;;  %4237 = vmatprep.mubr.f32.mxu0 %v5090_v59  ;;  %v4390_v27 = vpack.c.bf16 %v5207_v31, %v5190_v10  ;;  %v6781_v10 = vld [vmem:[#allocation34_spill] sm:$0xff]  ;;  %v4402_v31 = vpack.c.bf16 %v5334_v11, %v5325_v49  ;;  %v6786_v11 = vld [vmem:[#allocation27_spill] sm:$0xff] }
  0xa4   :  { %4479 = vmatprep.subr.bf16.mxu0 %v5027_v30  ;;  %4070 = vmatmul.mubr.f32.gmra.mrb[2].mxu1 %v5105_v0  ;;  %v6787_v49 = vld [vmem:[#allocation18_spill] sm:$0xff] }
  0xa5   :  { %4385 = vmatpush3.bf16.msra.mxu1 %v4382_v42  ;;  %4072 = vmatprep.mubr.f32.mxu1 %v5135_v16 }
  0xa6   :  { %4238 = vmatmul.mubr.f32.gmra.mrb[2].mxu0 %v5105_v0  ;;  %4387 = vmatprep.subr.bf16.mxu1 %v4386_v52 }
  0xa7   :  { %4481 = vmatpush3.bf16.msra.mxu0 %v5027_v30  ;;  %4240 = vmatprep.mubr.f32.mxu0 %v5135_v16  ;;  %v6779_v30 = vld [vmem:[#allocation19_spill] sm:$0xff] }
  0xa8   :  { %4483 = vmatprep.subr.bf16.mxu0 %v5045_v35  ;;  %4073 = vmatmul.mubr.f32.gmra.mrb[4].mxu1 %v6777_v53 }
  0xa9   :  { %4389 = vmatpush3.bf16.msra.mxu1 %v4386_v52  ;;  %4075 = vmatprep.mubr.f32.mxu1 %v6778_v1 }
  0xaa   :  { %4241 = vmatmul.mubr.f32.gmra.mrb[4].mxu0 %v6777_v53  ;;  %4391 = vmatprep.subr.bf16.mxu1 %v4390_v27 }
  0xab   :  { %4485 = vmatpush3.bf16.msra.mxu0 %v5045_v35  ;;  %4243 = vmatprep.mubr.f32.mxu0 %v6778_v1  ;;  %v6782_v35 = vld [vmem:[#allocation21_spill] sm:$0xff] }
  0xac   :  { %4487 = vmatprep.subr.bf16.mxu0 %v6779_v30  ;;  %4076 = vmatmul.mubr.f32.gmra.mrb[6].mxu1 %v6780_v22 }
  0xad   :  { %4393 = vmatpush3.bf16.msra.mxu1 %v4390_v27  ;;  %4078 = vmatprep.mubr.f32.mxu1 %v6781_v10 }
  0xae   :  { %4244 = vmatmul.mubr.f32.gmra.mrb[6].mxu0 %v6780_v22  ;;  %4395 = vmatprep.subr.bf16.mxu1 %v4394_v2 }
  0xaf   :  { %4489 = vmatpush3.bf16.msra.mxu0 %v6779_v30  ;;  %4246 = vmatprep.mubr.f32.mxu0 %v6781_v10  ;;  %v144_v30 = vld [vmem:[#allocation2 + $0x90] sm:$0xff] }
  0xb0   :  { %4491 = vmatprep.subr.bf16.mxu0 %v6782_v35  ;;  %4079 = vmatmul.mubr.f32.gmra.mrb[8].mxu1 %v5264_v57 }
  0xb1   :  { %4397 = vmatpush3.bf16.msra.mxu1 %v4394_v2  ;;  %4081 = vmatprep.mubr.f32.mxu1 %v5271_v5 }
  0xb2   :  { %4247 = vmatmul.mubr.f32.gmra.mrb[8].mxu0 %v5264_v57  ;;  %4399 = vmatprep.subr.bf16.mxu1 %v4398_v23 }
  0xb3   :  { %4493 = vmatpush3.bf16.msra.mxu0 %v6782_v35  ;;  %4249 = vmatprep.mubr.f32.mxu0 %v5271_v5  ;;  %v143_v35 = vld [vmem:[#allocation2 + $0x80] sm:$0xff] }
  0xb4   :  { %4495 = vmatprep.subr.bf16.mxu0 %v6783_v28  ;;  %4082 = vmatmul.mubr.f32.gmra.mrb[10].mxu1 %v5304_v18 }
  0xb5   :  { %4401 = vmatpush3.bf16.msra.mxu1 %v4398_v23  ;;  %4084 = vmatprep.mubr.f32.mxu1 %v5320_v13 }
  0xb6   :  { %4250 = vmatmul.mubr.f32.gmra.mrb[10].mxu0 %v5304_v18  ;;  %4403 = vmatprep.subr.bf16.mxu1 %v4402_v31 }
  0xb7   :  { %4497 = vmatpush3.bf16.msra.mxu0 %v6783_v28  ;;  %4252 = vmatprep.mubr.f32.mxu0 %v5320_v13 }
  0xb8   :  { %4499 = vmatprep.subr.bf16.mxu0 %v6784_v9  ;;  %4085 = vmatmul.mubr.f32.gmra.mrb[12].mxu1 %v5345_v19 }
  0xb9   :  { %4405 = vmatpush3.bf16.msra.mxu1 %v4402_v31  ;;  %4087 = vmatprep.mubr.f32.mxu1 %v6785_v3 }
  0xba   :  { %4253 = vmatmul.mubr.f32.gmra.mrb[12].mxu0 %v5345_v19  ;;  %4407 = vmatprep.subr.bf16.mxu1 %v4406_v7 }
  0xbb   :  { %4501 = vmatpush3.bf16.msra.mxu0 %v6784_v9  ;;  %4255 = vmatprep.mubr.f32.mxu0 %v6785_v3 }
  0xbc   :  { %4503 = vmatprep.subr.bf16.mxu0 %v6786_v11  ;;  %4088 = vmatmul.mubr.f32.gmra.mrb[14].mxu1 %v5383_v62 }
  0xbd   :  { %4409 = vmatpush3.bf16.msra.mxu1 %v4406_v7  ;;  %4122 = vmatprep.mubr.f32.mxu1 %v6787_v49 }
  0xbe   :  { %4256 = vmatmul.mubr.f32.gmra.mrb[14].mxu0 %v5383_v62 }
  0xbf   :  { %4505 = vmatpush3.bf16.msra.mxu0 %v6786_v11  ;;  %4290 = vmatprep.mubr.f32.mxu0 %v5037_v34  ;;  %v6793_v34 = vld [vmem:[#allocation32_spill] sm:$0xff] }
  0xc0   :  { %4123 = vmatmul.mubr.f32.vlgmr.msra.gmra.mrb[0].mxu1 %v6788_v60 }
  0xc1   :  { %4125 = vmatprep.mubr.f32.mxu1 %v6789_v61  ;;  %v145_v61 = vld [vmem:[#allocation2 + $0xa0] sm:$0xff] }
  0xc2   :  { %4291 = vmatmul.mubr.f32.vlgmr.msra.gmra.mrb[0].mxu0 %v5059_v43  ;;  %v6794_v43 = vld [vmem:[#allocation33_spill] sm:$0xff] }
  0xc3   :  { %4293 = vmatprep.mubr.f32.mxu0 %v5090_v59  ;;  %v6795_v59 = vld [vmem:[#allocation35_spill] sm:$0xff] }
  0xc4   :  { %4126 = vmatmul.mubr.f32.gmra.mrb[2].mxu1 %v6790_v45 }
  0xc5   :  { %4128 = vmatprep.mubr.f32.mxu1 %v6791_v48 }
  0xc6   :  { %4294 = vmatmul.mubr.f32.gmra.mrb[2].mxu0 %v5105_v0  ;;  %v6796_v0 = vld [vmem:[#allocation36_spill] sm:$0xff] }
  0xc7   :  { %4296 = vmatprep.mubr.f32.mxu0 %v5135_v16  ;;  %v6797_v16 = vld [vmem:[#allocation38_spill] sm:$0xff] }
  0xc8   :  { %4129 = vmatmul.mubr.f32.gmra.mrb[4].mxu1 %v6792_v12 }
  0xc9   :  { %4131 = vmatprep.mubr.f32.mxu1 %v6793_v34 }
  0xca   :  { %4297 = vmatmul.mubr.f32.gmra.mrb[4].mxu0 %v6777_v53 }
  0xcb   :  { %4299 = vmatprep.mubr.f32.mxu0 %v6778_v1 }
  0xcc   :  { %4132 = vmatmul.mubr.f32.gmra.mrb[6].mxu1 %v6794_v43 }
  0xcd   :  { %4134 = vmatprep.mubr.f32.mxu1 %v5262_v20  ;;  %v136_v20 = vld [vmem:[#allocation2 + $0x10] sm:$0xff] }
  0xce   :  { %4300 = vmatmul.mubr.f32.gmra.mrb[6].mxu0 %v6780_v22 }
  0xcf   :  { %4302 = vmatprep.mubr.f32.mxu0 %v6781_v10 }
  0xd0   :  { %4135 = vmatmul.mubr.f32.gmra.mrb[8].mxu1 %v5302_v40 }
  0xd1   :  { %4137 = vmatprep.mubr.f32.mxu1 %v5314_v17  ;;  %v135_v17 = vld [vmem:[#allocation2] sm:$0xff] }
  0xd2   :  { %4303 = vmatmul.mubr.f32.gmra.mrb[8].mxu0 %v5264_v57 }
  0xd3   :  { %4305 = vmatprep.mubr.f32.mxu0 %v5271_v5 }
  0xd4   :  { %4138 = vmatmul.mubr.f32.gmra.mrb[10].mxu1 %v6795_v59  ;;  %v148_v59 = vld [vmem:[#allocation2 + $0xd0] sm:$0xff] }
  0xd5   :  { %4140 = vmatprep.mubr.f32.mxu1 %v6796_v0 }
  0xd6   :  { %4306 = vmatmul.mubr.f32.gmra.mrb[10].mxu0 %v5304_v18 }
  0xd7   :  { %4308 = vmatprep.mubr.f32.mxu0 %v5320_v13 }
  0xd8   :  { %4141 = vmatmul.mubr.f32.gmra.mrb[12].mxu1 %v6797_v16 }
  0xd9   :  { %4143 = vmatprep.mubr.f32.mxu1 %v5400_v4 }
  0xda   :  { %4309 = vmatmul.mubr.f32.gmra.mrb[12].mxu0 %v5345_v19  ;;  %v138_v19 = vld [vmem:[#allocation2 + $0x30] sm:$0xff] }
  0xdb   :  { %4311 = vmatprep.mubr.f32.mxu0 %v6785_v3  ;;  %v146_v3 = vld [vmem:[#allocation2 + $0xb0] sm:$0xff] }
  0xdc   :  { %4144 = vmatmul.mubr.f32.gmra.mrb[14].mxu1 %v5410_v24 }
  0xde   :  { %4312 = vmatmul.mubr.f32.gmra.mrb[14].mxu0 %v5383_v62 }
 0x193   :  { %v4124_v57 = vpop.f32.mrb[0].mxu1 }
 0x194   :  { %v765_v40 = vpop.f32.mrb[1].mxu1 }
 0x195   :  { %v4292_v5 = vpop.f32.mrb[0].mxu0 }
 0x196   :  { %v4698_v18 = vadd.f32 %v4292_v5, %v4124_v57  ;;  %v1375_v47 = vpop.f32.mrb[1].mxu0 }
 0x197   :  { %v4699_v13 = vadd.f32 %v1375_v47, %v765_v40  ;;  %v4127_v29 = vpop.f32.mrb[2].mxu1 }
 0x198   :  { %v1470_v51 = vadd.f32 %v4698_v18, %v136_v20  ;;  %v779_v14 = vpop.f32.mrb[3].mxu1  ;;  %v147_v20 = vld [vmem:[#allocation2 + $0xc0] sm:$0xff] }
 0x199   :  { %v1469_v54 = vadd.f32 %v4699_v13, %v135_v17  ;;  %v4295_v44 = vpop.f32.mrb[2].mxu0  ;;  %v150_v13 = vld [vmem:[#allocation2 + $0xf0] sm:$0xff] }
 0x19a   :  { %1486 = vst [vmem:[#allocation2 + $0x10] sm:$0xff] %v1470_v51  ;;  %v4700_v4 = vadd.f32 %v4295_v44, %v4127_v29  ;;  %v1387_v24 = vpop.f32.mrb[3].mxu0 }
 0x19b   :  { %1485 = vst [vmem:[#allocation2] sm:$0xff] %v1469_v54  ;;  %v4701_v62 = vadd.f32 %v1387_v24, %v779_v14  ;;  %v4130_v33 = vpop.f32.mrb[4].mxu1 }
 0x19c   :  { %v1472_v8 = vadd.f32 %v4700_v4, %v138_v19  ;;  %v793_v58 = vpop.f32.mrb[5].mxu1  ;;  %v149_v19 = vld [vmem:[#allocation2 + $0xe0] sm:$0xff] }
 0x19d   :  { %v1471_v63 = vadd.f32 %v4701_v62, %v137_v56  ;;  %v4298_v26 = vpop.f32.mrb[4].mxu0 }
 0x19e   :  { %1488 = vst [vmem:[#allocation2 + $0x30] sm:$0xff] %v1472_v8  ;;  %v4702_v50 = vadd.f32 %v4298_v26, %v4130_v33  ;;  %v1399_v25 = vpop.f32.mrb[5].mxu0 }
 0x19f   :  { %1487 = vst [vmem:[#allocation2 + $0x20] sm:$0xff] %v1471_v63  ;;  %v4703_v39 = vadd.f32 %v1399_v25, %v793_v58  ;;  %v4133_v15 = vpop.f32.mrb[6].mxu1 }
 0x1a0   :  { %v1474_v21 = vadd.f32 %v4702_v50, %v140_v37  ;;  %v807_v38 = vpop.f32.mrb[7].mxu1 }
 0x1a1   :  { %v1473_v6 = vadd.f32 %v4703_v39, %v139_v36  ;;  %v4301_v46 = vpop.f32.mrb[6].mxu0 }
 0x1a2   :  { %1490 = vst [vmem:[#allocation2 + $0x50] sm:$0xff] %v1474_v21  ;;  %v4704_v41 = vadd.f32 %v4301_v46, %v4133_v15  ;;  %v1411_v42 = vpop.f32.mrb[7].mxu0 }
 0x1a3   :  { %1489 = vst [vmem:[#allocation2 + $0x40] sm:$0xff] %v1473_v6  ;;  %v4705_v52 = vadd.f32 %v1411_v42, %v807_v38  ;;  %v4136_v1 = vpop.f32.mrb[8].mxu1 }
 0x1a4   :  { %v1476_v27 = vadd.f32 %v4704_v41, %v142_v55  ;;  %v821_v10 = vpop.f32.mrb[9].mxu1 }
 0x1a5   :  { %v1475_v53 = vadd.f32 %v4705_v52, %v141_v32  ;;  %v4304_v2 = vpop.f32.mrb[8].mxu0 }
 0x1a6   :  { %1492 = vst [vmem:[#allocation2 + $0x70] sm:$0xff] %v1476_v27  ;;  %v4706_v22 = vadd.f32 %v4304_v2, %v4136_v1  ;;  %v1423_v23 = vpop.f32.mrb[9].mxu0 }
 0x1a7   :  { %1491 = vst [vmem:[#allocation2 + $0x60] sm:$0xff] %v1475_v53  ;;  %v4707_v28 = vadd.f32 %v1423_v23, %v821_v10  ;;  %v4139_v7 = vpop.f32.mrb[10].mxu1 }
 0x1a8   :  { %v1478_v31 = vadd.f32 %v4706_v22, %v144_v30  ;;  %v835_v60 = vpop.f32.mrb[11].mxu1 }
 0x1a9   :  { %v1477_v9 = vadd.f32 %v4707_v28, %v143_v35  ;;  %v4307_v11 = vpop.f32.mrb[10].mxu0 }
 0x1aa   :  { %1494 = vst [vmem:[#allocation2 + $0x90] sm:$0xff] %v1478_v31  ;;  %v4708_v49 = vadd.f32 %v4307_v11, %v4139_v7  ;;  %v1435_v45 = vpop.f32.mrb[11].mxu0 }
 0x1ab   :  { %1493 = vst [vmem:[#allocation2 + $0x80] sm:$0xff] %v1477_v9  ;;  %v4709_v48 = vadd.f32 %v1435_v45, %v835_v60  ;;  %v4142_v43 = vpop.f32.mrb[12].mxu1 }
 0x1ac   :  { %v1480_v12 = vadd.f32 %v4708_v49, %v146_v3  ;;  %v849_v57 = vpop.f32.mrb[13].mxu1 }
 0x1ad   :  { %v1479_v34 = vadd.f32 %v4709_v48, %v145_v61  ;;  %v4310_v0 = vpop.f32.mrb[12].mxu0 }
 0x1ae   :  { %1496 = vst [vmem:[#allocation2 + $0xb0] sm:$0xff] %v1480_v12  ;;  %v4710_v16 = vadd.f32 %v4310_v0, %v4142_v43  ;;  %v1447_v5 = vpop.f32.mrb[13].mxu0 }
 0x1af   :  { %1495 = vst [vmem:[#allocation2 + $0xa0] sm:$0xff] %v1479_v34  ;;  %v4711_v18 = vadd.f32 %v1447_v5, %v849_v57  ;;  %v4145_v47 = vpop.f32.mrb[14].mxu1 }
 0x1b0   :  { %v1482_v40 = vadd.f32 %v4710_v16, %v148_v59  ;;  %v863_v29 = vpop.f32.mrb[15].mxu1 }
 0x1b1   :  { %v1481_v17 = vadd.f32 %v4711_v18, %v147_v20  ;;  %v4313_v51 = vpop.f32.mrb[14].mxu0 }
 0x1b2   :  { %1498 = vst [vmem:[#allocation2 + $0xd0] sm:$0xff] %v1482_v40  ;;  %v4712_v54 = vadd.f32 %v4313_v51, %v4145_v47  ;;  %v1459_v44 = vpop.f32.mrb[15].mxu0 }
 0x1b3   :  { %1497 = vst [vmem:[#allocation2 + $0xc0] sm:$0xff] %v1481_v17  ;;  %v4713_v4 = vadd.f32 %v1459_v44, %v863_v29 }
 0x1b4   :  { %v1484_v14 = vadd.f32 %v4712_v54, %v150_v13 }
 0x1b5   :  { %v1483_v56 = vadd.f32 %v4713_v4, %v149_v19 }
 0x1b6   :  { %1500 = vst [vmem:[#allocation2 + $0xf0] sm:$0xff] %v1484_v14 }
 0x1b7   :  { %1499 = vst [vmem:[#allocation2 + $0xe0] sm:$0xff] %v1483_v56 }
 0x1b8 PF:  { %v1552_v24 = vld [vmem:[#allocation11 + $0x80] sm:$0xff]  ;;  %v1553_v62 = vld [vmem:[#allocation11 + $0x88] sm:$0xff]  ;;  %v1554_v50 = vld [vmem:[#allocation11 + $0x90] sm:$0xff]  ;;  %s4911_s0 = smov [#allocation13]  }
 0x1b9   :  { %v1536_v8 = vld [vmem:[#allocation11] sm:$0xff]  ;;  %v1617_v63 = vand.u32 4294901760, %v1552_v24  ;;  %v1620_v33 = vand.u32 4294901760, %v1553_v62  ;;  %v1537_v37 = vld [vmem:[#allocation11 + $0x8] sm:$0xff]  ;;  %v1555_v58 = vld [vmem:[#allocation11 + $0x98] sm:$0xff]  ;;  %v1623_v25 = vand.u32 4294901760, %v1554_v50 }
 0x1ba   :  { %v1569_v26 = vand.u32 4294901760, %v1536_v8  ;;  %v1572_v36 = vand.u32 4294901760, %v1537_v37  ;;  %v1626_v39 = vand.u32 4294901760, %v1555_v58  ;;  %v1538_v21 = vld [vmem:[#allocation11 + $0x10] sm:$0xff]  ;;  %v1539_v6 = vld [vmem:[#allocation11 + $0x18] sm:$0xff]  ;;  %v1556_v38 = vld [vmem:[#allocation11 + $0xa0] sm:$0xff] }
 0x1bb   :  { %v5528_v15 = vpack.c.bf16 %v1620_v33, %v1617_v63  ;;  %v1575_v46 = vand.u32 4294901760, %v1538_v21  ;;  %v1578_v41 = vand.u32 4294901760, %v1539_v6  ;;  %v1557_v32 = vld [vmem:[#allocation11 + $0xa8] sm:$0xff]  ;;  %v5538_v53 = vsub.f32 %v1554_v50, %v1623_v25  ;;  %v1540_v1 = vld [vmem:[#allocation11 + $0x20] sm:$0xff]  ;;  %v1558_v60 = vld [vmem:[#allocation11 + $0xb0] sm:$0xff]  ;;  %s3291_s17 = sshll.u32 %s4911_s0, 4  ;;  %s3292_s17 = int_to_ptr.vmem [resolvable:$true] %s3291_s17 }
 0x1bc   :  { %v5530_v55 = vsub.f32 %v1536_v8, %v1569_v26  ;;  %v5532_v42 = vpack.c.bf16 %v1572_v36, %v1569_v26  ;;  %v5534_v52 = vsub.f32 %v1537_v37, %v1572_v36  ;;  %v5536_v27 = vpack.c.bf16 %v1626_v39, %v1623_v25  ;;  %v1541_v30 = vld [vmem:[#allocation11 + $0x28] sm:$0xff]  ;;  %v1559_v34 = vld [vmem:[#allocation11 + $0xb8] sm:$0xff]  ;;  %v1542_v51 = vld [vmem:[#allocation11 + $0x30] sm:$0xff]  ;;  %s4874_s18 = scalar_lea.vmem %s3292_s17, 2048  ;;  %p4879_p6 = scmp.lt.s32.totalorder %s3292_s17, %s3292_s17 }
 0x1bd   :  { %6800 = vst [vmem:[#allocation41_spill] sm:$0xff] %v5538_v53  ;;  %4507 = vmatprep.subr.bf16.mxu0 %v5528_v15  ;;  %v5541_v2 = vsub.f32 %v1555_v58, %v1626_v39  ;;  %v5543_v22 = vpack.c.bf16 %v1578_v41, %v1575_v46  ;;  %v5545_v10 = vsub.f32 %v1538_v21, %v1575_v46  ;;  %v1629_v23 = vand.u32 4294901760, %v1556_v38  ;;  %v1543_v54 = vld [vmem:[#allocation11 + $0x38] sm:$0xff]  ;;  %v1560_v26 = vld [vmem:[#allocation11 + $0xc0] sm:$0xff]  ;;  %v1561_v50 = vld [vmem:[#allocation11 + $0xc8] sm:$0xff]  ;;  %p4875_p5 = scmp.ne.s32.totalorder %s3292_s17, %s4874_s18  ;;  %p4880_p7 = scmp.lt.s32.totalorder %s4874_s18, %s4874_s18 }
 0x1be   :  { %6798 = vst [vmem:[#allocation39_spill] sm:$0xff] %v5532_v42  ;;  %6799 = vst [vmem:[#allocation40_spill] sm:$0xff] %v5536_v27  ;;  %v5547_v35 = vsub.f32 %v1539_v6, %v1578_v41  ;;  %4509 = vmatpush3.bf16.msra.mxu0 %v5532_v42  ;;  %v1632_v28 = vand.u32 4294901760, %v1557_v32  ;;  %v5550_v31 = vsub.f32 %v1552_v24, %v1617_v63  ;;  %v1581_v7 = vand.u32 4294901760, %v1540_v1  ;;  %v1544_v21 = vld [vmem:[#allocation11 + $0x40] sm:$0xff] }
 0x1bf   :  { %6801 = vst [vmem:[#allocation42_spill] sm:$0xff] %v5541_v2  ;;  %6802 = vst [vmem:[#allocation43_spill] sm:$0xff] %v5543_v22  ;;  %v5552_v9 = vsub.f32 %v1553_v62, %v1620_v33  ;;  %4511 = vmatprep.subr.bf16.mxu0 %v5536_v27  ;;  %v1584_v3 = vand.u32 4294901760, %v1541_v30  ;;  %v6574_v11 = vand.u32 4294901760, %v5530_v55  ;;  %v6573_v49 = vand.u32 4294901760, %v5534_v52  ;;  %p4881_p8 = por %p4880_p7, %p4879_p6 }
 0x1c0   :  { %6803 = vst [vmem:[#allocation44_spill] sm:$0xff] %v5547_v35  ;;  %6804 = vst [vmem:[#allocation45_spill] sm:$0xff] %v5550_v31  ;;  %v5557_v61 = vpack.c.bf16 %v1632_v28, %v1629_v23  ;;  %v5559_v45 = vsub.f32 %v1556_v38, %v1629_v23  ;;  %v5561_v48 = vsub.f32 %v1557_v32, %v1632_v28  ;;  %v6580_v12 = vand.u32 4294901760, %v5550_v31  ;;  %v1545_v28 = vld [vmem:[#allocation11 + $0x48] sm:$0xff] }
 0x1c1   :  { %6805 = vst [vmem:[#allocation46_spill] sm:$0xff] %v5552_v9  ;;  %v6579_v43 = vand.u32 4294901760, %v5552_v9  ;;  %v5565_v59 = vpack.c.bf16 %v1584_v3, %v1581_v7  ;;  %v5567_v0 = vsub.f32 %v1540_v1, %v1581_v7  ;;  %v5569_v16 = vsub.f32 %v1541_v30, %v1584_v3  ;;  %p4882_p9 = pnand %p4881_p8, %p4875_p5 }
 0x1c2   :  { %6806 = vst [vmem:[#allocation47_spill] sm:$0xff] %v5557_v61  ;;  %4513 = vmatpush3.bf16.msra.mxu0 %v5543_v22  ;;  %v2021_v57 = vsub.f32 %v5550_v31, %v6580_v12  ;;  %v1909_v20 = vsub.f32 %v5530_v55, %v6574_v11  ;;  %v1916_v5 = vsub.f32 %v5534_v52, %v6573_v49  ;;  %v1635_v18 = vand.u32 4294901760, %v1558_v60  ;;  %v1551_v11 = vld [vmem:[#allocation11 + $0x78] sm:$0xff]  ;;  %v1504_v12 = vld [vmem:[#allocation2] sm:$0xff] }
 0x1c3   :  { %6807 = vst [vmem:[#allocation48_spill] sm:$0xff] %v5565_v59  ;;  %6808 = vst [vmem:[#allocation49_spill] sm:$0xff] %v5569_v16  ;;  %4515 = vmatprep.subr.bf16.mxu0 %v5557_v61  ;;  %v2028_v40 = vsub.f32 %v5552_v9, %v6579_v43  ;;  %v1638_v17 = vand.u32 4294901760, %v1559_v34  ;;  %v6572_v47 = vand.u32 4294901760, %v5538_v53  ;;  %v6571_v13 = vand.u32 4294901760, %v5541_v2  ;;  %v1505_v43 = vld [vmem:[#allocation2 + $0x8] sm:$0xff] }
 0x1c4   :  { %v2022_v29 = vand.u32 4294901760, %v2021_v57  ;;  %v1910_v19 = vand.u32 4294901760, %v1909_v20  ;;  %v1917_v44 = vand.u32 4294901760, %v1916_v5  ;;  %v5587_v4 = vsub.f32 %v1558_v60, %v1635_v18 }
 0x1c5   :  { %v2029_v14 = vand.u32 4294901760, %v2028_v40  ;;  %v5589_v56 = vpack.c.bf16 %v1638_v17, %v1635_v18  ;;  %v5591_v24 = vsub.f32 %v1559_v34, %v1638_v17  ;;  %v2035_v62 = vsub.f32 %v5538_v53, %v6572_v47 }
 0x1c6   :  { %6809 = vst [vmem:[#allocation50_spill] sm:$0xff] %v5587_v4  ;;  %4517 = vmatpush3.bf16.msra.mxu0 %v5565_v59  ;;  %v4540_v8 = vpack.c.bf16 %v1917_v44, %v1910_v19  ;;  %v2042_v63 = vsub.f32 %v5541_v2, %v6571_v13  ;;  %v1587_v33 = vand.u32 4294901760, %v1542_v51  ;;  %v1590_v37 = vand.u32 4294901760, %v1543_v54  ;;  %v1563_v19 = vld [vmem:[#allocation11 + $0xd8] sm:$0xff] }
 0x1c7   :  { %6810 = vst [vmem:[#allocation51_spill] sm:$0xff] %v5589_v56  ;;  %6811 = vst [vmem:[#allocation52_spill] sm:$0xff] %v5591_v24  ;;  %v4538_v58 = vpack.c.bf16 %v2029_v14, %v2022_v29  ;;  %4519 = vmatprep.subr.bf16.mxu0 %v5589_v56  ;;  %v2036_v36 = vand.u32 4294901760, %v2035_v62  ;;  %v6570_v25 = vand.u32 4294901760, %v5545_v10  ;;  %v6569_v39 = vand.u32 4294901760, %v5547_v35  ;;  %v1562_v29 = vld [vmem:[#allocation11 + $0xd0] sm:$0xff] }
 0x1c8   :  { %v2043_v6 = vand.u32 4294901760, %v2042_v63  ;;  %v5603_v46 = vpack.c.bf16 %v1590_v37, %v1587_v33  ;;  %v5605_v41 = vsub.f32 %v1542_v51, %v1587_v33  ;;  %v5607_v38 = vsub.f32 %v1543_v54, %v1590_v37  ;;  %v1546_v63 = vld [vmem:[#allocation11 + $0x50] sm:$0xff] }
 0x1c9   :  { %4539 = vmatprep.subr.bf16.mxu1 %v4538_v58  ;;  %v1923_v32 = vsub.f32 %v5545_v10, %v6570_v25  ;;  %v1930_v1 = vsub.f32 %v5547_v35, %v6569_v39  ;;  %v1641_v30 = vand.u32 4294901760, %v1560_v26  ;;  %v1644_v23 = vand.u32 4294901760, %v1561_v50  ;;  %v1566_v39 = vld [vmem:[#allocation11 + $0xf0] sm:$0xff]  ;;  %v1567_v25 = vld [vmem:[#allocation11 + $0xf8] sm:$0xff] }
 0x1ca   :  { %6812 = vst [vmem:[#allocation53_spill] sm:$0xff] %v5603_v46  ;;  %6813 = vst [vmem:[#allocation54_spill] sm:$0xff] %v5605_v41  ;;  %4541 = vmatpush3.bf16.msra.mxu1 %v4540_v8  ;;  %v4542_v7 = vpack.c.bf16 %v2043_v6, %v2036_v36  ;;  %4521 = vmatpush3.bf16.msra.mxu0 %v5603_v46  ;;  %v6567_v3 = vand.u32 4294901760, %v5559_v45  ;;  %v6565_v60 = vand.u32 4294901760, %v5561_v48  ;;  %v1593_v34 = vand.u32 4294901760, %v1544_v21 }
 0x1cb   :  { %6814 = vst [vmem:[#allocation55_spill] sm:$0xff] %v5607_v38  ;;  %v1924_v57 = vand.u32 4294901760, %v1923_v32  ;;  %v1931_v20 = vand.u32 4294901760, %v1930_v1  ;;  %v5618_v5 = vpack.c.bf16 %v1644_v23, %v1641_v30  ;;  %v5620_v18 = vsub.f32 %v1560_v26, %v1641_v30  ;;  %v1547_v32 = vld [vmem:[#allocation11 + $0x58] sm:$0xff] }
 0x1cc   :  { %4543 = vmatprep.subr.bf16.mxu1 %v4542_v7  ;;  %v5622_v40 = vsub.f32 %v1561_v50, %v1644_v23  ;;  %v2049_v17 = vsub.f32 %v5559_v45, %v6567_v3  ;;  %v2056_v51 = vsub.f32 %v5561_v48, %v6565_v60  ;;  %v1596_v54 = vand.u32 4294901760, %v1545_v28 }
 0x1cd   :  { %6815 = vst [vmem:[#allocation56_spill] sm:$0xff] %v5618_v5  ;;  %v4544_v44 = vpack.c.bf16 %v1931_v20, %v1924_v57  ;;  %4523 = vmatprep.subr.bf16.mxu0 %v5618_v5  ;;  %v5631_v14 = vsub.f32 %v1544_v21, %v1593_v34  ;;  %v6564_v62 = vand.u32 4294901760, %v5567_v0  ;;  %v6562_v8 = vand.u32 4294901760, %v5569_v16 }
 0x1ce   :  { %v2050_v33 = vand.u32 4294901760, %v2049_v17  ;;  %v2057_v37 = vand.u32 4294901760, %v2056_v51  ;;  %v5635_v26 = vpack.c.bf16 %v1596_v54, %v1593_v34  ;;  %v5637_v50 = vsub.f32 %v1545_v28, %v1596_v54 }
 0x1cf   :  { %4545 = vmatpush3.bf16.msra.mxu1 %v4544_v44  ;;  %v1937_v58 = vsub.f32 %v5567_v0, %v6564_v62  ;;  %v1944_v36 = vsub.f32 %v5569_v16, %v6562_v8  ;;  %v1647_v21 = vand.u32 4294901760, %v1562_v29  ;;  %v1650_v6 = vand.u32 4294901760, %v1563_v19  ;;  %v1549_v62 = vld [vmem:[#allocation11 + $0x68] sm:$0xff] }
 0x1d0   :  { %6816 = vst [vmem:[#allocation57_spill] sm:$0xff] %v5635_v26  ;;  %v4546_v1 = vpack.c.bf16 %v2057_v37, %v2050_v33  ;;  %4525 = vmatpush3.bf16.msra.mxu0 %v5635_v26  ;;  %v6561_v30 = vand.u32 4294901760, %v5587_v4  ;;  %v6563_v23 = vand.u32 4294901760, %v5591_v24  ;;  %v1599_v28 = vand.u32 4294901760, %v1546_v63  ;;  %v1564_v33 = vld [vmem:[#allocation11 + $0xe0] sm:$0xff]  ;;  %v1565_v37 = vld [vmem:[#allocation11 + $0xe8] sm:$0xff] }
 0x1d1   :  { %v1938_v7 = vand.u32 4294901760, %v1937_v58  ;;  %v1945_v34 = vand.u32 4294901760, %v1944_v36  ;;  %v5648_v57 = vpack.c.bf16 %v1650_v6, %v1647_v21  ;;  %v5650_v20 = vsub.f32 %v1562_v29, %v1647_v21  ;;  %v1548_v21 = vld [vmem:[#allocation11 + $0x60] sm:$0xff] }
 0x1d2   :  { %4547 = vmatprep.subr.bf16.mxu1 %v4546_v1  ;;  %v5652_v17 = vsub.f32 %v1563_v19, %v1650_v6  ;;  %v2063_v51 = vsub.f32 %v5587_v4, %v6561_v30  ;;  %v2070_v54 = vsub.f32 %v5591_v24, %v6563_v23  ;;  %v1602_v44 = vand.u32 4294901760, %v1547_v32 }
 0x1d3   :  { %6817 = vst [vmem:[#allocation58_spill] sm:$0xff] %v5648_v57  ;;  %v4548_v58 = vpack.c.bf16 %v1945_v34, %v1938_v7  ;;  %4527 = vmatprep.subr.bf16.mxu0 %v5648_v57  ;;  %v5661_v36 = vsub.f32 %v1546_v63, %v1599_v28  ;;  %v6566_v29 = vand.u32 4294901760, %v5605_v41  ;;  %v6568_v19 = vand.u32 4294901760, %v5607_v38 }
 0x1d4   :  { %v2064_v6 = vand.u32 4294901760, %v2063_v51  ;;  %v2071_v1 = vand.u32 4294901760, %v2070_v54  ;;  %v5665_v30 = vpack.c.bf16 %v1602_v44, %v1599_v28  ;;  %v5667_v8 = vsub.f32 %v1547_v32, %v1602_v44 }
 0x1d5   :  { %4549 = vmatpush3.bf16.msra.mxu1 %v4548_v58  ;;  %v1951_v7 = vsub.f32 %v5605_v41, %v6566_v29  ;;  %v1958_v63 = vsub.f32 %v5607_v38, %v6568_v19  ;;  %v1653_v34 = vand.u32 4294901760, %v1564_v33  ;;  %v1656_v23 = vand.u32 4294901760, %v1565_v37 }
 0x1d6   :  { %6818 = vst [vmem:[#allocation59_spill] sm:$0xff] %v5665_v30  ;;  %v4550_v60 = vpack.c.bf16 %v2071_v1, %v2064_v6  ;;  %4529 = vmatpush3.bf16.msra.mxu0 %v5665_v30  ;;  %v6577_v28 = vand.u32 4294901760, %v5620_v18  ;;  %v6575_v32 = vand.u32 4294901760, %v5622_v40  ;;  %v1605_v51 = vand.u32 4294901760, %v1548_v21 }
 0x1d7   :  { %v1952_v54 = vand.u32 4294901760, %v1951_v7  ;;  %v1959_v44 = vand.u32 4294901760, %v1958_v63  ;;  %v5678_v58 = vpack.c.bf16 %v1656_v23, %v1653_v34  ;;  %v5680_v29 = vsub.f32 %v1564_v33, %v1653_v34  ;;  %v1550_v33 = vld [vmem:[#allocation11 + $0x70] sm:$0xff] }
 0x1d8   :  { %4551 = vmatprep.subr.bf16.mxu1 %v4550_v60  ;;  %v5682_v3 = vsub.f32 %v1565_v37, %v1656_v23  ;;  %v2077_v6 = vsub.f32 %v5620_v18, %v6577_v28  ;;  %v2084_v1 = vsub.f32 %v5622_v40, %v6575_v32  ;;  %v1608_v19 = vand.u32 4294901760, %v1549_v62 }
 0x1d9   :  { %6819 = vst [vmem:[#allocation60_spill] sm:$0xff] %v5678_v58  ;;  %v4552_v7 = vpack.c.bf16 %v1959_v44, %v1952_v54  ;;  %4531 = vmatprep.subr.bf16.mxu0 %v5678_v58  ;;  %v5691_v63 = vsub.f32 %v1548_v21, %v1605_v51  ;;  %v6576_v60 = vand.u32 4294901760, %v5631_v14  ;;  %v6578_v23 = vand.u32 4294901760, %v5637_v50 }
 0x1da   :  { %6820 = vst [vmem:[#allocation61_spill] sm:$0xff] %v5682_v3  ;;  %v2078_v37 = vand.u32 4294901760, %v2077_v6  ;;  %v2085_v34 = vand.u32 4294901760, %v2084_v1  ;;  %v5695_v13 = vpack.c.bf16 %v1608_v19, %v1605_v51  ;;  %v5697_v47 = vsub.f32 %v1549_v62, %v1608_v19 }
 0x1db   :  { %6821 = vst [vmem:[#allocation62_spill] sm:$0xff] %v5691_v63  ;;  %4553 = vmatpush3.bf16.msra.mxu1 %v4552_v7  ;;  %v1965_v54 = vsub.f32 %v5631_v14, %v6576_v60  ;;  %v1972_v21 = vsub.f32 %v5637_v50, %v6578_v23  ;;  %v1659_v44 = vand.u32 4294901760, %v1566_v39  ;;  %v1662_v49 = vand.u32 4294901760, %v1567_v25 }
 0x1dc   :  { %6822 = vst [vmem:[#allocation63_spill] sm:$0xff] %v5695_v13  ;;  %6823 = vst [vmem:[#allocation64_spill] sm:$0xff] %v5697_v47  ;;  %v4554_v32 = vpack.c.bf16 %v2085_v34, %v2078_v37  ;;  %4533 = vmatpush3.bf16.msra.mxu0 %v5695_v13  ;;  %v6581_v51 = vand.u32 4294901760, %v5650_v20  ;;  %v6582_v62 = vand.u32 4294901760, %v5652_v17  ;;  %v1611_v19 = vand.u32 4294901760, %v1550_v33 }
 0x1dd   :  { %v1966_v6 = vand.u32 4294901760, %v1965_v54  ;;  %v1973_v1 = vand.u32 4294901760, %v1972_v21  ;;  %v5708_v7 = vpack.c.bf16 %v1662_v49, %v1659_v44  ;;  %v5710_v60 = vsub.f32 %v1566_v39, %v1659_v44 }
 0x1de   :  { %4555 = vmatprep.subr.bf16.mxu1 %v4554_v32  ;;  %v5712_v28 = vsub.f32 %v1567_v25, %v1662_v49  ;;  %v2091_v37 = vsub.f32 %v5650_v20, %v6581_v51  ;;  %v2098_v34 = vsub.f32 %v5652_v17, %v6582_v62  ;;  %v1614_v23 = vand.u32 4294901760, %v1551_v11 }
 0x1df   :  { %6824 = vst [vmem:[#allocation65_spill] sm:$0xff] %v5708_v7  ;;  %v4556_v54 = vpack.c.bf16 %v1973_v1, %v1966_v6  ;;  %4535 = vmatprep.subr.bf16.mxu0 %v5708_v7  ;;  %v5721_v21 = vsub.f32 %v1550_v33, %v1611_v19  ;;  %v6585_v39 = vand.u32 4294901760, %v5661_v36  ;;  %v6586_v49 = vand.u32 4294901760, %v5667_v8 }
 0x1e0   :  { %v2092_v25 = vand.u32 4294901760, %v2091_v37  ;;  %v2099_v32 = vand.u32 4294901760, %v2098_v34  ;;  %v5725_v44 = vpack.c.bf16 %v1614_v23, %v1611_v19  ;;  %v5727_v51 = vsub.f32 %v1551_v11, %v1614_v23  ;;  %v1507_v37 = vld [vmem:[#allocation2 + $0x18] sm:$0xff] }
 0x1e1   :  { %6825 = vst [vmem:[#allocation66_spill] sm:$0xff] %v5721_v21  ;;  %4557 = vmatpush3.bf16.msra.mxu1 %v4556_v54  ;;  %v1979_v62 = vsub.f32 %v5661_v36, %v6585_v39  ;;  %v1986_v33 = vsub.f32 %v5667_v8, %v6586_v49  ;;  %v5735_v6 = vand.u32 4294901760, %v1505_v43  ;;  %v5737_v1 = vand.u32 4294901760, %v1504_v12 }
 0x1e2   :  { %6826 = vst [vmem:[#allocation67_spill] sm:$0xff] %v5725_v44  ;;  %v4558_v7 = vpack.c.bf16 %v2099_v32, %v2092_v25  ;;  %4537 = vmatpush3.bf16.msra.mxu0 %v5725_v44  ;;  %v6593_v19 = vand.u32 4294901760, %v5680_v29  ;;  %v6596_v11 = vand.u32 4294901760, %v5682_v3  ;;  %v6597_v23 = vand.u32 4294901760, %v5691_v63 }
 0x1e3   :  { %6827 = vst [vmem:[#allocation68_spill] sm:$0xff] %v5735_v6  ;;  %6828 = vst [vmem:[#allocation69_spill] sm:$0xff] %v5737_v1  ;;  %v1980_v34 = vand.u32 4294901760, %v1979_v62  ;;  %v1987_v54 = vand.u32 4294901760, %v1986_v33  ;;  %v5744_v39 = vsub.f32 %v1505_v43, %v5735_v6  ;;  %v5747_v49 = vsub.f32 %v1504_v12, %v5737_v1  ;;  %2130 = vmatprep.mubr.f32.mxu1 %v5735_v6  ;;  %v1506_v33 = vld [vmem:[#allocation2 + $0x10] sm:$0xff] }
 0x1e4   :  { %4559 = vmatprep.subr.bf16.mxu1 %v4558_v7  ;;  %v2105_v25 = vsub.f32 %v5680_v29, %v6593_v19  ;;  %v2112_v32 = vsub.f32 %v5682_v3, %v6596_v11  ;;  %v1993_v62 = vsub.f32 %v5691_v63, %v6597_v23  ;;  %v6600_v43 = vand.u32 4294901760, %v5697_v47 }
 0x1e5   :  { %6829 = vst [vmem:[#allocation70_spill] sm:$0xff] %v5744_v39  ;;  %6830 = vst [vmem:[#allocation71_spill] sm:$0xff] %v5747_v49  ;;  %v4560_v12 = vpack.c.bf16 %v1987_v54, %v1980_v34  ;;  %v6605_v44 = vand.u32 4294901760, %v5744_v39  ;;  %v6608_v7 = vand.u32 4294901760, %v5747_v49  ;;  %v5762_v6 = vand.u32 4294901760, %v1507_v37 }
 0x1e6   :  { %v2106_v13 = vand.u32 4294901760, %v2105_v25  ;;  %v2113_v19 = vand.u32 4294901760, %v2112_v32  ;;  %v1994_v58 = vand.u32 4294901760, %v1993_v62  ;;  %v2000_v11 = vsub.f32 %v5697_v47, %v6600_v43 }
 0x1e7   :  { %6831 = vst [vmem:[#allocation72_spill] sm:$0xff] %v5762_v6  ;;  %4561 = vmatpush3.bf16.msra.mxu1 %v4560_v12  ;;  %v1667_v23 = vsub.f32 %v5744_v39, %v6605_v44  ;;  %v1673_v34 = vsub.f32 %v5747_v49, %v6608_v7  ;;  %v5774_v54 = vsub.f32 %v1507_v37, %v5762_v6  ;;  %v5776_v63 = vand.u32 4294901760, %v1506_v33  ;;  %v1509_v39 = vld [vmem:[#allocation2 + $0x28] sm:$0xff] }
 0x1e8   :  { %v4562_v25 = vpack.c.bf16 %v2113_v19, %v2106_v13  ;;  %v2001_v32 = vand.u32 4294901760, %v2000_v11  ;;  %v6610_v62 = vand.u32 4294901760, %v5710_v60  ;;  %v6609_v43 = vand.u32 4294901760, %v5712_v28 }
 0x1e9   :  { %6832 = vst [vmem:[#allocation73_spill] sm:$0xff] %v5774_v54  ;;  %6833 = vst [vmem:[#allocation74_spill] sm:$0xff] %v5776_v63  ;;  %v1668_v12 = vand.u32 4294901760, %v1667_v23  ;;  %v1674_v47 = vand.u32 4294901760, %v1673_v34  ;;  %v6611_v3 = vand.u32 4294901760, %v5774_v54  ;;  %v5782_v44 = vsub.f32 %v1506_v33, %v5776_v63  ;;  %v1508_v34 = vld [vmem:[#allocation2 + $0x20] sm:$0xff] }
 0x1ea   :  { %4563 = vmatprep.subr.bf16.mxu1 %v4562_v25  ;;  %v4564_v7 = vpack.c.bf16 %v2001_v32, %v1994_v58  ;;  %v2119_v37 = vsub.f32 %v5710_v60, %v6610_v62  ;;  %v2126_v13 = vsub.f32 %v5712_v28, %v6609_v43  ;;  %v6616_v19 = vand.u32 4294901760, %v5721_v21  ;;  %v1511_v62 = vld [vmem:[#allocation2 + $0x38] sm:$0xff] }
 0x1eb   :  { %6834 = vst [vmem:[#allocation75_spill] sm:$0xff] %v5782_v44  ;;  %1669 = vmatprep.mubr.f32.mxu0 %v1668_v12  ;;  %v1682_v11 = vsub.f32 %v5774_v54, %v6611_v3  ;;  %v6621_v23 = vand.u32 4294901760, %v5782_v44  ;;  %v4570_v58 = vpack.c.bf16 %v5552_v9, %v5550_v31  ;;  %v5801_v43 = vand.u32 4294901760, %v1509_v39  ;;  %v1510_v3 = vld [vmem:[#allocation2 + $0x30] sm:$0xff] }
 0x1ec   :  { %1675 = vmatmul.mubr.f32.vlgmr.msra.gmra.mrb[0].mxu0 %v1674_v47  ;;  %4565 = vmatpush3.bf16.msra.mxu1 %v4564_v7  ;;  %v2120_v25 = vand.u32 4294901760, %v2119_v37  ;;  %v2127_v32 = vand.u32 4294901760, %v2126_v13  ;;  %v2007_v12 = vsub.f32 %v5721_v21, %v6616_v19  ;;  %v6836_v49 = vand.u32 4294901760, %v5727_v51  ;;  %v1513_v37 = vld [vmem:[#allocation2 + $0x48] sm:$0xff] }
 0x1ed   :  { %6835 = vst [vmem:[#allocation76_spill] sm:$0xff] %v5801_v43  ;;  %v1683_v54 = vand.u32 4294901760, %v1682_v11  ;;  %v1688_v33 = vsub.f32 %v5782_v44, %v6621_v23  ;;  %4571 = vmatprep.subr.bf16.mxu0 %v4570_v58  ;;  %v4572_v7 = vpack.c.bf16 %v5534_v52, %v5530_v55  ;;  %v5812_v9 = vsub.f32 %v1509_v39, %v5801_v43 }
 0x1ee   :  { %v2014_v47 = vsub.f32 %v5727_v51, %v6836_v49  ;;  %v4566_v13 = vpack.c.bf16 %v2127_v32, %v2120_v25  ;;  %v2008_v19 = vand.u32 4294901760, %v2007_v12  ;;  %v5814_v31 = vand.u32 4294901760, %v1508_v34  ;;  %v1512_v49 = vld [vmem:[#allocation2 + $0x40] sm:$0xff] }
 0x1ef   :  { %6837 = vst [vmem:[#allocation77_spill] sm:$0xff] %v5812_v9  ;;  %1684 = vmatprep.mubr.f32.mxu0 %v1683_v54  ;;  %v1689_v11 = vand.u32 4294901760, %v1688_v33  ;;  %4573 = vmatpush3.bf16.msra.mxu0 %v4572_v7  ;;  %v5816_v23 = vand.u32 4294901760, %v1511_v62  ;;  %v5818_v44 = vand.u32 4294901760, %v1510_v3  ;;  %v6627_v58 = vand.u32 4294901760, %v5812_v9  ;;  %v1515_v54 = vld [vmem:[#allocation2 + $0x58] sm:$0xff] }
 0x1f0   :  { %6838 = vst [vmem:[#allocation78_spill] sm:$0xff] %v5814_v31  ;;  %v2015_v21 = vand.u32 4294901760, %v2014_v47  ;;  %4567 = vmatprep.subr.bf16.mxu1 %v4566_v13  ;;  %v5822_v25 = vsub.f32 %v1508_v34, %v5814_v31  ;;  %v4574_v39 = vpack.c.bf16 %v5541_v2, %v5538_v53  ;;  %v5826_v32 = vand.u32 4294901760, %v1513_v37  ;;  %v1514_v33 = vld [vmem:[#allocation2 + $0x50] sm:$0xff] }
 0x1f1   :  { %6839 = vst [vmem:[#allocation79_spill] sm:$0xff] %v5816_v23  ;;  %6840 = vst [vmem:[#allocation80_spill] sm:$0xff] %v5818_v44  ;;  %1690 = vmatmul.mubr.f32.gmra.mrb[2].mxu0 %v1689_v11  ;;  %v5829_v47 = vsub.f32 %v1511_v62, %v5816_v23  ;;  %v5832_v7 = vsub.f32 %v1510_v3, %v5818_v44  ;;  %v4576_v13 = vpack.c.bf16 %v5547_v35, %v5545_v10 }
 0x1f2   :  { %6841 = vst [vmem:[#allocation81_spill] sm:$0xff] %v5822_v25  ;;  %6842 = vst [vmem:[#allocation82_spill] sm:$0xff] %v5826_v32  ;;  %v4568_v12 = vpack.c.bf16 %v2015_v21, %v2008_v19  ;;  %v1697_v34 = vsub.f32 %v5812_v9, %v6627_v58  ;;  %v6628_v2 = vand.u32 4294901760, %v5822_v25  ;;  %4575 = vmatprep.subr.bf16.mxu0 %v4574_v39  ;;  %v5843_v21 = vand.u32 4294901760, %v1512_v49 }
 0x1f3   :  { %6843 = vst [vmem:[#allocation83_spill] sm:$0xff] %v5829_v47  ;;  %6844 = vst [vmem:[#allocation84_spill] sm:$0xff] %v5832_v7  ;;  %v5841_v53 = vsub.f32 %v1513_v37, %v5826_v32  ;;  %v6633_v62 = vand.u32 4294901760, %v5829_v47  ;;  %v6634_v3 = vand.u32 4294901760, %v5832_v7  ;;  %4577 = vmatpush3.bf16.msra.mxu0 %v4576_v13  ;;  %v5847_v19 = vand.u32 4294901760, %v1515_v54 }
 0x1f4   :  { %6846 = vst [vmem:[#allocation86_spill] sm:$0xff] %v5843_v21  ;;  %4569 = vmatpush3.bf16.msra.mxu1 %v4568_v12  ;;  %v5849_v11 = vand.u32 4294901760, %v1514_v33  ;;  %v1698_v35 = vand.u32 4294901760, %v1697_v34  ;;  %v1703_v39 = vsub.f32 %v5822_v25, %v6628_v2  ;;  %v5857_v12 = vsub.f32 %v1512_v49, %v5843_v21  ;;  %v1517_v25 = vld [vmem:[#allocation2 + $0x68] sm:$0xff] }
 0x1f5   :  { %6845 = vst [vmem:[#allocation85_spill] sm:$0xff] %v5841_v53  ;;  %6847 = vst [vmem:[#allocation87_spill] sm:$0xff] %v5847_v19  ;;  %4603 = vmatprep.subr.bf16.mxu1 %v5528_v15  ;;  %v1712_v13 = vsub.f32 %v5829_v47, %v6633_v62  ;;  %v1718_v58 = vsub.f32 %v5832_v7, %v6634_v3  ;;  %v5866_v34 = vsub.f32 %v1515_v54, %v5847_v19  ;;  %v1516_v7 = vld [vmem:[#allocation2 + $0x60] sm:$0xff]  ;;  %v1519_v54 = vld [vmem:[#allocation2 + $0x78] sm:$0xff] }
 0x1f6   :  { %6848 = vst [vmem:[#allocation88_spill] sm:$0xff] %v5849_v11  ;;  %6849 = vst [vmem:[#allocation89_spill] sm:$0xff] %v5857_v12  ;;  %v5869_v2 = vsub.f32 %v1514_v33, %v5849_v11  ;;  %1699 = vmatprep.mubr.f32.mxu0 %v1698_v35  ;;  %v1704_v37 = vand.u32 4294901760, %v1703_v39  ;;  %v6852_v49 = vand.u32 4294901760, %v5841_v53  ;;  %v6646_v62 = vand.u32 4294901760, %v5857_v12 }
 0x1f7   :  { %6850 = vst [vmem:[#allocation90_spill] sm:$0xff] %v5866_v34  ;;  %2132 = vmatmul.mubr.f32.vlgmr.msra.gmra.mrb[0].mxu1 %v5737_v1  ;;  %v4578_v3 = vpack.c.bf16 %v5561_v48, %v5559_v45  ;;  %v1713_v33 = vand.u32 4294901760, %v1712_v13  ;;  %v6650_v35 = vand.u32 4294901760, %v5866_v34  ;;  %v1518_v1 = vld [vmem:[#allocation2 + $0x70] sm:$0xff]  ;;  %v1719_v47 = vand.u32 4294901760, %v1718_v58 }
 0x1f8   :  { %6851 = vst [vmem:[#allocation91_spill] sm:$0xff] %v5869_v2  ;;  %v1727_v9 = vsub.f32 %v5841_v53, %v6852_v49  ;;  %4605 = vmatpush3.bf16.msra.mxu1 %v5532_v42  ;;  %2137 = vmatprep.mubr.f32.mxu1 %v5762_v6  ;;  %v1733_v49 = vsub.f32 %v5857_v12, %v6646_v62  ;;  %v5886_v53 = vand.u32 4294901760, %v1517_v25  ;;  %v5895_v58 = vand.u32 4294901760, %v1519_v54  ;;  %v1521_v42 = vld [vmem:[#allocation2 + $0x88] sm:$0xff] }
 0x1f9   :  { %1705 = vmatmul.mubr.f32.gmra.mrb[4].mxu0 %v1704_v37  ;;  %4607 = vmatprep.subr.bf16.mxu1 %v5536_v27  ;;  %v4580_v13 = vpack.c.bf16 %v5569_v16, %v5567_v0  ;;  %v1742_v39 = vsub.f32 %v5866_v34, %v6650_v35  ;;  %v5893_v37 = vand.u32 4294901760, %v1516_v7  ;;  %v6856_v62 = vand.u32 4294901760, %v5869_v2  ;;  %v1523_v35 = vld [vmem:[#allocation2 + $0x98] sm:$0xff] }
 0x1fa   :  { %6853 = vst [vmem:[#allocation92_spill] sm:$0xff] %v5886_v53  ;;  %1714 = vmatprep.mubr.f32.mxu0 %v1713_v33  ;;  %v1728_v6 = vand.u32 4294901760, %v1727_v9  ;;  %4579 = vmatprep.subr.bf16.mxu0 %v4578_v3  ;;  %6855 = vst [vmem:[#allocation94_spill] sm:$0xff] %v5895_v58  ;;  %v5902_v27 = vsub.f32 %v1517_v25, %v5886_v53  ;;  %v5904_v9 = vand.u32 4294901760, %v1518_v1  ;;  %v1520_v33 = vld [vmem:[#allocation2 + $0x80] sm:$0xff]  ;;  %v1734_v34 = vand.u32 4294901760, %v1733_v49 }
 0x1fb   :  { %6854 = vst [vmem:[#allocation93_spill] sm:$0xff] %v5893_v37  ;;  %2139 = vmatmul.mubr.f32.gmra.mrb[2].mxu1 %v5776_v63  ;;  %v1748_v12 = vsub.f32 %v5869_v2, %v6856_v62  ;;  %4581 = vmatpush3.bf16.msra.mxu0 %v4580_v13  ;;  %v4582_v3 = vpack.c.bf16 %v5591_v24, %v5587_v4  ;;  %v1743_v63 = vand.u32 4294901760, %v1742_v39  ;;  %v5921_v2 = vand.u32 4294901760, %v1521_v42  ;;  %v1522_v39 = vld [vmem:[#allocation2 + $0x90] sm:$0xff] }
 0x1fc   :  { %6857 = vst [vmem:[#allocation95_spill] sm:$0xff] %v5902_v27  ;;  %6858 = vst [vmem:[#allocation96_spill] sm:$0xff] %v5904_v9  ;;  %2144 = vmatprep.mubr.f32.mxu1 %v5801_v43  ;;  %4609 = vmatpush3.bf16.msra.mxu1 %v5543_v22  ;;  %v5911_v16 = vsub.f32 %v1516_v7, %v5893_v37  ;;  %v5914_v25 = vsub.f32 %v1519_v54, %v5895_v58  ;;  %v5929_v62 = vand.u32 4294901760, %v1523_v35  ;;  %v1525_v43 = vld [vmem:[#allocation2 + $0xa8] sm:$0xff]  ;;  %v1534_v4 = vld [vmem:[#allocation2 + $0xf0] sm:$0xff] }
 0x1fd   :  { %1720 = vmatmul.mubr.f32.gmra.mrb[6].mxu0 %v1719_v47  ;;  %4611 = vmatprep.subr.bf16.mxu1 %v5557_v61  ;;  %v5919_v13 = vsub.f32 %v1518_v1, %v5904_v9  ;;  %6862 = vst [vmem:[#allocation100_spill] sm:$0xff] %v5921_v2  ;;  %v4584_v49 = vpack.c.bf16 %v5607_v38, %v5605_v41  ;;  %v5927_v47 = vand.u32 4294901760, %v1520_v33  ;;  %v6863_v1 = vand.u32 4294901760, %v5902_v27 }
 0x1fe   :  { %6859 = vst [vmem:[#allocation97_spill] sm:$0xff] %v5911_v16  ;;  %6860 = vst [vmem:[#allocation98_spill] sm:$0xff] %v5914_v25  ;;  %1729 = vmatprep.mubr.f32.mxu0 %v1728_v6  ;;  %4583 = vmatprep.subr.bf16.mxu0 %v4582_v3  ;;  %v5936_v22 = vsub.f32 %v1521_v42, %v5921_v2  ;;  %v5944_v54 = vand.u32 4294901760, %v1522_v39  ;;  %v1749_v7 = vand.u32 4294901760, %v1748_v12  ;;  %v5950_v42 = vand.u32 4294901760, %v1525_v43  ;;  %v1524_v12 = vld [vmem:[#allocation2 + $0xa0] sm:$0xff] }
 0x1ff   :  { %6861 = vst [vmem:[#allocation99_spill] sm:$0xff] %v5919_v13  ;;  %2146 = vmatmul.mubr.f32.gmra.mrb[4].mxu1 %v5814_v31  ;;  %v1757_v61 = vsub.f32 %v5902_v27, %v6863_v1  ;;  %4585 = vmatpush3.bf16.msra.mxu0 %v4584_v49  ;;  %v5942_v3 = vsub.f32 %v1520_v33, %v5927_v47  ;;  %v6866_v31 = vand.u32 4294901760, %v5911_v16 }
 0x200   :  { %6864 = vst [vmem:[#allocation101_spill] sm:$0xff] %v5936_v22  ;;  %2151 = vmatprep.mubr.f32.mxu1 %v5816_v23  ;;  %4613 = vmatpush3.bf16.msra.mxu1 %v5565_v59  ;;  %v6867_v23 = vand.u32 4294901760, %v5914_v25  ;;  %v5957_v27 = vsub.f32 %v1523_v35, %v5929_v62  ;;  %v5969_v35 = vsub.f32 %v1522_v39, %v5944_v54  ;;  %v6895_v59 = vld [vmem:[#allocation67_spill] sm:$0xff] }
 0x201   :  { %6865 = vst [vmem:[#allocation102_spill] sm:$0xff] %v5942_v3  ;;  %1735 = vmatmul.mubr.f32.gmra.mrb[8].mxu0 %v1734_v34  ;;  %v1763_v1 = vsub.f32 %v5911_v16, %v6866_v31  ;;  %4615 = vmatprep.subr.bf16.mxu1 %v5589_v56  ;;  %v1758_v49 = vand.u32 4294901760, %v1757_v61  ;;  %v1527_v34 = vld [vmem:[#allocation2 + $0xb8] sm:$0xff]  ;;  %v4586_v31 = vpack.c.bf16 %v5622_v40, %v5620_v18  ;;  %v1526_v16 = vld [vmem:[#allocation2 + $0xb0] sm:$0xff]  ;;  %v6869_v61 = vand.u32 4294901760, %v5919_v13 }
 0x202   :  { %1744 = vmatprep.mubr.f32.mxu0 %v1743_v63  ;;  %v1772_v6 = vsub.f32 %v5914_v25, %v6867_v23  ;;  %6868 = vst [vmem:[#allocation103_spill] sm:$0xff] %v5957_v27  ;;  %6870 = vst [vmem:[#allocation104_spill] sm:$0xff] %v5969_v35  ;;  %v4588_v33 = vpack.c.bf16 %v5637_v50, %v5631_v14  ;;  %v5974_v25 = vsub.f32 %v1525_v43, %v5950_v42 }
 0x203   :  { %2153 = vmatmul.mubr.f32.gmra.mrb[6].mxu1 %v5818_v44  ;;  %v1778_v63 = vsub.f32 %v5919_v13, %v6869_v61  ;;  %v1764_v44 = vand.u32 4294901760, %v1763_v1  ;;  %4587 = vmatprep.subr.bf16.mxu0 %v4586_v31  ;;  %v5978_v56 = vand.u32 4294901760, %v1527_v34  ;;  %v1529_v61 = vld [vmem:[#allocation2 + $0xc8] sm:$0xff]  ;;  %v6872_v13 = vand.u32 4294901760, %v5936_v22  ;;  %v1528_v1 = vld [vmem:[#allocation2 + $0xc0] sm:$0xff] }
 0x204   :  { %2158 = vmatprep.mubr.f32.mxu1 %v5826_v32  ;;  %4617 = vmatpush3.bf16.msra.mxu1 %v5603_v46  ;;  %6871 = vst [vmem:[#allocation105_spill] sm:$0xff] %v5974_v25  ;;  %v5976_v32 = vand.u32 4294901760, %v1524_v12  ;;  %v1773_v23 = vand.u32 4294901760, %v1772_v6  ;;  %v4590_v43 = vpack.c.bf16 %v5652_v17, %v5650_v20  ;;  %v1531_v46 = vld [vmem:[#allocation2 + $0xd8] sm:$0xff]  ;;  %v6876_v31 = vand.u32 4294901760, %v5957_v27 }
 0x205   :  { %1750 = vmatmul.mubr.f32.gmra.mrb[10].mxu0 %v1749_v7  ;;  %v1787_v39 = vsub.f32 %v5936_v22, %v6872_v13  ;;  %v5984_v7 = vand.u32 4294901760, %v1526_v16  ;;  %4619 = vmatprep.subr.bf16.mxu1 %v5618_v5  ;;  %v1779_v6 = vand.u32 4294901760, %v1778_v63  ;;  %v4592_v63 = vpack.c.bf16 %v5667_v8, %v5661_v36  ;;  %v6887_v5 = vld [vmem:[#allocation65_spill] sm:$0xff] }
 0x206   :  { %1759 = vmatprep.mubr.f32.mxu0 %v1758_v49  ;;  %4589 = vmatpush3.bf16.msra.mxu0 %v4588_v33  ;;  %v6873_v49 = vand.u32 4294901760, %v5942_v3  ;;  %v5996_v33 = vand.u32 4294901760, %v1529_v61  ;;  %v6000_v22 = vsub.f32 %v1524_v12, %v5976_v32  ;;  %v6017_v12 = vand.u32 4294901760, %v1531_v46 }
 0x207   :  { %2160 = vmatmul.mubr.f32.gmra.mrb[8].mxu1 %v5843_v21  ;;  %4591 = vmatprep.subr.bf16.mxu0 %v4590_v43  ;;  %v6013_v21 = vand.u32 4294901760, %v1528_v1 }
 0x208   :  { %2165 = vmatprep.mubr.f32.mxu1 %v5847_v19  ;;  %v1793_v13 = vsub.f32 %v5942_v3, %v6873_v49  ;;  %4621 = vmatpush3.bf16.msra.mxu1 %v5635_v26  ;;  %6874 = vst [vmem:[#allocation106_spill] sm:$0xff] %v6000_v22  ;;  %v6003_v19 = vsub.f32 %v1527_v34, %v5978_v56  ;;  %v1788_v49 = vand.u32 4294901760, %v1787_v39  ;;  %v1530_v39 = vld [vmem:[#allocation2 + $0xd0] sm:$0xff] }
 0x209   :  { %1765 = vmatmul.mubr.f32.gmra.mrb[12].mxu0 %v1764_v44  ;;  %v1802_v3 = vsub.f32 %v5957_v27, %v6876_v31  ;;  %v6011_v44 = vsub.f32 %v1526_v16, %v5984_v7  ;;  %4623 = vmatprep.subr.bf16.mxu1 %v5648_v57  ;;  %v6878_v16 = vld [vmem:[#allocation61_spill] sm:$0xff]  ;;  %v6879_v31 = vand.u32 4294901760, %v5969_v35  ;;  %v6884_v57 = vld [vmem:[#allocation63_spill] sm:$0xff] }
 0x20a   :  { %6875 = vst [vmem:[#allocation107_spill] sm:$0xff] %v6003_v19  ;;  %1774 = vmatprep.mubr.f32.mxu0 %v1773_v23  ;;  %4593 = vmatpush3.bf16.msra.mxu0 %v4592_v63  ;;  %v1794_v34 = vand.u32 4294901760, %v1793_v13  ;;  %v6021_v23 = vsub.f32 %v1529_v61, %v5996_v33  ;;  %v4594_v43 = vpack.c.bf16 %v6878_v16, %v5680_v29  ;;  %v6880_v63 = vand.u32 4294901760, %v5974_v25  ;;  %v1533_v13 = vld [vmem:[#allocation2 + $0xe8] sm:$0xff] }
 0x20b   :  { %6877 = vst [vmem:[#allocation108_spill] sm:$0xff] %v6011_v44  ;;  %2167 = vmatmul.mubr.f32.gmra.mrb[10].mxu1 %v5849_v11  ;;  %v1808_v11 = vsub.f32 %v5969_v35, %v6879_v31  ;;  %v6041_v31 = vsub.f32 %v1531_v46, %v6017_v12  ;;  %v6883_v61 = vld [vmem:[#allocation64_spill] sm:$0xff] }
 0x20c   :  { %2172 = vmatprep.mubr.f32.mxu1 %v5886_v53  ;;  %4625 = vmatpush3.bf16.msra.mxu1 %v5665_v30  ;;  %v1817_v27 = vsub.f32 %v5974_v25, %v6880_v63  ;;  %v6881_v53 = vld [vmem:[#allocation60_spill] sm:$0xff]  ;;  %v1803_v30 = vand.u32 4294901760, %v1802_v3  ;;  %v6043_v63 = vand.u32 4294901760, %v1530_v39  ;;  %v6882_v25 = vld [vmem:[#allocation62_spill] sm:$0xff] }
 0x20d   :  { %1780 = vmatmul.mubr.f32.gmra.mrb[14].mxu0 %v1779_v6  ;;  %4627 = vmatprep.subr.bf16.mxu1 %v6881_v53  ;;  %v6037_v6 = vsub.f32 %v1528_v1, %v6013_v21  ;;  %v4596_v35 = vpack.c.bf16 %v6883_v61, %v6882_v25  ;;  %v1809_v1 = vand.u32 4294901760, %v1808_v11  ;;  %v6886_v53 = vand.u32 4294901760, %v6003_v19 }
 0x20e   :  { %1789 = vmatprep.mubr.f32.mxu0 %v1788_v49  ;;  %4595 = vmatprep.subr.bf16.mxu0 %v4594_v43  ;;  %v1532_v49 = vld [vmem:[#allocation2 + $0xe0] sm:$0xff]  ;;  %v1818_v43 = vand.u32 4294901760, %v1817_v27  ;;  %v4598_v27 = vpack.c.bf16 %v5712_v28, %v5710_v60 }
 0x20f   :  { %2174 = vmatmul.mubr.f32.gmra.mrb[12].mxu1 %v5893_v37  ;;  %v6885_v37 = vand.u32 4294901760, %v6000_v22  ;;  %v1832_v26 = vsub.f32 %v6003_v19, %v6886_v53  ;;  %4597 = vmatpush3.bf16.msra.mxu0 %v4596_v35  ;;  %v6068_v53 = vsub.f32 %v1530_v39, %v6043_v63  ;;  %v6889_v19 = vld [vmem:[#allocation66_spill] sm:$0xff]  ;;  %v6890_v35 = vand.u32 4294901760, %v6021_v23 }
 0x210   :  { %2179 = vmatprep.mubr.f32.mxu1 %v5895_v58  ;;  %4629 = vmatpush3.bf16.msra.mxu1 %v6884_v57  ;;  %v6888_v58 = vand.u32 4294901760, %v6011_v44 }
 0x211   :  { %1795 = vmatmul.mubr.f32.gmra.mrb[16].mxu0 %v1794_v34  ;;  %v1823_v46 = vsub.f32 %v6000_v22, %v6885_v37  ;;  %4631 = vmatprep.subr.bf16.mxu1 %v6887_v5  ;;  %v6061_v34 = vand.u32 4294901760, %v1533_v13  ;;  %v1535_v37 = vld [vmem:[#allocation2 + $0xf8] sm:$0xff]  ;;  %v1847_v57 = vsub.f32 %v6021_v23, %v6890_v35  ;;  %v1833_v38 = vand.u32 4294901760, %v1832_v26 }
 0x212   :  { %1804 = vmatprep.mubr.f32.mxu0 %v1803_v30  ;;  %v1838_v3 = vsub.f32 %v6011_v44, %v6888_v58  ;;  %v6070_v30 = vand.u32 4294901760, %v1532_v49  ;;  %v4600_v58 = vpack.c.bf16 %v5727_v51, %v6889_v19  ;;  %4599 = vmatprep.subr.bf16.mxu0 %v4598_v27  ;;  %v6891_v44 = vld [vmem:[#allocation45_spill] sm:$0xff]  ;;  %v6893_v22 = vld [vmem:[#allocation46_spill] sm:$0xff]  ;;  %v1867_v26 = vand.u32 4294901760, %v6068_v53 }
 0x213   :  { %2181 = vmatmul.mubr.f32.gmra.mrb[14].mxu1 %v5904_v9  ;;  %v6892_v9 = vand.u32 4294901760, %v6891_v44  ;;  %v6894_v11 = vand.u32 4294901760, %v6893_v22  ;;  %v1824_v39 = vand.u32 4294901760, %v1823_v46  ;;  %v6084_v24 = vsub.f32 %v1533_v13, %v6061_v34 }
 0x214   :  { %2186 = vmatprep.mubr.f32.mxu1 %v5921_v2  ;;  %4633 = vmatpush3.bf16.msra.mxu1 %v6895_v59  ;;  %v1839_v41 = vand.u32 4294901760, %v1838_v3  ;;  %v6086_v2 = vand.u32 4294901760, %v1535_v37  ;;  %v6896_v44 = vand.u32 4294901760, %v6037_v6  ;;  %v6097_v3 = vsub.f32 %v1532_v49, %v6070_v30 }
 0x215   :  { %v4634_v5 = vpack.c.bf16 %v6894_v11, %v6892_v9  ;;  %1810 = vmatmul.mubr.f32.gmra.mrb[18].mxu0 %v1809_v1  ;;  %v6897_v9 = vand.u32 4294901760, %v6041_v31  ;;  %v1848_v13 = vand.u32 4294901760, %v1847_v57  ;;  %4667 = vmatprep.subr.bf16.mxu1 %v5528_v15  ;;  %v6899_v46 = vand.u32 4294901760, %v5622_v40 }
 0x216   :  { %1819 = vmatprep.mubr.f32.mxu0 %v1818_v43  ;;  %4601 = vmatpush3.bf16.msra.mxu0 %v4600_v58  ;;  %v1853_v22 = vsub.f32 %v6037_v6, %v6896_v44  ;;  %v6898_v43 = vand.u32 4294901760, %v5620_v18  ;;  %v6900_v11 = vand.u32 4294901760, %v5631_v14  ;;  %v6901_v58 = vand.u32 4294901760, %v5637_v50 }
 0x217   :  { %2188 = vmatmul.mubr.f32.gmra.mrb[16].mxu1 %v5927_v47  ;;  %v1862_v1 = vsub.f32 %v6041_v31, %v6897_v9  ;;  %4635 = vmatprep.subr.bf16.mxu0 %v4634_v5  ;;  %v6902_v49 = vand.u32 4294901760, %v5650_v20  ;;  %v6903_v5 = vand.u32 4294901760, %v5652_v17  ;;  %v6119_v15 = vand.u32 4294901760, %v1534_v4 }
 0x218   :  { %2193 = vmatprep.mubr.f32.mxu1 %v5929_v62  ;;  %v6105_v27 = vpack.c.bf16 %v6899_v46, %v6898_v43  ;;  %v6111_v35 = vpack.c.bf16 %v6901_v58, %v6900_v11  ;;  %v6904_v18 = vand.u32 4294901760, %v5661_v36  ;;  %v6905_v40 = vand.u32 4294901760, %v5667_v8 }
 0x219   :  { %v6117_v44 = vpack.c.bf16 %v6903_v5, %v6902_v49  ;;  %1825 = vmatmul.mubr.f32.gmra.mrb[20].mxu0 %v1824_v39  ;;  %v6906_v14 = vand.u32 4294901760, %v5680_v29  ;;  %v6907_v50 = vand.u32 4294901760, %v6878_v16  ;;  %v6908_v20 = vand.u32 4294901760, %v6882_v25 }
 0x21a   :  { %v6125_v57 = vpack.c.bf16 %v6905_v40, %v6904_v18  ;;  %v6909_v17 = vand.u32 4294901760, %v6883_v61  ;;  %1834 = vmatprep.mubr.f32.mxu0 %v1833_v38  ;;  %v1876_v39 = vand.u32 4294901760, %v6084_v24  ;;  %v6141_v36 = vsub.f32 %v1535_v37, %v6086_v2  ;;  %v6914_v40 = vld [vmem:[#allocation70_spill] sm:$0xff] }
 0x21b   :  { %v6131_v9 = vpack.c.bf16 %v6907_v50, %v6906_v14  ;;  %v6910_v8 = vand.u32 4294901760, %v5710_v60  ;;  %v6911_v29 = vand.u32 4294901760, %v5712_v28  ;;  %v6912_v16 = vand.u32 4294901760, %v6889_v19  ;;  %2195 = vmatmul.mubr.f32.gmra.mrb[18].mxu1 %v5944_v54 }
 0x21c   :  { %v6137_v43 = vpack.c.bf16 %v6909_v17, %v6908_v20  ;;  %v6913_v25 = vand.u32 4294901760, %v5727_v51  ;;  %2200 = vmatprep.mubr.f32.mxu1 %v5950_v42  ;;  %v1854_v38 = vand.u32 4294901760, %v1853_v22  ;;  %v1868_v60 = vsub.f32 %v6068_v53, %v1867_v26  ;;  %v6917_v17 = vld [vmem:[#allocation41_spill] sm:$0xff] }
 0x21d   :  { %v6147_v46 = vpack.c.bf16 %v6911_v29, %v6910_v8  ;;  %1840 = vmatmul.mubr.f32.gmra.mrb[22].mxu0 %v1839_v41  ;;  %v1882_v28 = vand.u32 4294901760, %v6097_v3  ;;  %v6162_v61 = vsub.f32 %v1534_v4, %v6119_v15  ;;  %v1863_v19 = vand.u32 4294901760, %v1862_v1  ;;  %v6919_v29 = vld [vmem:[#allocation42_spill] sm:$0xff] }
 0x21e   :  { %v6153_v11 = vpack.c.bf16 %v6913_v25, %v6912_v16  ;;  %1849 = vmatprep.mubr.f32.mxu0 %v1848_v13  ;;  %v1877_v51 = vsub.f32 %v6084_v24, %v1876_v39  ;;  %v1891_v37 = vand.u32 4294901760, %v6141_v36  ;;  %v1869_v41 = vand.u32 4294901760, %v1868_v60  ;;  %v6922_v60 = vld [vmem:[#allocation73_spill] sm:$0xff] }
 0x21f   :  { %2202 = vmatmul.mubr.f32.gmra.mrb[20].mxu1 %v5976_v32  ;;  %v1883_v22 = vsub.f32 %v6097_v3, %v1882_v28  ;;  %v1897_v4 = vand.u32 4294901760, %v6162_v61  ;;  %v6915_v14 = vand.u32 4294901760, %v5530_v55  ;;  %v6916_v50 = vand.u32 4294901760, %v5534_v52  ;;  %v6924_v55 = vld [vmem:[#allocation44_spill] sm:$0xff] }
 0x220   :  { %2207 = vmatprep.mubr.f32.mxu1 %v5978_v56  ;;  %v1878_v1 = vand.u32 4294901760, %v1877_v51  ;;  %v1892_v13 = vsub.f32 %v6141_v36, %v1891_v37  ;;  %v6918_v8 = vand.u32 4294901760, %v6917_v17  ;;  %v6920_v16 = vand.u32 4294901760, %v6919_v29 }
 0x221   :  { %1855 = vmatmul.mubr.f32.gmra.mrb[24].mxu0 %v1854_v38  ;;  %v1884_v58 = vand.u32 4294901760, %v1883_v22  ;;  %v1898_v49 = vsub.f32 %v6162_v61, %v1897_v4  ;;  %v4636_v20 = vpack.c.bf16 %v6916_v50, %v6915_v14  ;;  %v6921_v38 = vld [vmem:[#allocation71_spill] sm:$0xff]  ;;  %v6925_v51 = vand.u32 4294901760, %v6924_v55 }
 0x222   :  { %1864 = vmatprep.mubr.f32.mxu0 %v1863_v19  ;;  %v1893_v5 = vand.u32 4294901760, %v1892_v13  ;;  %v4638_v25 = vpack.c.bf16 %v6920_v16, %v6918_v8  ;;  %v6923_v19 = vand.u32 4294901760, %v5545_v10  ;;  %v6927_v22 = vand.u32 4294901760, %v5561_v48  ;;  %v6939_v8 = vld [vmem:[#allocation39_spill] sm:$0xff]  ;;  %v6941_v16 = vld [vmem:[#allocation81_spill] sm:$0xff] }
 0x223   :  { %2209 = vmatmul.mubr.f32.gmra.mrb[22].mxu1 %v5984_v7  ;;  %v1899_v18 = vand.u32 4294901760, %v1898_v49  ;;  %v6928_v13 = vand.u32 4294901760, %v6914_v40  ;;  %v6930_v49 = vld [vmem:[#allocation77_spill] sm:$0xff]  ;;  %v6931_v10 = vand.u32 4294901760, %v5567_v0  ;;  %v6934_v50 = vand.u32 4294901760, %v6921_v38  ;;  %v6942_v0 = vld [vmem:[#allocation40_spill] sm:$0xff] }
 0x224   :  { %2214 = vmatprep.mubr.f32.mxu1 %v5996_v33  ;;  %v4640_v52 = vpack.c.bf16 %v6925_v51, %v6923_v19  ;;  %v6940_v29 = vand.u32 4294901760, %v6922_v60  ;;  %v6946_v55 = vld [vmem:[#allocation55_spill] sm:$0xff] }
 0x225   :  { %1870 = vmatmul.mubr.f32.gmra.mrb[26].mxu0 %v1869_v41  ;;  %v6926_v41 = vand.u32 4294901760, %v5559_v45  ;;  %v6935_v45 = vld [vmem:[#allocation50_spill] sm:$0xff]  ;;  %v6947_v51 = vand.u32 4294901760, %v6946_v55  ;;  %v6977_v55 = vld [vmem:[#allocation101_spill] sm:$0xff] }
 0x226   :  { %1879 = vmatprep.mubr.f32.mxu0 %v1878_v1  ;;  %v6936_v48 = vand.u32 4294901760, %v6935_v45 }
 0x227   :  { %2216 = vmatmul.mubr.f32.gmra.mrb[24].mxu1 %v6013_v21  ;;  %v4642_v1 = vpack.c.bf16 %v6927_v22, %v6926_v41  ;;  %v6949_v22 = vand.u32 4294901760, %v6930_v49 }
 0x228   :  { %2221 = vmatprep.mubr.f32.mxu1 %v6017_v12 }
 0x229   :  { %1885 = vmatmul.mubr.f32.gmra.mrb[28].mxu0 %v1884_v58  ;;  %v6929_v58 = vld [vmem:[#allocation75_spill] sm:$0xff] }
 0x22a   :  { %1894 = vmatprep.mubr.f32.mxu0 %v1893_v5  ;;  %v6932_v5 = vld [vmem:[#allocation49_spill] sm:$0xff]  ;;  %v6948_v41 = vand.u32 4294901760, %v6929_v58 }
 0x22b   :  { %2223 = vmatmul.mubr.f32.gmra.mrb[26].mxu1 %v6043_v63 }
 0x22c   :  { %2228 = vmatprep.mubr.f32.mxu1 %v6061_v34 }
 0x22d   :  { %1900 = vmatmul.mubr.f32.gmra.mrb[30].mxu0 %v1899_v18  ;;  %v6933_v18 = vand.u32 4294901760, %v6932_v5  ;;  %v6954_v5 = vand.u32 4294901760, %v6941_v16 }
 0x22e   :  { %2372 = vmatprep.mubr.f32.mxu0 %v6914_v40 }
 0x22f   :  { %2230 = vmatmul.mubr.f32.gmra.mrb[28].mxu1 %v6070_v30  ;;  %v4644_v14 = vpack.c.bf16 %v6933_v18, %v6931_v10  ;;  %v6953_v10 = vld [vmem:[#allocation85_spill] sm:$0xff]  ;;  %v6956_v18 = vld [vmem:[#allocation48_spill] sm:$0xff] }
 0x230   :  { %2235 = vmatprep.mubr.f32.mxu1 %v6086_v2 }
 0x231   :  { %2375 = vmatmul.mubr.f32.vlgmr.msra.gmra.mrb[32].mxu0 %v6921_v38  ;;  %v6944_v38 = vld [vmem:[#allocation54_spill] sm:$0xff] }
 0x232   :  { %2381 = vmatprep.mubr.f32.mxu0 %v6922_v60  ;;  %4637 = vmatpush3.bf16.msra.mxu0 %v4636_v20  ;;  %v6937_v20 = vld [vmem:[#allocation52_spill] sm:$0xff]  ;;  %v6945_v19 = vand.u32 4294901760, %v6944_v38  ;;  %v6950_v60 = vld [vmem:[#allocation43_spill] sm:$0xff] }
 0x233   :  { %2237 = vmatmul.mubr.f32.gmra.mrb[30].mxu1 %v6119_v15  ;;  %4639 = vmatprep.subr.bf16.mxu0 %v4638_v25  ;;  %v6938_v17 = vand.u32 4294901760, %v6937_v20  ;;  %v6943_v25 = vld [vmem:[#allocation83_spill] sm:$0xff] }
 0x234   :  { %2614 = vmatprep.mubr.f32.mxu1 %v6928_v13  ;;  %v6952_v13 = vld [vmem:[#allocation47_spill] sm:$0xff] }
 0x235   :  { %2384 = vmatmul.mubr.f32.gmra.mrb[34].mxu0 %v6929_v58  ;;  %v4646_v40 = vpack.c.bf16 %v6938_v17, %v6936_v48  ;;  %v6955_v58 = vand.u32 4294901760, %v6943_v25  ;;  %v6962_v48 = vld [vmem:[#allocation53_spill] sm:$0xff]  ;;  %v6963_v20 = vld [vmem:[#allocation91_spill] sm:$0xff]  ;;  %v6964_v17 = vld [vmem:[#allocation56_spill] sm:$0xff] }
 0x236   :  { %2390 = vmatprep.mubr.f32.mxu0 %v6930_v49  ;;  %4641 = vmatpush3.bf16.msra.mxu0 %v4640_v52  ;;  %v4648_v52 = vpack.c.bf16 %v6947_v51, %v6945_v19  ;;  %v6957_v49 = vld [vmem:[#allocation89_spill] sm:$0xff]  ;;  %v6975_v38 = vld [vmem:[#allocation99_spill] sm:$0xff]  ;;  %v6976_v19 = vld [vmem:[#allocation60_spill] sm:$0xff] }
 0x237   :  { %2618 = vmatmul.mubr.f32.vlgmr.msra.gmra.mrb[32].mxu1 %v6934_v50  ;;  %4643 = vmatprep.subr.bf16.mxu0 %v4642_v1  ;;  %v6951_v1 = vld [vmem:[#allocation84_spill] sm:$0xff]  ;;  %v6959_v50 = vld [vmem:[#allocation90_spill] sm:$0xff] }
 0x238   :  { %4669 = vmatpush3.bf16.msra.mxu1 %v6939_v8  ;;  %2625 = vmatprep.mubr.f32.mxu1 %v6940_v29  ;;  %v6960_v45 = vand.u32 4294901760, %v6951_v1  ;;  %v6968_v8 = vld [vmem:[#allocation57_spill] sm:$0xff] }
 0x239   :  { %2393 = vmatmul.mubr.f32.gmra.mrb[36].mxu0 %v6941_v16  ;;  %4671 = vmatprep.subr.bf16.mxu1 %v6942_v0  ;;  %v6969_v29 = vld [vmem:[#allocation97_spill] sm:$0xff]  ;;  %v6970_v16 = vld [vmem:[#allocation58_spill] sm:$0xff] }
 0x23a   :  { %2399 = vmatprep.mubr.f32.mxu0 %v6943_v25  ;;  %4645 = vmatpush3.bf16.msra.mxu0 %v4644_v14  ;;  %v6958_v14 = vld [vmem:[#allocation51_spill] sm:$0xff]  ;;  %v6971_v0 = vld [vmem:[#allocation98_spill] sm:$0xff] }
 0x23b   :  { %2629 = vmatmul.mubr.f32.gmra.mrb[34].mxu1 %v6948_v41  ;;  %4647 = vmatprep.subr.bf16.mxu0 %v4646_v40  ;;  %v6965_v40 = vld [vmem:[#allocation95_spill] sm:$0xff]  ;;  %v6979_v51 = vand.u32 4294901760, %v6971_v0  ;;  %v6982_v41 = vld [vmem:[#allocation65_spill] sm:$0xff] }
 0x23c   :  { %2636 = vmatprep.mubr.f32.mxu1 %v6949_v22  ;;  %4673 = vmatpush3.bf16.msra.mxu1 %v6950_v60  ;;  %v6974_v25 = vld [vmem:[#allocation59_spill] sm:$0xff]  ;;  %v6984_v60 = vand.u32 4294901760, %v6975_v38 }
 0x23d   :  { %2402 = vmatmul.mubr.f32.gmra.mrb[38].mxu0 %v6951_v1  ;;  %4675 = vmatprep.subr.bf16.mxu1 %v6952_v13  ;;  %v6983_v22 = vld [vmem:[#allocation103_spill] sm:$0xff]  ;;  %v6985_v1 = vand.u32 4294901760, %v6977_v55  ;;  %v6987_v13 = vld [vmem:[#allocation105_spill] sm:$0xff] }
 0x23e   :  { %2408 = vmatprep.mubr.f32.mxu0 %v6953_v10  ;;  %4649 = vmatpush3.bf16.msra.mxu0 %v4648_v52  ;;  %v6981_v52 = vld [vmem:[#allocation102_spill] sm:$0xff] }
 0x23f   :  { %2640 = vmatmul.mubr.f32.gmra.mrb[36].mxu1 %v6954_v5  ;;  %4651 = vmatprep.subr.bf16.mxu0 %v6105_v27  ;;  %v6961_v27 = vand.u32 4294901760, %v6953_v10  ;;  %v6988_v10 = vand.u32 4294901760, %v6981_v52  ;;  %v6989_v5 = vand.u32 4294901760, %v6983_v22 }
 0x240   :  { %2647 = vmatprep.mubr.f32.mxu1 %v6955_v58  ;;  %4677 = vmatpush3.bf16.msra.mxu1 %v6956_v18  ;;  %v6990_v58 = vld [vmem:[#allocation106_spill] sm:$0xff]  ;;  %v6991_v18 = vld [vmem:[#allocation107_spill] sm:$0xff] }
 0x241   :  { %2411 = vmatmul.mubr.f32.gmra.mrb[40].mxu0 %v6957_v49  ;;  %4679 = vmatprep.subr.bf16.mxu1 %v6958_v14  ;;  %v6993_v14 = vand.u32 4294901760, %v6987_v13 }
 0x242   :  { %2417 = vmatprep.mubr.f32.mxu0 %v6959_v50  ;;  %4653 = vmatpush3.bf16.msra.mxu0 %v6111_v35  ;;  %v6966_v35 = vand.u32 4294901760, %v6957_v49 }
 0x243   :  { %2651 = vmatmul.mubr.f32.gmra.mrb[38].mxu1 %v6960_v45  ;;  %4655 = vmatprep.subr.bf16.mxu0 %v6117_v44  ;;  %v6967_v44 = vand.u32 4294901760, %v6959_v50  ;;  %v6995_v50 = vand.u32 4294901760, %v6990_v58  ;;  %v6996_v45 = vand.u32 4294901760, %v6991_v18 }
 0x244   :  { %2658 = vmatprep.mubr.f32.mxu1 %v6961_v27  ;;  %4681 = vmatpush3.bf16.msra.mxu1 %v6962_v48  ;;  %v6998_v48 = vand.u32 4294901760, %v6021_v23 }
 0x245   :  { %2420 = vmatmul.mubr.f32.gmra.mrb[42].mxu0 %v6963_v20  ;;  %4683 = vmatprep.subr.bf16.mxu1 %v6964_v17  ;;  %v7000_v17 = vand.u32 4294901760, %v6041_v31 }
 0x246   :  { %2426 = vmatprep.mubr.f32.mxu0 %v6965_v40  ;;  %4657 = vmatpush3.bf16.msra.mxu0 %v6125_v57  ;;  %v6972_v57 = vand.u32 4294901760, %v6963_v20  ;;  %v6999_v20 = vand.u32 4294901760, %v6037_v6 }
 0x247   :  { %2662 = vmatmul.mubr.f32.gmra.mrb[40].mxu1 %v6966_v35  ;;  %4659 = vmatprep.subr.bf16.mxu0 %v6131_v9  ;;  %v6973_v9 = vand.u32 4294901760, %v6965_v40  ;;  %v7014_v40 = vld [vmem:[#allocation93_spill] sm:$0xff]  ;;  %v7015_v35 = vld [vmem:[#allocation94_spill] sm:$0xff] }
 0x248   :  { %2669 = vmatprep.mubr.f32.mxu1 %v6967_v44  ;;  %4685 = vmatpush3.bf16.msra.mxu1 %v6968_v8  ;;  %v7016_v44 = vld [vmem:[#allocation96_spill] sm:$0xff] }
 0x249   :  { %2429 = vmatmul.mubr.f32.gmra.mrb[44].mxu0 %v6969_v29  ;;  %4687 = vmatprep.subr.bf16.mxu1 %v6970_v16  ;;  %v7017_v8 = vld [vmem:[#allocation100_spill] sm:$0xff] }
 0x24a   :  { %2435 = vmatprep.mubr.f32.mxu0 %v6971_v0  ;;  %4661 = vmatpush3.bf16.msra.mxu0 %v6137_v43  ;;  %v6978_v43 = vand.u32 4294901760, %v6969_v29 }
 0x24b   :  { %2673 = vmatmul.mubr.f32.gmra.mrb[42].mxu1 %v6972_v57  ;;  %4663 = vmatprep.subr.bf16.mxu0 %v6147_v46  ;;  %v6980_v46 = vld [vmem:[#allocation63_spill] sm:$0xff] }
 0x24c   :  { %2680 = vmatprep.mubr.f32.mxu1 %v6973_v9  ;;  %4689 = vmatpush3.bf16.msra.mxu1 %v6974_v25 }
 0x24d   :  { %2438 = vmatmul.mubr.f32.gmra.mrb[46].mxu0 %v6975_v38  ;;  %4691 = vmatprep.subr.bf16.mxu1 %v6976_v19 }
 0x24e   :  { %2444 = vmatprep.mubr.f32.mxu0 %v6977_v55  ;;  %4665 = vmatpush3.bf16.msra.mxu0 %v6153_v11  ;;  %v6986_v11 = vld [vmem:[#allocation104_spill] sm:$0xff] }
 0x24f   :  { %2684 = vmatmul.mubr.f32.gmra.mrb[44].mxu1 %v6978_v43  ;;  %v6992_v49 = vand.u32 4294901760, %v6986_v11 }
 0x250   :  { %2691 = vmatprep.mubr.f32.mxu1 %v6979_v51  ;;  %4693 = vmatpush3.bf16.msra.mxu1 %v6980_v46 }
 0x251   :  { %2447 = vmatmul.mubr.f32.gmra.mrb[48].mxu0 %v6981_v52  ;;  %4695 = vmatprep.subr.bf16.mxu1 %v6982_v41 }
 0x252   :  { %2453 = vmatprep.mubr.f32.mxu0 %v6983_v22 }
 0x253   :  { %2695 = vmatmul.mubr.f32.gmra.mrb[46].mxu1 %v6984_v60 }
 0x254   :  { %2702 = vmatprep.mubr.f32.mxu1 %v6985_v1  ;;  %4697 = vmatpush3.bf16.msra.mxu1 %v6895_v59  ;;  %v6994_v59 = vld [vmem:[#allocation108_spill] sm:$0xff] }
 0x255   :  { %2456 = vmatmul.mubr.f32.gmra.mrb[50].mxu0 %v6986_v11  ;;  %v6997_v27 = vand.u32 4294901760, %v6994_v59 }
 0x256   :  { %2462 = vmatprep.mubr.f32.mxu0 %v6987_v13 }
 0x257   :  { %2706 = vmatmul.mubr.f32.gmra.mrb[48].mxu1 %v6988_v10 }
 0x258   :  { %2713 = vmatprep.mubr.f32.mxu1 %v6989_v5 }
 0x259   :  { %2465 = vmatmul.mubr.f32.gmra.mrb[52].mxu0 %v6990_v58 }
 0x25a   :  { %2471 = vmatprep.mubr.f32.mxu0 %v6991_v18 }
 0x25b   :  { %2717 = vmatmul.mubr.f32.gmra.mrb[50].mxu1 %v6992_v49 }
 0x25c   :  { %2724 = vmatprep.mubr.f32.mxu1 %v6993_v14 }
 0x25d   :  { %2474 = vmatmul.mubr.f32.gmra.mrb[54].mxu0 %v6994_v59 }
 0x25e   :  { %2480 = vmatprep.mubr.f32.mxu0 %v6021_v23  ;;  %v7001_v23 = vld [vmem:[#allocation68_spill] sm:$0xff] }
 0x25f   :  { %2728 = vmatmul.mubr.f32.gmra.mrb[52].mxu1 %v6995_v50 }
 0x260   :  { %2735 = vmatprep.mubr.f32.mxu1 %v6996_v45 }
 0x261   :  { %2483 = vmatmul.mubr.f32.gmra.mrb[56].mxu0 %v6037_v6  ;;  %v7002_v6 = vld [vmem:[#allocation69_spill] sm:$0xff] }
 0x262   :  { %2489 = vmatprep.mubr.f32.mxu0 %v6041_v31  ;;  %v7003_v31 = vld [vmem:[#allocation72_spill] sm:$0xff] }
 0x263   :  { %2739 = vmatmul.mubr.f32.gmra.mrb[54].mxu1 %v6997_v27 }
 0x264   :  { %2746 = vmatprep.mubr.f32.mxu1 %v6998_v48 }
 0x265   :  { %2492 = vmatmul.mubr.f32.gmra.mrb[58].mxu0 %v6068_v53  ;;  %v7005_v53 = vld [vmem:[#allocation76_spill] sm:$0xff] }
 0x266   :  { %2498 = vmatprep.mubr.f32.mxu0 %v6084_v24  ;;  %v7004_v24 = vld [vmem:[#allocation74_spill] sm:$0xff] }
 0x267   :  { %2750 = vmatmul.mubr.f32.gmra.mrb[56].mxu1 %v6999_v20 }
 0x268   :  { %2757 = vmatprep.mubr.f32.mxu1 %v7000_v17 }
 0x269   :  { %2501 = vmatmul.mubr.f32.gmra.mrb[60].mxu0 %v6097_v3  ;;  %v7007_v3 = vld [vmem:[#allocation79_spill] sm:$0xff] }
 0x26a   :  { %2507 = vmatprep.mubr.f32.mxu0 %v6141_v36  ;;  %v7009_v36 = vld [vmem:[#allocation82_spill] sm:$0xff] }
 0x26b   :  { %2761 = vmatmul.mubr.f32.gmra.mrb[58].mxu1 %v1867_v26  ;;  %v7006_v26 = vld [vmem:[#allocation78_spill] sm:$0xff] }
 0x26c   :  { %2768 = vmatprep.mubr.f32.mxu1 %v1876_v39  ;;  %v7008_v39 = vld [vmem:[#allocation80_spill] sm:$0xff] }
 0x26d   :  { %2510 = vmatmul.mubr.f32.gmra.mrb[62].mxu0 %v6162_v61  ;;  %v7011_v61 = vld [vmem:[#allocation87_spill] sm:$0xff] }
 0x26e   :  { %2949 = vmatprep.mubr.f32.mxu0 %v7001_v23 }
 0x26f   :  { %2772 = vmatmul.mubr.f32.gmra.mrb[60].mxu1 %v1882_v28  ;;  %v7010_v28 = vld [vmem:[#allocation86_spill] sm:$0xff] }
 0x270   :  { %2779 = vmatprep.mubr.f32.mxu1 %v1891_v37  ;;  %v7012_v37 = vld [vmem:[#allocation88_spill] sm:$0xff] }
 0x271   :  { %2951 = vmatmul.mubr.f32.vlgmr.msra.gmra.mrb[64].mxu0 %v7002_v6 }
 0x272   :  { %2956 = vmatprep.mubr.f32.mxu0 %v7003_v31 }
 0x273   :  { %2783 = vmatmul.mubr.f32.gmra.mrb[62].mxu1 %v1897_v4  ;;  %v7013_v4 = vld [vmem:[#allocation92_spill] sm:$0xff] }
 0x274   :  { %3158 = vmatprep.mubr.f32.mxu1 %v7001_v23 }
 0x275   :  { %2958 = vmatmul.mubr.f32.gmra.mrb[66].mxu0 %v7004_v24 }
 0x276   :  { %2963 = vmatprep.mubr.f32.mxu0 %v7005_v53 }
 0x277   :  { %3160 = vmatmul.mubr.f32.vlgmr.msra.gmra.mrb[64].mxu1 %v7002_v6 }
 0x278   :  { %3165 = vmatprep.mubr.f32.mxu1 %v7003_v31 }
 0x279   :  { %2965 = vmatmul.mubr.f32.gmra.mrb[68].mxu0 %v7006_v26 }
 0x27a   :  { %2970 = vmatprep.mubr.f32.mxu0 %v7007_v3 }
 0x27b   :  { %3167 = vmatmul.mubr.f32.gmra.mrb[66].mxu1 %v7004_v24 }
 0x27c   :  { %3172 = vmatprep.mubr.f32.mxu1 %v7005_v53 }
 0x27d   :  { %2972 = vmatmul.mubr.f32.gmra.mrb[70].mxu0 %v7008_v39 }
 0x27e   :  { %2977 = vmatprep.mubr.f32.mxu0 %v7009_v36 }
 0x27f   :  { %3174 = vmatmul.mubr.f32.gmra.mrb[68].mxu1 %v7006_v26 }
 0x280   :  { %3179 = vmatprep.mubr.f32.mxu1 %v7007_v3 }
 0x281   :  { %2979 = vmatmul.mubr.f32.gmra.mrb[72].mxu0 %v7010_v28 }
 0x282   :  { %2984 = vmatprep.mubr.f32.mxu0 %v7011_v61 }
 0x283   :  { %3181 = vmatmul.mubr.f32.gmra.mrb[70].mxu1 %v7008_v39 }
 0x284   :  { %3186 = vmatprep.mubr.f32.mxu1 %v7009_v36 }
 0x285   :  { %2986 = vmatmul.mubr.f32.gmra.mrb[74].mxu0 %v7012_v37 }
 0x286   :  { %2991 = vmatprep.mubr.f32.mxu0 %v7013_v4 }
 0x287   :  { %3188 = vmatmul.mubr.f32.gmra.mrb[72].mxu1 %v7010_v28 }
 0x288   :  { %3193 = vmatprep.mubr.f32.mxu1 %v7011_v61 }
 0x289   :  { %2993 = vmatmul.mubr.f32.gmra.mrb[76].mxu0 %v7014_v40 }
 0x28a   :  { %2998 = vmatprep.mubr.f32.mxu0 %v7015_v35 }
 0x28b   :  { %3195 = vmatmul.mubr.f32.gmra.mrb[74].mxu1 %v7012_v37 }
 0x28c   :  { %3200 = vmatprep.mubr.f32.mxu1 %v7013_v4 }
 0x28d   :  { %3000 = vmatmul.mubr.f32.gmra.mrb[78].mxu0 %v7016_v44 }
 0x28e   :  { %3005 = vmatprep.mubr.f32.mxu0 %v7017_v8 }
 0x28f   :  { %3202 = vmatmul.mubr.f32.gmra.mrb[76].mxu1 %v7014_v40 }
 0x290   :  { %3207 = vmatprep.mubr.f32.mxu1 %v7015_v35 }
 0x291   :  { %3007 = vmatmul.mubr.f32.gmra.mrb[80].mxu0 %v5927_v47 }
 0x292   :  { %3012 = vmatprep.mubr.f32.mxu0 %v5929_v62 }
 0x293   :  { %3209 = vmatmul.mubr.f32.gmra.mrb[78].mxu1 %v7016_v44 }
 0x294   :  { %3214 = vmatprep.mubr.f32.mxu1 %v7017_v8 }
 0x295   :  { %3014 = vmatmul.mubr.f32.gmra.mrb[82].mxu0 %v5944_v54 }
 0x296   :  { %3019 = vmatprep.mubr.f32.mxu0 %v5950_v42 }
 0x297   :  { %3216 = vmatmul.mubr.f32.gmra.mrb[80].mxu1 %v5927_v47 }
 0x298   :  { %3221 = vmatprep.mubr.f32.mxu1 %v5929_v62 }
 0x299   :  { %3021 = vmatmul.mubr.f32.gmra.mrb[84].mxu0 %v5976_v32 }
 0x29a   :  { %3026 = vmatprep.mubr.f32.mxu0 %v5978_v56 }
 0x29b   :  { %3223 = vmatmul.mubr.f32.gmra.mrb[82].mxu1 %v5944_v54 }
 0x29c   :  { %3228 = vmatprep.mubr.f32.mxu1 %v5950_v42 }
 0x29d   :  { %3028 = vmatmul.mubr.f32.gmra.mrb[86].mxu0 %v5984_v7 }
 0x29e   :  { %3033 = vmatprep.mubr.f32.mxu0 %v5996_v33 }
 0x29f   :  { %3230 = vmatmul.mubr.f32.gmra.mrb[84].mxu1 %v5976_v32 }
 0x2a0   :  { %3235 = vmatprep.mubr.f32.mxu1 %v5978_v56 }
 0x2a1   :  { %3035 = vmatmul.mubr.f32.gmra.mrb[88].mxu0 %v6013_v21 }
 0x2a2   :  { %3040 = vmatprep.mubr.f32.mxu0 %v6017_v12 }
 0x2a3   :  { %3237 = vmatmul.mubr.f32.gmra.mrb[86].mxu1 %v5984_v7 }
 0x2a4   :  { %3242 = vmatprep.mubr.f32.mxu1 %v5996_v33 }
 0x2a5   :  { %3042 = vmatmul.mubr.f32.gmra.mrb[90].mxu0 %v6043_v63 }
 0x2a6   :  { %3047 = vmatprep.mubr.f32.mxu0 %v6061_v34 }
 0x2a7   :  { %3244 = vmatmul.mubr.f32.gmra.mrb[88].mxu1 %v6013_v21 }
 0x2a8   :  { %3249 = vmatprep.mubr.f32.mxu1 %v6017_v12 }
 0x2a9   :  { %3049 = vmatmul.mubr.f32.gmra.mrb[92].mxu0 %v6070_v30 }
 0x2aa   :  { %3054 = vmatprep.mubr.f32.mxu0 %v6086_v2 }
 0x2ab   :  { %3251 = vmatmul.mubr.f32.gmra.mrb[90].mxu1 %v6043_v63 }
 0x2ac   :  { %3256 = vmatprep.mubr.f32.mxu1 %v6061_v34 }
 0x2ad   :  { %3056 = vmatmul.mubr.f32.gmra.mrb[94].mxu0 %v6119_v15 }
 0x2af   :  { %3258 = vmatmul.mubr.f32.gmra.mrb[92].mxu1 %v6070_v30 }
 0x2b0   :  { %3263 = vmatprep.mubr.f32.mxu1 %v6086_v2 }
 0x2b3   :  { %3265 = vmatmul.mubr.f32.gmra.mrb[94].mxu1 %v6119_v15 }
 0x2bf   :  { %v3530_v56 = vpop.f32.mrb[0].mxu0 }
 0x2c0   :  { %v3531_v32 = vpop.f32.mrb[1].mxu0 }
 0x2c1   :  { %v3532_v21 = vadd.f32 %v3531_v32, %v3530_v56 }
 0x2c4   :  { %v3533_v62 = vpop.f32.mrb[2].mxu0 }
 0x2c5   :  { %v3534_v54 = vpop.f32.mrb[3].mxu0 }
 0x2c6   :  { %v3535_v47 = vadd.f32 %v3534_v54, %v3533_v62 }
 0x2ca   :  { %v3610_v42 = vpop.f32.mrb[0].mxu1 }
 0x2cb   :  { %v3611_v7 = vpop.f32.mrb[1].mxu1 }
 0x2cc   :  { %v3612_v33 = vadd.f32 %v3611_v7, %v3610_v42  ;;  %v3536_v12 = vpop.f32.mrb[4].mxu0 }
 0x2cd   :  { %v3537_v63 = vpop.f32.mrb[5].mxu0 }
 0x2ce   :  { %v6400_v34 = vadd.f32 %v3612_v33, %v3532_v21  ;;  %v3613_v29 = vpop.f32.mrb[2].mxu1  ;;  %v3538_v16 = vadd.f32 %v3537_v63, %v3536_v12 }
 0x2cf   :  { %v3614_v30 = vpop.f32.mrb[3].mxu1 }
 0x2d0   :  { %v3615_v0 = vadd.f32 %v3614_v30, %v3613_v29  ;;  %v3539_v2 = vpop.f32.mrb[6].mxu0 }
 0x2d1   :  { %v3540_v57 = vpop.f32.mrb[7].mxu0 }
 0x2d2   :  { %v6402_v15 = vadd.f32 %v3615_v0, %v3535_v47  ;;  %v3616_v9 = vpop.f32.mrb[4].mxu1  ;;  %v3541_v25 = vadd.f32 %v3540_v57, %v3539_v2 }
 0x2d3   :  { %v3617_v38 = vpop.f32.mrb[5].mxu1 }
 0x2d4   :  { %v3618_v19 = vadd.f32 %v3617_v38, %v3616_v9  ;;  %v3542_v55 = vpop.f32.mrb[8].mxu0 }
 0x2d5   :  { %v3543_v43 = vpop.f32.mrb[9].mxu0 }
 0x2d6   :  { %v6404_v51 = vadd.f32 %v3618_v19, %v3538_v16  ;;  %v3619_v46 = vpop.f32.mrb[6].mxu1  ;;  %v3544_v52 = vadd.f32 %v3543_v43, %v3542_v55 }
 0x2d7   :  { %v3620_v41 = vpop.f32.mrb[7].mxu1 }
 0x2d8   :  { %v3621_v22 = vadd.f32 %v3620_v41, %v3619_v46  ;;  %v3545_v60 = vpop.f32.mrb[10].mxu0 }
 0x2d9   :  { %v3546_v1 = vpop.f32.mrb[11].mxu0 }
 0x2da   :  { %v6406_v11 = vadd.f32 %v3621_v22, %v3541_v25  ;;  %v3622_v13 = vpop.f32.mrb[8].mxu1  ;;  %v3547_v10 = vadd.f32 %v3546_v1, %v3545_v60 }
 0x2db   :  { %v3623_v5 = vpop.f32.mrb[9].mxu1 }
 0x2dc   :  { %v3624_v58 = vadd.f32 %v3623_v5, %v3622_v13  ;;  %v3548_v18 = vpop.f32.mrb[12].mxu0 }
 0x2dd   :  { %v3549_v49 = vpop.f32.mrb[13].mxu0 }
 0x2de   :  { %v6408_v14 = vadd.f32 %v3624_v58, %v3544_v52  ;;  %v3625_v59 = vpop.f32.mrb[10].mxu1  ;;  %v3550_v50 = vadd.f32 %v3549_v49, %v3548_v18 }
 0x2df   :  { %v3626_v45 = vpop.f32.mrb[11].mxu1 }
 0x2e0   :  { %v3627_v27 = vadd.f32 %v3626_v45, %v3625_v59  ;;  %v3551_v48 = vpop.f32.mrb[14].mxu0 }
 0x2e1   :  { %v3552_v20 = vpop.f32.mrb[15].mxu0 }
 0x2e2   :  { %v6410_v17 = vadd.f32 %v3627_v27, %v3547_v10  ;;  %v3628_v23 = vpop.f32.mrb[12].mxu1  ;;  %v3553_v6 = vadd.f32 %v3552_v20, %v3551_v48 }
 0x2e3   :  { %v3629_v31 = vpop.f32.mrb[13].mxu1 }
 0x2e4   :  { %v3630_v24 = vadd.f32 %v3629_v31, %v3628_v23  ;;  %v3554_v53 = vpop.f32.mrb[16].mxu0 }
 0x2e5   :  { %v3555_v26 = vpop.f32.mrb[17].mxu0 }
 0x2e6   :  { %v6412_v3 = vadd.f32 %v3630_v24, %v3550_v50  ;;  %v3631_v39 = vpop.f32.mrb[14].mxu1  ;;  %v3556_v36 = vadd.f32 %v3555_v26, %v3554_v53 }
 0x2e7   :  { %v3632_v28 = vpop.f32.mrb[15].mxu1 }
 0x2e8   :  { %v3633_v61 = vadd.f32 %v3632_v28, %v3631_v39  ;;  %v3557_v37 = vpop.f32.mrb[18].mxu0 }
 0x2e9   :  { %v3558_v4 = vpop.f32.mrb[19].mxu0 }
 0x2ea   :  { %v6414_v40 = vadd.f32 %v3633_v61, %v3553_v6  ;;  %v3634_v35 = vpop.f32.mrb[16].mxu1  ;;  %v3559_v44 = vadd.f32 %v3558_v4, %v3557_v37 }
 0x2eb   :  { %v3635_v8 = vpop.f32.mrb[17].mxu1 }
 0x2ec   :  { %v3636_v56 = vadd.f32 %v3635_v8, %v3634_v35  ;;  %v3560_v32 = vpop.f32.mrb[20].mxu0 }
 0x2ed   :  { %v3561_v21 = vpop.f32.mrb[21].mxu0 }
 0x2ee   :  { %v6416_v62 = vadd.f32 %v3636_v56, %v3556_v36  ;;  %v3637_v54 = vpop.f32.mrb[18].mxu1  ;;  %v3562_v47 = vadd.f32 %v3561_v21, %v3560_v32 }
 0x2ef   :  { %v3638_v42 = vpop.f32.mrb[19].mxu1 }
 0x2f0   :  { %v3639_v7 = vadd.f32 %v3638_v42, %v3637_v54  ;;  %v3563_v33 = vpop.f32.mrb[22].mxu0 }
 0x2f1   :  { %v3564_v12 = vpop.f32.mrb[23].mxu0 }
 0x2f2   :  { %v6418_v63 = vadd.f32 %v3639_v7, %v3559_v44  ;;  %v3640_v29 = vpop.f32.mrb[20].mxu1  ;;  %v3565_v16 = vadd.f32 %v3564_v12, %v3563_v33 }
 0x2f3   :  { %v3641_v30 = vpop.f32.mrb[21].mxu1 }
 0x2f4   :  { %v3642_v0 = vadd.f32 %v3641_v30, %v3640_v29  ;;  %v3566_v2 = vpop.f32.mrb[24].mxu0 }
 0x2f5   :  { %v3567_v57 = vpop.f32.mrb[25].mxu0 }
 0x2f6   :  { %v6420_v9 = vadd.f32 %v3642_v0, %v3562_v47  ;;  %v3643_v25 = vpop.f32.mrb[22].mxu1  ;;  %v3568_v38 = vadd.f32 %v3567_v57, %v3566_v2 }
 0x2f7   :  { %v3644_v19 = vpop.f32.mrb[23].mxu1 }
 0x2f8   :  { %v3645_v55 = vadd.f32 %v3644_v19, %v3643_v25  ;;  %v3569_v43 = vpop.f32.mrb[26].mxu0 }
 0x2f9   :  { %v3570_v46 = vpop.f32.mrb[27].mxu0 }
 0x2fa   :  { %v6422_v52 = vadd.f32 %v3645_v55, %v3565_v16  ;;  %v3646_v41 = vpop.f32.mrb[24].mxu1  ;;  %v3571_v22 = vadd.f32 %v3570_v46, %v3569_v43 }
 0x2fb   :  { %v3647_v60 = vpop.f32.mrb[25].mxu1 }
 0x2fc   :  { %v3648_v1 = vadd.f32 %v3647_v60, %v3646_v41  ;;  %v3572_v13 = vpop.f32.mrb[28].mxu0 }
 0x2fd   :  { %v3573_v10 = vpop.f32.mrb[29].mxu0 }
 0x2fe   :  { %v6424_v5 = vadd.f32 %v3648_v1, %v3568_v38  ;;  %v3649_v58 = vpop.f32.mrb[26].mxu1  ;;  %v3574_v18 = vadd.f32 %v3573_v10, %v3572_v13 }
 0x2ff   :  { %v3650_v49 = vpop.f32.mrb[27].mxu1 }
 0x300   :  { %v3651_v59 = vadd.f32 %v3650_v49, %v3649_v58  ;;  %v3575_v50 = vpop.f32.mrb[30].mxu0 }
 0x301   :  { %v3576_v45 = vpop.f32.mrb[31].mxu0 }
 0x302   :  { %v6426_v27 = vadd.f32 %v3651_v59, %v3571_v22  ;;  %v3577_v48 = vadd.f32 %v3576_v45, %v3575_v50  ;;  %v3652_v20 = vpop.f32.mrb[28].mxu1 }
 0x303   :  { %v3653_v23 = vpop.f32.mrb[29].mxu1 }
 0x304   :  { %v3690_v6 = vpop.f32.mrb[32].mxu0  ;;  %v3654_v31 = vadd.f32 %v3653_v23, %v3652_v20 }
 0x305   :  { %v3691_v24 = vpop.f32.mrb[33].mxu0 }
 0x306   :  { %v6428_v53 = vadd.f32 %v3654_v31, %v3574_v18  ;;  %v3692_v26 = vadd.f32 %v3691_v24, %v3690_v6  ;;  %v3655_v39 = vpop.f32.mrb[30].mxu1 }
 0x307   :  { %v3656_v36 = vpop.f32.mrb[31].mxu1 }
 0x308   :  { %v2377_v28 = vadd.f32 %v3692_v26, %v6400_v34  ;;  %v3693_v61 = vpop.f32.mrb[34].mxu0  ;;  %v3657_v37 = vadd.f32 %v3656_v36, %v3655_v39 }
 0x309   :  { %v3694_v4 = vpop.f32.mrb[35].mxu0 }
 0x30a   :  { %v6431_v35 = vadd.f32 %v3657_v37, %v3577_v48  ;;  %v3695_v44 = vadd.f32 %v3694_v4, %v3693_v61  ;;  %v3770_v8 = vpop.f32.mrb[32].mxu1 }
 0x30b   :  { %v3771_v56 = vpop.f32.mrb[33].mxu1 }
 0x30c   :  { %v2386_v32 = vadd.f32 %v3695_v44, %v6402_v15  ;;  %v3696_v21 = vpop.f32.mrb[36].mxu0  ;;  %v3772_v54 = vadd.f32 %v3771_v56, %v3770_v8 }
 0x30d   :  { %v3697_v47 = vpop.f32.mrb[37].mxu0 }
 0x30e   :  { %v3698_v42 = vadd.f32 %v3697_v47, %v3696_v21  ;;  %v6434_v7 = vadd.f32 %v3772_v54, %v2377_v28  ;;  %v3773_v33 = vpop.f32.mrb[34].mxu1 }
 0x30f   :  { %v3774_v12 = vpop.f32.mrb[35].mxu1 }
 0x310   :  { %v2395_v34 = vadd.f32 %v3698_v42, %v6404_v51  ;;  %v3699_v29 = vpop.f32.mrb[38].mxu0  ;;  %v3775_v16 = vadd.f32 %v3774_v12, %v3773_v33 }
 0x311   :  { %v3700_v30 = vpop.f32.mrb[39].mxu0 }
 0x312   :  { %v3701_v0 = vadd.f32 %v3700_v30, %v3699_v29  ;;  %v6437_v2 = vadd.f32 %v3775_v16, %v2386_v32  ;;  %v3776_v57 = vpop.f32.mrb[36].mxu1 }
 0x313   :  { %v3777_v25 = vpop.f32.mrb[37].mxu1 }
 0x314   :  { %v2404_v15 = vadd.f32 %v3701_v0, %v6406_v11  ;;  %v3702_v38 = vpop.f32.mrb[40].mxu0  ;;  %v3778_v19 = vadd.f32 %v3777_v25, %v3776_v57 }
 0x315   :  { %v3703_v55 = vpop.f32.mrb[41].mxu0 }
 0x316   :  { %v3704_v43 = vadd.f32 %v3703_v55, %v3702_v38  ;;  %v6440_v46 = vadd.f32 %v3778_v19, %v2395_v34  ;;  %v3779_v41 = vpop.f32.mrb[38].mxu1 }
 0x317   :  { %v3780_v22 = vpop.f32.mrb[39].mxu1 }
 0x318   :  { %v2413_v51 = vadd.f32 %v3704_v43, %v6408_v14  ;;  %v3705_v60 = vpop.f32.mrb[42].mxu0  ;;  %v3781_v1 = vadd.f32 %v3780_v22, %v3779_v41 }
 0x319   :  { %v3706_v13 = vpop.f32.mrb[43].mxu0 }
 0x31a   :  { %v3707_v10 = vadd.f32 %v3706_v13, %v3705_v60  ;;  %v6443_v58 = vadd.f32 %v3781_v1, %v2404_v15  ;;  %v3782_v18 = vpop.f32.mrb[40].mxu1 }
 0x31b   :  { %v3783_v49 = vpop.f32.mrb[41].mxu1 }
 0x31c   :  { %v2422_v11 = vadd.f32 %v3707_v10, %v6410_v17  ;;  %v3708_v59 = vpop.f32.mrb[44].mxu0  ;;  %v3784_v50 = vadd.f32 %v3783_v49, %v3782_v18 }
 0x31d   :  { %v3709_v45 = vpop.f32.mrb[45].mxu0 }
 0x31e   :  { %v3710_v48 = vadd.f32 %v3709_v45, %v3708_v59  ;;  %v6446_v20 = vadd.f32 %v3784_v50, %v2413_v51  ;;  %v3785_v23 = vpop.f32.mrb[42].mxu1 }
 0x31f   :  { %v3786_v6 = vpop.f32.mrb[43].mxu1 }
 0x320   :  { %v2431_v14 = vadd.f32 %v3710_v48, %v6412_v3  ;;  %v3711_v31 = vpop.f32.mrb[46].mxu0  ;;  %v3787_v24 = vadd.f32 %v3786_v6, %v3785_v23 }
 0x321   :  { %v3712_v26 = vpop.f32.mrb[47].mxu0 }
 0x322   :  { %v3713_v39 = vadd.f32 %v3712_v26, %v3711_v31  ;;  %v6449_v36 = vadd.f32 %v3787_v24, %v2422_v11  ;;  %v3788_v28 = vpop.f32.mrb[44].mxu1 }
 0x323   :  { %v3789_v61 = vpop.f32.mrb[45].mxu1 }
 0x324   :  { %v2440_v17 = vadd.f32 %v3713_v39, %v6414_v40  ;;  %v3714_v37 = vpop.f32.mrb[48].mxu0  ;;  %v3790_v4 = vadd.f32 %v3789_v61, %v3788_v28 }
 0x325   :  { %v3715_v44 = vpop.f32.mrb[49].mxu0 }
 0x326   :  { %v3716_v8 = vadd.f32 %v3715_v44, %v3714_v37  ;;  %v6452_v56 = vadd.f32 %v3790_v4, %v2431_v14  ;;  %v3791_v32 = vpop.f32.mrb[46].mxu1 }
 0x327   :  { %v3792_v21 = vpop.f32.mrb[47].mxu1 }
 0x328   :  { %v2449_v3 = vadd.f32 %v3716_v8, %v6416_v62  ;;  %v3717_v54 = vpop.f32.mrb[50].mxu0  ;;  %v3793_v47 = vadd.f32 %v3792_v21, %v3791_v32 }
 0x329   :  { %v3718_v42 = vpop.f32.mrb[51].mxu0 }
 0x32a   :  { %v3719_v33 = vadd.f32 %v3718_v42, %v3717_v54  ;;  %v6455_v12 = vadd.f32 %v3793_v47, %v2440_v17  ;;  %v3794_v34 = vpop.f32.mrb[48].mxu1 }
 0x32b   :  { %v3795_v29 = vpop.f32.mrb[49].mxu1 }
 0x32c   :  { %v2458_v40 = vadd.f32 %v3719_v33, %v6418_v63  ;;  %v3720_v16 = vpop.f32.mrb[52].mxu0  ;;  %v3796_v30 = vadd.f32 %v3795_v29, %v3794_v34 }
 0x32d   :  { %v3721_v0 = vpop.f32.mrb[53].mxu0 }
 0x32e   :  { %v3722_v57 = vadd.f32 %v3721_v0, %v3720_v16  ;;  %v6458_v25 = vadd.f32 %v3796_v30, %v2449_v3  ;;  %v3797_v15 = vpop.f32.mrb[50].mxu1 }
 0x32f   :  { %v3798_v38 = vpop.f32.mrb[51].mxu1 }
 0x330   :  { %v2467_v62 = vadd.f32 %v3722_v57, %v6420_v9  ;;  %v3723_v19 = vpop.f32.mrb[54].mxu0  ;;  %v3799_v55 = vadd.f32 %v3798_v38, %v3797_v15 }
 0x331   :  { %v3724_v43 = vpop.f32.mrb[55].mxu0 }
 0x332   :  { %v3725_v41 = vadd.f32 %v3724_v43, %v3723_v19  ;;  %v6461_v22 = vadd.f32 %v3799_v55, %v2458_v40  ;;  %v3800_v51 = vpop.f32.mrb[52].mxu1 }
 0x333   :  { %v3801_v60 = vpop.f32.mrb[53].mxu1 }
 0x334   :  { %v2476_v63 = vadd.f32 %v3725_v41, %v6422_v52  ;;  %v3726_v1 = vpop.f32.mrb[56].mxu0  ;;  %v3802_v13 = vadd.f32 %v3801_v60, %v3800_v51 }
 0x335   :  { %v3727_v10 = vpop.f32.mrb[57].mxu0 }
 0x336   :  { %v3728_v18 = vadd.f32 %v3727_v10, %v3726_v1  ;;  %v6464_v49 = vadd.f32 %v3802_v13, %v2467_v62  ;;  %v3803_v11 = vpop.f32.mrb[54].mxu1 }
 0x337   :  { %v3804_v59 = vpop.f32.mrb[55].mxu1 }
 0x338   :  { %v2485_v9 = vadd.f32 %v3728_v18, %v6424_v5  ;;  %v3729_v50 = vpop.f32.mrb[58].mxu0  ;;  %v3805_v45 = vadd.f32 %v3804_v59, %v3803_v11 }
 0x339   :  { %v3730_v48 = vpop.f32.mrb[59].mxu0 }
 0x33a   :  { %v3731_v23 = vadd.f32 %v3730_v48, %v3729_v50  ;;  %v6467_v6 = vadd.f32 %v3805_v45, %v2476_v63  ;;  %v3806_v14 = vpop.f32.mrb[56].mxu1 }
 0x33b   :  { %v3807_v31 = vpop.f32.mrb[57].mxu1 }
 0x33c   :  { %v2494_v52 = vadd.f32 %v3731_v23, %v6426_v27  ;;  %v3732_v24 = vpop.f32.mrb[60].mxu0  ;;  %v3808_v26 = vadd.f32 %v3807_v31, %v3806_v14 }
 0x33d   :  { %v3733_v39 = vpop.f32.mrb[61].mxu0 }
 0x33e   :  { %v3734_v28 = vadd.f32 %v3733_v39, %v3732_v24  ;;  %v6470_v61 = vadd.f32 %v3808_v26, %v2485_v9  ;;  %v3809_v17 = vpop.f32.mrb[58].mxu1 }
 0x33f   :  { %v3810_v37 = vpop.f32.mrb[59].mxu1 }
 0x340   :  { %v2503_v5 = vadd.f32 %v3734_v28, %v6428_v53  ;;  %v3735_v4 = vpop.f32.mrb[62].mxu0  ;;  %v3811_v44 = vadd.f32 %v3810_v37, %v3809_v17 }
 0x341   :  { %v3736_v8 = vpop.f32.mrb[63].mxu0 }
 0x342   :  { %v3737_v32 = vadd.f32 %v3736_v8, %v3735_v4  ;;  %v6473_v21 = vadd.f32 %v3811_v44, %v2494_v52  ;;  %v3812_v3 = vpop.f32.mrb[60].mxu1 }
 0x343   :  { %v3813_v54 = vpop.f32.mrb[61].mxu1 }
 0x344   :  { %v2512_v27 = vadd.f32 %v3737_v32, %v6431_v35  ;;  %v3850_v47 = vpop.f32.mrb[64].mxu0  ;;  %v3814_v42 = vadd.f32 %v3813_v54, %v3812_v3 }
 0x345   :  { %v3851_v33 = vpop.f32.mrb[65].mxu0 }
 0x346   :  { %v6476_v34 = vadd.f32 %v3814_v42, %v2503_v5  ;;  %v3852_v29 = vadd.f32 %v3851_v33, %v3850_v47  ;;  %v3815_v40 = vpop.f32.mrb[62].mxu1 }
 0x347   :  { %v3816_v16 = vpop.f32.mrb[63].mxu1 }
 0x348   :  { %v2953_v53 = vadd.f32 %v3852_v29, %v6434_v7  ;;  %v3853_v30 = vpop.f32.mrb[66].mxu0  ;;  %v3817_v0 = vadd.f32 %v3816_v16, %v3815_v40 }
 0x349   :  { %v3854_v57 = vpop.f32.mrb[67].mxu0 }
 0x34a   :  { %v6479_v15 = vadd.f32 %v3817_v0, %v2512_v27  ;;  %v3855_v38 = vadd.f32 %v3854_v57, %v3853_v30  ;;  %v3930_v62 = vpop.f32.mrb[64].mxu1 }
 0x34b   :  { %v3931_v19 = vpop.f32.mrb[65].mxu1 }
 0x34c   :  { %v2960_v35 = vadd.f32 %v3855_v38, %v6437_v2  ;;  %v3856_v55 = vpop.f32.mrb[68].mxu0  ;;  %v3932_v43 = vadd.f32 %v3931_v19, %v3930_v62 }
 0x34d   :  { %v3857_v41 = vpop.f32.mrb[69].mxu0 }
 0x34e   :  { %v3858_v51 = vadd.f32 %v3857_v41, %v3856_v55  ;;  %v3162_v60 = vadd.f32 %v3932_v43, %v2953_v53  ;;  %v3933_v63 = vpop.f32.mrb[66].mxu1 }
 0x34f   :  { %v3934_v1 = vpop.f32.mrb[67].mxu1 }
 0x350   :  { %v2967_v13 = vadd.f32 %v3858_v51, %v6440_v46  ;;  %3270 = vst [vmem:[#allocation13] sm:$0xff] %v3162_v60  ;;  %v3859_v7 = vpop.f32.mrb[70].mxu0  ;;  %v3935_v10 = vadd.f32 %v3934_v1, %v3933_v63 }
 0x351   :  { %v3860_v18 = vpop.f32.mrb[71].mxu0 }
 0x352   :  { %v3861_v11 = vadd.f32 %v3860_v18, %v3859_v7  ;;  %v3169_v59 = vadd.f32 %v3935_v10, %v2960_v35  ;;  %v3936_v9 = vpop.f32.mrb[68].mxu1 }
 0x353   :  { %v3937_v50 = vpop.f32.mrb[69].mxu1 }
 0x354   :  { %v2974_v45 = vadd.f32 %v3861_v11, %v6443_v58  ;;  %3271 = vst [vmem:[#allocation13 + $0x8] sm:$0xff] %v3169_v59  ;;  %v3862_v2 = vpop.f32.mrb[72].mxu0  ;;  %v3938_v48 = vadd.f32 %v3937_v50, %v3936_v9 }
 0x355   :  { %v3863_v23 = vpop.f32.mrb[73].mxu0 }
 0x356   :  { %v3864_v14 = vadd.f32 %v3863_v23, %v3862_v2  ;;  %v3176_v31 = vadd.f32 %v3938_v48, %v2967_v13  ;;  %v3939_v52 = vpop.f32.mrb[70].mxu1 }
 0x357   :  { %v3940_v24 = vpop.f32.mrb[71].mxu1 }
 0x358   :  { %v2981_v46 = vadd.f32 %v3864_v14, %v6446_v20  ;;  %3272 = vst [vmem:[#allocation13 + $0x10] sm:$0xff] %v3176_v31  ;;  %v3865_v26 = vpop.f32.mrb[74].mxu0  ;;  %v3941_v39 = vadd.f32 %v3940_v24, %v3939_v52 }
 0x359   :  { %v3866_v28 = vpop.f32.mrb[75].mxu0 }
 0x35a   :  { %v3867_v17 = vadd.f32 %v3866_v28, %v3865_v26  ;;  %v3183_v37 = vadd.f32 %v3941_v39, %v2974_v45  ;;  %v3942_v5 = vpop.f32.mrb[72].mxu1 }
 0x35b   :  { %v3943_v4 = vpop.f32.mrb[73].mxu1 }
 0x35c   :  { %v2988_v58 = vadd.f32 %v3867_v17, %v6449_v36  ;;  %3273 = vst [vmem:[#allocation13 + $0x18] sm:$0xff] %v3183_v37  ;;  %v3868_v44 = vpop.f32.mrb[76].mxu0  ;;  %v3944_v8 = vadd.f32 %v3943_v4, %v3942_v5 }
 0x35d   :  { %v3869_v32 = vpop.f32.mrb[77].mxu0 }
 0x35e   :  { %v3870_v3 = vadd.f32 %v3869_v32, %v3868_v44  ;;  %v3190_v54 = vadd.f32 %v3944_v8, %v2981_v46  ;;  %v3945_v27 = vpop.f32.mrb[74].mxu1 }
 0x35f   :  { %v3946_v47 = vpop.f32.mrb[75].mxu1 }
 0x360   :  { %v2995_v20 = vadd.f32 %v3870_v3, %v6452_v56  ;;  %3274 = vst [vmem:[#allocation13 + $0x20] sm:$0xff] %v3190_v54  ;;  %v3871_v42 = vpop.f32.mrb[78].mxu0  ;;  %v3947_v33 = vadd.f32 %v3946_v47, %v3945_v27 }
 0x361   :  { %v3872_v29 = vpop.f32.mrb[79].mxu0 }
 0x362   :  { %v3873_v40 = vadd.f32 %v3872_v29, %v3871_v42  ;;  %v3197_v16 = vadd.f32 %v3947_v33, %v2988_v58  ;;  %v3948_v53 = vpop.f32.mrb[76].mxu1 }
 0x363   :  { %v3949_v30 = vpop.f32.mrb[77].mxu1 }
 0x364   :  { %v3002_v36 = vadd.f32 %v3873_v40, %v6455_v12  ;;  %3275 = vst [vmem:[#allocation13 + $0x28] sm:$0xff] %v3197_v16  ;;  %v3874_v0 = vpop.f32.mrb[80].mxu0  ;;  %v3950_v57 = vadd.f32 %v3949_v30, %v3948_v53 }
 0x365   :  { %v3875_v38 = vpop.f32.mrb[81].mxu0 }
 0x366   :  { %v3876_v62 = vadd.f32 %v3875_v38, %v3874_v0  ;;  %v3204_v19 = vadd.f32 %v3950_v57, %v2995_v20  ;;  %v3951_v35 = vpop.f32.mrb[78].mxu1 }
 0x367   :  { %v3952_v55 = vpop.f32.mrb[79].mxu1 }
 0x368   :  { %v3009_v56 = vadd.f32 %v3876_v62, %v6458_v25  ;;  %3276 = vst [vmem:[#allocation13 + $0x30] sm:$0xff] %v3204_v19  ;;  %v3877_v43 = vpop.f32.mrb[82].mxu0  ;;  %v3953_v41 = vadd.f32 %v3952_v55, %v3951_v35 }
 0x369   :  { %v3878_v51 = vpop.f32.mrb[83].mxu0 }
 0x36a   :  { %v3879_v60 = vadd.f32 %v3878_v51, %v3877_v43  ;;  %v3211_v63 = vadd.f32 %v3953_v41, %v3002_v36  ;;  %v3954_v1 = vpop.f32.mrb[80].mxu1 }
 0x36b   :  { %v3955_v13 = vpop.f32.mrb[81].mxu1 }
 0x36c   :  { %v3016_v12 = vadd.f32 %v3879_v60, %v6461_v22  ;;  %3277 = vst [vmem:[#allocation13 + $0x38] sm:$0xff] %v3211_v63  ;;  %v3880_v7 = vpop.f32.mrb[84].mxu0  ;;  %v3956_v10 = vadd.f32 %v3955_v13, %v3954_v1 }
 0x36d   :  { %v3881_v18 = vpop.f32.mrb[85].mxu0 }
 0x36e   :  { %v3882_v11 = vadd.f32 %v3881_v18, %v3880_v7  ;;  %v3218_v59 = vadd.f32 %v3956_v10, %v3009_v56  ;;  %v3957_v9 = vpop.f32.mrb[82].mxu1 }
 0x36f   :  { %v3958_v50 = vpop.f32.mrb[83].mxu1 }
 0x370   :  { %v3023_v25 = vadd.f32 %v3882_v11, %v6464_v49  ;;  %3278 = vst [vmem:[#allocation13 + $0x40] sm:$0xff] %v3218_v59  ;;  %v3883_v45 = vpop.f32.mrb[86].mxu0  ;;  %v3959_v2 = vadd.f32 %v3958_v50, %v3957_v9 }
 0x371   :  { %v3884_v48 = vpop.f32.mrb[87].mxu0 }
 0x372   :  { %v3885_v23 = vadd.f32 %v3884_v48, %v3883_v45  ;;  %v3225_v14 = vadd.f32 %v3959_v2, %v3016_v12  ;;  %v3960_v31 = vpop.f32.mrb[84].mxu1 }
 0x373   :  { %v3961_v52 = vpop.f32.mrb[85].mxu1 }
 0x374   :  { %v3030_v22 = vadd.f32 %v3885_v23, %v6467_v6  ;;  %3279 = vst [vmem:[#allocation13 + $0x48] sm:$0xff] %v3225_v14  ;;  %v3886_v24 = vpop.f32.mrb[88].mxu0  ;;  %v3962_v46 = vadd.f32 %v3961_v52, %v3960_v31 }
 0x375   :  { %v3887_v26 = vpop.f32.mrb[89].mxu0 }
 0x376   :  { %v3888_v39 = vadd.f32 %v3887_v26, %v3886_v24  ;;  %v3232_v28 = vadd.f32 %v3962_v46, %v3023_v25  ;;  %v3963_v17 = vpop.f32.mrb[86].mxu1 }
 0x377   :  { %v3964_v37 = vpop.f32.mrb[87].mxu1 }
 0x378   :  { %v3037_v49 = vadd.f32 %v3888_v39, %v6470_v61  ;;  %3280 = vst [vmem:[#allocation13 + $0x50] sm:$0xff] %v3232_v28  ;;  %v3889_v5 = vpop.f32.mrb[90].mxu0  ;;  %v3965_v4 = vadd.f32 %v3964_v37, %v3963_v17 }
 0x379   :  { %v3890_v58 = vpop.f32.mrb[91].mxu0 }
 0x37a   :  { %v3891_v44 = vadd.f32 %v3890_v58, %v3889_v5  ;;  %v3239_v8 = vadd.f32 %v3965_v4, %v3030_v22  ;;  %v3966_v32 = vpop.f32.mrb[88].mxu1 }
 0x37b   :  { %v3967_v3 = vpop.f32.mrb[89].mxu1 }
 0x37c   :  { %v3044_v6 = vadd.f32 %v3891_v44, %v6473_v21  ;;  %3281 = vst [vmem:[#allocation13 + $0x58] sm:$0xff] %v3239_v8  ;;  %v3892_v54 = vpop.f32.mrb[92].mxu0  ;;  %v3968_v27 = vadd.f32 %v3967_v3, %v3966_v32 }
 0x37d   :  { %v3893_v47 = vpop.f32.mrb[93].mxu0 }
 0x37e   :  { %v3894_v20 = vadd.f32 %v3893_v47, %v3892_v54  ;;  %v3246_v42 = vadd.f32 %v3968_v27, %v3037_v49  ;;  %v3969_v33 = vpop.f32.mrb[90].mxu1 }
 0x37f   :  { %v3970_v29 = vpop.f32.mrb[91].mxu1 }
 0x380   :  { %v3051_v61 = vadd.f32 %v3894_v20, %v6476_v34  ;;  %3282 = vst [vmem:[#allocation13 + $0x60] sm:$0xff] %v3246_v42  ;;  %v3895_v40 = vpop.f32.mrb[94].mxu0  ;;  %v3971_v16 = vadd.f32 %v3970_v29, %v3969_v33 }
 0x381   :  { %v3896_v53 = vpop.f32.mrb[95].mxu0 }
 0x382   :  { %v3897_v30 = vadd.f32 %v3896_v53, %v3895_v40  ;;  %v3253_v36 = vadd.f32 %v3971_v16, %v3044_v6  ;;  %v3972_v0 = vpop.f32.mrb[92].mxu1 }
 0x383   :  { %v3973_v57 = vpop.f32.mrb[93].mxu1 }
 0x384   :  { %v3058_v21 = vadd.f32 %v3897_v30, %v6479_v15  ;;  %3283 = vst [vmem:[#allocation13 + $0x68] sm:$0xff] %v3253_v36  ;;  %v3974_v38 = vadd.f32 %v3973_v57, %v3972_v0 }
 0x386   :  { %v3260_v62 = vadd.f32 %v3974_v38, %v3051_v61  ;;  %v3975_v19 = vpop.f32.mrb[94].mxu1 }
 0x387   :  { %v3976_v35 = vpop.f32.mrb[95].mxu1 }
 0x388   :  { %3284 = vst [vmem:[#allocation13 + $0x70] sm:$0xff] %v3260_v62  ;;  %v3977_v55 = vadd.f32 %v3976_v35, %v3975_v19 }
 0x38a   :  { %v3267_v34 = vadd.f32 %v3977_v55, %v3058_v21 }
 0x38c   :  { %3285 = vst [vmem:[#allocation13 + $0x78] sm:$0xff] %v3267_v34 }
 0x38d   :  { %4885 = shalt.err (!%p4882_p9)
}
 0x38e   :  { %s4886_s22 = scalar_lea.hbm %s6516_s5, 2048 }
 0x38f   :  { %p4887_p10 = scmp.ne.s32.totalorder %s6516_s5, %s4886_s22  ;;  %p4890_p11 = scmp.lt.u32.totalorder %s4886_s22, %s6516_s5 }
 0x391   :  { %p4892_p12 = pnand %p4890_p11, %p4887_p10 }
 0x393   :  { %4895 = shalt.err (!%p4892_p12)
}
 0x394   :  { %3297 = dma.vmem_to_hbm [thread:$0]  %s3292_s17, 2048, %s6516_s5, [#allocation7], %s4906_s30, %s4906_s30, %s4907_s6  }
 0x395   :  { %4902 = dma.done.wait [#allocation7], 2048  }
 0x396   :  { %4903 = vsyncadd [#allocation7], 4294965248 }
 0x397   :  { %3301 = vsyncpa [#allocation6], 1 }
 0x398   :  { %3302 = vsyncpa [#allocation9], 1 }
 0x399   :  { %3303 = vsyncpa [#allocation12], 1 }
 0x39a   :  { %3304 = vsyncpa [#allocation7], 1 }

</bundles_post_ra>
